<compile_context>
chip_gen: v7x
topology: tpu7x:2x2x1
jax: 0.10.0
libtpu: 0.0.40
codegen_flags: <defaults>
</compile_context>

<pallas_src>
import functools

import jax
import jax.numpy as jnp
from jax.experimental import pallas as pl
from jax.experimental.pallas import tpu as pltpu

# ----------------------------- model hyper-parameters -----------------------------
FEATURE_DIM = 8          # input feature channels K1
D_MODEL = 128            # d_model (lane-dense: multiple of 128)
N_HEAD = 4
HEAD_DIM = D_MODEL // N_HEAD
D_FF = D_MODEL * 4
N_LAYERS = 2
H_IMG = 4                # spatial H
W_IMG = 4                # spatial W (must equal H_IMG; PyTorch pos-embed relies on it)
SEQ = H_IMG * W_IMG      # tokens per image
BATCH_SIZE = 2
T = 1
EPS = 1e-5               # nn.LayerNorm default eps
GN_EPS = 1e-5            # nn.GroupNorm default eps

MATMUL_DTYPE = jnp.bfloat16   # MXU input dtype (f32 accumulation everywhere)


# ================================ Pallas kernel ====================================
def cross_transformer_stack_kernel(x_init_ref, vecs_ref, b1_ref, wbig_ref, w2_ref,
                                    out_ref, act_ref, *, batch, seq, n_head):
    """One grid step == one CrossTransformer layer applied to BOTH query streams.

    x_init_ref / out_ref : (2*batch*seq, E) f32, rows = [out1 tokens ; out2 tokens]
    act_ref              : VMEM scratch, same shape; carries activations across layers
    vecs_ref : (9, E)  f32 rows = [ln1_g, ln1_b, ln2_g, ln2_b, bq*scale, bk, bv, bo, b2]
    b1_ref   : (1, 4E) f32
    wbig_ref : (E, 8E) bf16 = [Wq*scale | Wk | Wv | Wo | W1], all pre-transposed
    w2_ref   : (4E, E) bf16, pre-transposed
    """
    f32 = jnp.float32
    mm = MATMUL_DTYPE
    e = out_ref.shape[-1]
    dh = e // n_head
    half = batch * seq                    # rows per query stream
    nq = 2 * batch                        # stacked sequences on the query side
    layer = pl.program_id(0)

    @pl.when(layer == 0)
    def _():
        act_ref[...] = x_init_ref[...]

    x = act_ref[...]                      # (2*half, e) f32 residual streams
    diff = x[half:, :] - x[:half, :]      # (half, e)   shared key/value stream

    vecs = vecs_ref[...]
    ln1_g, ln1_b = vecs[0:1, :], vecs[1:2, :]
    ln2_g, ln2_b = vecs[2:3, :], vecs[3:4, :]
    bq, bk, bv = vecs[4:5, :], vecs[5:6, :], vecs[6:7, :]
    bo, b2 = vecs[7:8, :], vecs[8:9, :]

    def layer_norm(z, g, b):
        mu = jnp.mean(z, axis=-1, keepdims=True)
        zc = z - mu
        var = jnp.mean(zc * zc, axis=-1, keepdims=True)
        return zc * jax.lax.rsqrt(var + EPS) * g + b

    # norm1 on the stacked query streams and once on the shared diff stream.
    q_in = layer_norm(x, ln1_g, ln1_b).astype(mm)        # (2*half, e)
    kv_in = layer_norm(diff, ln1_g, ln1_b).astype(mm)    # (half, e)

    # packed, pre-transposed weight slab (static lane slices at 128 boundaries)
    wq_t = wbig_ref[:, 0:e]               # (e, e)   softmax scale pre-folded
    wkv_t = wbig_ref[:, e:3 * e]          # (e, 2e)  fused k|v projection
    wo_t = wbig_ref[:, 3 * e:4 * e]       # (e, e)
    w1_t = wbig_ref[:, 4 * e:8 * e]       # (e, 4e)

    q = (jnp.dot(q_in, wq_t, preferred_element_type=f32) + bq).astype(mm)   # pre-scaled
    kv = jnp.dot(kv_in, wkv_t, preferred_element_type=f32)                  # (half, 2e)
    k = (kv[:, :e] + bk).astype(mm)
    v = (kv[:, e:] + bv).astype(mm)
    # kv computed once on diff; broadcast to both query streams in VMEM (cheap).
    k2 = jnp.concatenate([k, k], axis=0)                                    # (2*half, e)
    v2 = jnp.concatenate([v, v], axis=0)

    # Multi-head attention: per-head batched score/value matmuls; head outputs are
    # gathered into one lane-dense buffer so the output projection is a single
    # full-contraction (K = 128) matmul.
    head_outs = []
    for h in range(n_head):               # static unroll, n_head = 4
        sl = slice(h * dh, (h + 1) * dh)
        qh = q[:, sl].reshape(nq, seq, dh)
        kh = k2[:, sl].reshape(nq, seq, dh)
        vh = v2[:, sl].reshape(nq, seq, dh)
        s = jnp.einsum('bld,bmd->blm', qh, kh, preferred_element_type=f32)  # (nq,L,L)
        s = s - jnp.max(s, axis=-1, keepdims=True)
        p = jnp.exp(s)
        p = p * pl.reciprocal(jnp.sum(p, axis=-1, keepdims=True), approx=True)
        oh = jnp.einsum('blm,bmd->bld', p.astype(mm), vh,
                        preferred_element_type=f32)                         # (nq,L,dh)
        head_outs.append(oh.reshape(nq * seq, dh))
    o_cat = jnp.concatenate(head_outs, axis=-1).astype(mm)                  # (2*half, e)
    attn = jnp.dot(o_cat, wo_t, preferred_element_type=f32) + bo            # single Wo

    out1 = x + attn                       # residual 1 (dropout1 == identity)

    # feed-forward on norm2(out1)
    h2 = layer_norm(out1, ln2_g, ln2_b).astype(mm)
    ff = jnp.dot(h2, w1_t, preferred_element_type=f32) + b1_ref[...]
    ff = jnp.maximum(ff, 0.0).astype(mm)  # ReLU; dropout2 == identity
    ff = jnp.dot(ff, w2_ref[...], preferred_element_type=f32) + b2

    new_x = out1 + ff
    act_ref[...] = new_x                  # carry to the next layer grid step
    out_ref[...] = new_x                  # same block every step -> HBM write at grid end


def _pack_layers(layers):
    """Host-side packing: pre-transpose / fuse / scale / cast and stack per layer."""
    mm = MATMUL_DTYPE
    scale = HEAD_DIM ** -0.5
    vecs, b1s, wbig, w2s = [], [], [], []
    for lp in layers:
        vecs.append(jnp.stack([lp["ln1_g"], lp["ln1_b"], lp["ln2_g"], lp["ln2_b"],
                               lp["bq"] * scale, lp["bk"], lp["bv"],
                               lp["bo"], lp["b2"]], axis=0))                 # (9, E)
        b1s.append(lp["b1"][None, :])                                        # (1, 4E)
        wq_t = (lp["wq"] * scale).T                                          # fold scale
        wkv_t = jnp.concatenate([lp["wk"], lp["wv"]], axis=0).T              # (E, 2E)
        wbig.append(jnp.concatenate([wq_t, wkv_t, lp["wo"].T, lp["w1"].T],
                                    axis=1).astype(mm))                      # (E, 8E)
        w2s.append(lp["w2"].T.astype(mm))                                    # (4E, E)
    return (jnp.stack(vecs).astype(jnp.float32),        # (L, 9, E)
            jnp.stack(b1s).astype(jnp.float32),         # (L, 1, 4E)
            jnp.stack(wbig),                            # (L, E, 8E) bf16
            jnp.stack(w2s))                             # (L, 4E, E) bf16


def apply_transformer_stack(out1, out2, packed):
    """out1, out2: (batch, HW, E) f32.  Runs ALL CrossTransformer layers in one
    grid-pipelined pallas_call and returns the updated (out1, out2)."""
    batch, seq, e = out1.shape
    nq = 2 * batch
    vecs, b1, wbig, w2 = packed
    n_layers = vecs.shape[0]
    x_init = jnp.concatenate([out1, out2], axis=0).reshape(nq * seq, e)
    kernel = functools.partial(cross_transformer_stack_kernel,
                               batch=batch, seq=seq, n_head=N_HEAD)
    y = pl.pallas_call(
        kernel,
        out_shape=jax.ShapeDtypeStruct((nq * seq, e), jnp.float32),
        grid=(n_layers,),
        in_specs=[
            pl.BlockSpec((nq * seq, e), lambda l: (0, 0)),         # activations (layer 0)
            pl.BlockSpec((None, 9, e), lambda l: (l, 0, 0)),       # per-layer vec pack
            pl.BlockSpec((None, 1, 4 * e), lambda l: (l, 0, 0)),   # per-layer b1
            pl.BlockSpec((None, e, 8 * e), lambda l: (l, 0, 0)),   # per-layer weight slab
            pl.BlockSpec((None, 4 * e, e), lambda l: (l, 0, 0)),   # per-layer W2
        ],
        out_specs=pl.BlockSpec((nq * seq, e), lambda l: (0, 0)),
        scratch_shapes=[pltpu.VMEM((nq * seq, e), jnp.float32)],
        compiler_params=pltpu.CompilerParams(
            dimension_semantics=("arbitrary",)),       # layer axis carries state serially
    )(x_init, vecs, b1, wbig, w2)
    y = y.reshape(2, batch, seq, e)
    return y[0], y[1]


# ============================ Proposed_SAM forward (wrapper) ========================
def proposed_sam_forward(img_feat1, img_feat2, params):
    """Full Proposed_SAM forward.  The CrossTransformer stack runs in one Pallas call;
    the tiny 1x1 convs / position embedding / GroupNorm / sigmoid pooling stay as
    XLA ops in token-major layout (XLA fuses them)."""
    bsz, t, k1, hh, ww = img_feat1.shape
    # PyTorch's position-embedding construction only lines up for square inputs.
    assert hh == ww, "Proposed_SAM position embedding requires H == W"
    batch = bsz * t
    d = D_MODEL
    x1 = img_feat1.reshape(batch, k1, hh, ww)
    x2 = img_feat2.reshape(batch, k1, hh, ww)

    # 1x1 projection conv, produced directly in (batch, HW, d) token layout.
    def project(x):
        y = jnp.einsum('bchw,dc->bhwd', x, params["proj_w"])
        return y.reshape(batch, hh * ww, d) + params["proj_b"][None, None, :]

    f1 = project(x1)
    f2 = project(x2)

    # position embedding (mirrors the PyTorch construction: w=size(2), h=size(3))
    w_sz, h_sz = hh, ww
    embed_w = params["w_emb"][:w_sz]                     # (w, d/2)
    embed_h = params["h_emb"][:h_sz]                     # (h, d/2)
    pe = jnp.concatenate(
        [jnp.broadcast_to(embed_w[None, :, :], (h_sz, w_sz, d // 2)),
         jnp.broadcast_to(embed_h[:, None, :], (h_sz, w_sz, d // 2))],
        axis=-1).reshape(h_sz * w_sz, d)                 # pe[i*w+j] = [emb_w[j], emb_h[i]]
    f1 = f1 + pe[None]
    f2 = f2 + pe[None]

    out1_bef, out2_bef = f1, f2                          # (batch, HW, d)
    input_diff = f2 - f1

    packed = _pack_layers(params["layers"])
    out1, out2 = apply_transformer_stack(f1, f2, packed)   # one fused Pallas call

    # embed (1x1 conv -> GroupNorm(32,64) -> [dropout=id] -> ReLU), att conv, pooling
    def embed_head(x):                                   # x: (batch, HW, 3d)
        y = x @ params["embed_w"].T + params["embed_b"][None, None, :]   # (batch,HW,64)
        yg = y.reshape(batch, hh * ww, 32, 2)
        mu = yg.mean(axis=(1, 3), keepdims=True)
        var = yg.var(axis=(1, 3), keepdims=True)
        yg = (yg - mu) / jnp.sqrt(var + GN_EPS)
        y = yg.reshape(batch, hh * ww, 64) * params["gn_g"][None, None, :] \
            + params["gn_b"][None, None, :]
        return jnp.maximum(y, 0.0)

    inp_before = jnp.concatenate([out1_bef, input_diff, out1], axis=-1)  # (batch,HW,3d)
    inp_after = jnp.concatenate([out2_bef, input_diff, out2], axis=-1)
    eb = embed_head(inp_before)
    ea = embed_head(inp_after)
    att_b = jax.nn.sigmoid(eb @ params["att_w"].T + params["att_b"][None, None, :])
    att_a = jax.nn.sigmoid(ea @ params["att_w"].T + params["att_b"][None, None, :])
    attended_1 = jnp.sum(out1_bef * att_b, axis=1)       # (batch, d)
    attended_2 = jnp.sum(out2_bef * att_a, axis=1)

    attended_1 = attended_1.reshape(bsz, t, -1)
    attended_2 = attended_2.reshape(bsz, t, -1)
    return jnp.concatenate([attended_1, attended_2 - attended_1, attended_2], axis=-1)


# ====================== pure-JAX reference (PyTorch-literal layout) =================
def _cross_transformer_ref(in1, in2, lp):
    """Reference CrossTransformer in the torch (L, N, E) layout, same bf16 MXU casts."""
    L, N, E = in1.shape
    mm = MATMUL_DTYPE
    f32 = jnp.float32

    def ln(x, g, b):
        mu = x.mean(-1, keepdims=True)
        var = ((x - mu) ** 2).mean(-1, keepdims=True)
        return (x - mu) / jnp.sqrt(var + EPS) * g + b

    q_in = ln(in1, lp["ln1_g"], lp["ln1_b"]).astype(mm)
    kv_in = ln(in2, lp["ln1_g"], lp["ln1_b"]).astype(mm)
    q = jnp.einsum('lne,de->lnd', q_in, lp["wq"].astype(mm),
                   preferred_element_type=f32) + lp["bq"]
    k = jnp.einsum('lne,de->lnd', kv_in, lp["wk"].astype(mm),
                   preferred_element_type=f32) + lp["bk"]
    v = jnp.einsum('lne,de->lnd', kv_in, lp["wv"].astype(mm),
                   preferred_element_type=f32) + lp["bv"]

    dh = E // N_HEAD

    def split(x):                                       # (L,N,E) -> (N,H,L,dh)
        return jnp.transpose(x.reshape(L, N, N_HEAD, dh), (1, 2, 0, 3))

    qh = split(q * (dh ** -0.5)).astype(mm)
    kh = split(k).astype(mm)
    vh = split(v).astype(mm)
    s = jnp.einsum('nhld,nhmd->nhlm', qh, kh, preferred_element_type=f32)
    p = jax.nn.softmax(s, axis=-1)
    o = jnp.einsum('nhlm,nhmd->nhld', p.astype(mm), vh, preferred_element_type=f32)
    o = jnp.transpose(o, (2, 0, 1, 3)).reshape(L, N, E)
    attn = jnp.einsum('lne,de->lnd', o.astype(mm), lp["wo"].astype(mm),
                      preferred_element_type=f32) + lp["bo"]
    out1 = in1 + attn
    h2 = ln(out1, lp["ln2_g"], lp["ln2_b"]).astype(mm)
    ff = jnp.einsum('lne,fe->lnf', h2, lp["w1"].astype(mm),
                    preferred_element_type=f32) + lp["b1"]
    ff = jnp.maximum(ff, 0.0).astype(mm)
    ff = jnp.einsum('lnf,ef->lne', ff, lp["w2"].astype(mm),
                    preferred_element_type=f32) + lp["b2"]
    return out1 + ff


def proposed_sam_ref(img_feat1, img_feat2, params):
    bsz, t, k1, Hi, Wi = img_feat1.shape
    batch = bsz * t
    d = D_MODEL
    x1 = img_feat1.reshape(batch, k1, Hi, Wi)
    x2 = img_feat2.reshape(batch, k1, Hi, Wi)
    pb = params["proj_b"][None, :, None, None]
    pf1 = jnp.einsum('bchw,dc->bdhw', x1, params["proj_w"]) + pb
    pf2 = jnp.einsum('bchw,dc->bdhw', x2, params["proj_w"]) + pb

    w_sz, h_sz = Hi, Wi
    embed_w = params["w_emb"][jnp.arange(w_sz)]
    embed_h = params["h_emb"][jnp.arange(h_sz)]
    pos = jnp.concatenate([jnp.tile(embed_w[None, :, :], (h_sz, 1, 1)),
                           jnp.tile(embed_h[:, None, :], (1, w_sz, 1))], axis=-1)
    pos = jnp.transpose(pos, (2, 0, 1))[None]
    pf1 = pf1 + pos
    pf2 = pf2 + pos

    out1 = jnp.transpose(pf1.reshape(batch, d, -1), (2, 0, 1))   # (HW, batch, d)
    out2 = jnp.transpose(pf2.reshape(batch, d, -1), (2, 0, 1))
    out1_bef, out2_bef = out1, out2
    input_diff = out2 - out1
    for lp in params["layers"]:
        diff = out2 - out1
        o1 = _cross_transformer_ref(out1, diff, lp)
        o2 = _cross_transformer_ref(out2, diff, lp)
        out1, out2 = o1, o2

    def to_im(x):                                                # -> (batch, d, H, W)
        return jnp.transpose(x, (1, 2, 0)).reshape(batch, d, Hi, Wi)

    o1b, o2b = to_im(out1_bef), to_im(out2_bef)
    o1, o2 = to_im(out1), to_im(out2)
    idiff = to_im(input_diff)
    inp_before = jnp.concatenate([o1b, idiff, o1], axis=1)
    inp_after = jnp.concatenate([o2b, idiff, o2], axis=1)

    def embed_head(x):
        y = jnp.einsum('bchw,dc->bdhw', x, params["embed_w"]) \
            + params["embed_b"][None, :, None, None]
        yg = y.reshape(batch, 32, 2, Hi, Wi)
        mu = yg.mean(axis=(2, 3, 4), keepdims=True)
        var = yg.var(axis=(2, 3, 4), keepdims=True)
        yg = (yg - mu) / jnp.sqrt(var + GN_EPS)
        y = yg.reshape(batch, 64, Hi, Wi) * params["gn_g"][None, :, None, None] \
            + params["gn_b"][None, :, None, None]
        return jnp.maximum(y, 0.0)

    eb, ea = embed_head(inp_before), embed_head(inp_after)
    ab = params["att_b"][None, :, None, None]
    att_b = jax.nn.sigmoid(jnp.einsum('bchw,dc->bdhw', eb, params["att_w"]) + ab)
    att_a = jax.nn.sigmoid(jnp.einsum('bchw,dc->bdhw', ea, params["att_w"]) + ab)
    attended_1 = (o1b * att_b).sum(axis=(2, 3)).reshape(bsz, t, -1)
    attended_2 = (o2b * att_a).sum(axis=(2, 3)).reshape(bsz, t, -1)
    return jnp.concatenate([attended_1, attended_2 - attended_1, attended_2], axis=-1)


# ================================== parameters ======================================
def init_params(key):
    d, dff, k1 = D_MODEL, D_FF, FEATURE_DIM
    keys = iter(jax.random.split(key, 64))

    def xavier(shape):
        fan_out, fan_in = shape[0], shape[1]
        lim = (6.0 / (fan_in + fan_out)) ** 0.5
        return jax.random.uniform(next(keys), shape, jnp.float32, -lim, lim)

    def small(shape):
        return 0.02 * jax.random.normal(next(keys), shape, jnp.float32)

    def near_one(shape):
        return 1.0 + 0.1 * jax.random.normal(next(keys), shape, jnp.float32)

    layers = []
    for _ in range(N_LAYERS):
        in_proj = xavier((3 * d, d))                     # MHA in_proj_weight
        layers.append(dict(
            ln1_g=near_one((d,)), ln1_b=small((d,)),
            ln2_g=near_one((d,)), ln2_b=small((d,)),
            wq=in_proj[:d], wk=in_proj[d:2 * d], wv=in_proj[2 * d:],
            bq=small((d,)), bk=small((d,)), bv=small((d,)),
            wo=xavier((d, d)), bo=small((d,)),
            w1=xavier((dff, d)), b1=small((dff,)),
            w2=xavier((d, dff)), b2=small((d,)),
        ))
    return dict(
        proj_w=xavier((d, k1)), proj_b=small((d,)),
        w_emb=xavier((H_IMG, d // 2)), h_emb=xavier((W_IMG, d // 2)),
        layers=layers,
        embed_w=xavier((64, 3 * d)), embed_b=small((64,)),
        gn_g=near_one((64,)), gn_b=small((64,)),
        att_w=xavier((1, 64)), att_b=small((1,)),
    )


# ===================================== main =========================================
if __name__ == "__main__":
    key = jax.random.PRNGKey(0)
    ka, kb, kp = jax.random.split(key, 3)
    img1 = jax.random.normal(ka, (BATCH_SIZE, T, FEATURE_DIM, H_IMG, W_IMG), jnp.float32)
    img2 = jax.random.normal(kb, (BATCH_SIZE, T, FEATURE_DIM, H_IMG, W_IMG), jnp.float32)
    params = init_params(kp)

    sam_fwd = jax.jit(proposed_sam_forward)
    out = jax.block_until_ready(sam_fwd(img1, img2, params))
    assert out.shape == (BATCH_SIZE, T, 3 * D_MODEL)

    ref = jax.block_until_ready(jax.jit(proposed_sam_ref)(img1, img2, params))
    err = float(jnp.max(jnp.abs(out - ref)))
    # tolerance reflects bf16 MXU inputs, host-side scale folding (pre- vs post-bf16
    # rounding of Wq) and approx-reciprocal softmax in the kernel versus the exact
    # softmax reference (same bf16 matmul casts, f32 accumulation).
    assert jnp.allclose(out, ref, atol=2e-2, rtol=2e-2), f"max|err|={err}"
    print("KERNEL_OK")
</pallas_src>

<mosaic_0001>
module attributes {stable_mosaic.version = 11 : i64} {
  func.func @cross_transformer_stack_kernel(%arg0: i32, %arg1: memref<64x128xf32, #tpu.memory_space<vmem>>, %arg2: memref<1x9x128xf32, #tpu.memory_space<vmem>>, %arg3: memref<1x1x512xf32, #tpu.memory_space<vmem>>, %arg4: memref<1x128x1024xbf16, #tpu.memory_space<vmem>>, %arg5: memref<1x512x128xbf16, #tpu.memory_space<vmem>>, %arg6: memref<64x128xf32, #tpu.memory_space<vmem>>, %arg7: memref<64x128xf32, #tpu.memory_space<vmem>>) attributes {dimension_semantics = [#tpu.dimension_semantics<arbitrary>], iteration_bounds = array<i64: 2>, scalar_prefetch = 0 : i64, scratch_operands = 1 : i64, tpu.core_type = #tpu.core_type<tc>, window_params = [{pipeline_mode = #tpu.pipeline_mode<synchronous>, transform_indices = @transform_0, window_bounds = array<i64: 64, 128>}, {transform_indices = @transform_1, window_bounds = array<i64: 1, 9, 128>}, {transform_indices = @transform_2, window_bounds = array<i64: 1, 1, 512>}, {transform_indices = @transform_3, window_bounds = array<i64: 1, 128, 1024>}, {transform_indices = @transform_4, window_bounds = array<i64: 1, 512, 128>}, {pipeline_mode = #tpu.pipeline_mode<synchronous>, transform_indices = @transform_5, window_bounds = array<i64: 64, 128>}]} {
    %c0_i32 = arith.constant 0 : i32
    %0 = arith.cmpi eq, %arg0, %c0_i32 : i32
    %1 = arith.extui %0 : i1 to i32
    %c0_i32_0 = arith.constant 0 : i32
    %2 = arith.cmpi ne, %1, %c0_i32_0 : i32
    scf.if %2 {
      %c0_60 = arith.constant 0 : index
      %c0_61 = arith.constant 0 : index
      %206 = vector.load %arg1[%c0_60, %c0_61] : memref<64x128xf32, #tpu.memory_space<vmem>>, vector<64x128xf32>
      %c0_62 = arith.constant 0 : index
      %c0_63 = arith.constant 0 : index
      %207 = vector.load %arg7[%c0_62, %c0_63] : memref<64x128xf32, #tpu.memory_space<vmem>>, vector<64x128xf32>
      tpu.vector_store %arg7[%c0_62, %c0_63], %206 {strides = array<i32>} : memref<64x128xf32, #tpu.memory_space<vmem>>, vector<64x128xf32>,
    } else {
    }
    %c0 = arith.constant 0 : index
    %c0_1 = arith.constant 0 : index
    %3 = vector.load %arg7[%c0, %c0_1] : memref<64x128xf32, #tpu.memory_space<vmem>>, vector<64x128xf32>
    %4 = vector.extract_strided_slice %3 {offsets = [32, 0], sizes = [32, 128], strides = [1, 1]} : vector<64x128xf32> to vector<32x128xf32>
    %5 = vector.extract_strided_slice %3 {offsets = [0, 0], sizes = [32, 128], strides = [1, 1]} : vector<64x128xf32> to vector<32x128xf32>
    %6 = arith.subf %4, %5 : vector<32x128xf32>
    %c0_2 = arith.constant 0 : index
    %c0_3 = arith.constant 0 : index
    %c0_4 = arith.constant 0 : index
    %7 = vector.load %arg2[%c0_2, %c0_3, %c0_4] : memref<1x9x128xf32, #tpu.memory_space<vmem>>, vector<1x9x128xf32>
    %8 = vector.shape_cast %7 : vector<1x9x128xf32> to vector<9x128xf32>
    %9 = vector.extract_strided_slice %8 {offsets = [0, 0], sizes = [1, 128], strides = [1, 1]} : vector<9x128xf32> to vector<1x128xf32>
    %10 = vector.extract_strided_slice %8 {offsets = [1, 0], sizes = [1, 128], strides = [1, 1]} : vector<9x128xf32> to vector<1x128xf32>
    %11 = vector.extract_strided_slice %8 {offsets = [2, 0], sizes = [1, 128], strides = [1, 1]} : vector<9x128xf32> to vector<1x128xf32>
    %12 = vector.extract_strided_slice %8 {offsets = [3, 0], sizes = [1, 128], strides = [1, 1]} : vector<9x128xf32> to vector<1x128xf32>
    %13 = vector.extract_strided_slice %8 {offsets = [4, 0], sizes = [1, 128], strides = [1, 1]} : vector<9x128xf32> to vector<1x128xf32>
    %14 = vector.extract_strided_slice %8 {offsets = [5, 0], sizes = [1, 128], strides = [1, 1]} : vector<9x128xf32> to vector<1x128xf32>
    %15 = vector.extract_strided_slice %8 {offsets = [6, 0], sizes = [1, 128], strides = [1, 1]} : vector<9x128xf32> to vector<1x128xf32>
    %16 = vector.extract_strided_slice %8 {offsets = [7, 0], sizes = [1, 128], strides = [1, 1]} : vector<9x128xf32> to vector<1x128xf32>
    %17 = vector.extract_strided_slice %8 {offsets = [8, 0], sizes = [1, 128], strides = [1, 1]} : vector<9x128xf32> to vector<1x128xf32>
    %cst = arith.constant dense<0.000000e+00> : vector<64xf32>
    %18 = vector.multi_reduction <add>, %3, %cst [1] : vector<64x128xf32> to vector<64xf32>
    %19 = vector.shape_cast %18 : vector<64xf32> to vector<64x1xf32>
    %cst_5 = arith.constant 1.280000e+02 : f32
    %20 = vector.broadcast %cst_5 : f32 to vector<64x1xf32>
    %21 = arith.divf %19, %20 : vector<64x1xf32>
    %22 = vector.broadcast %21 : vector<64x1xf32> to vector<64x128xf32>
    %23 = arith.subf %3, %22 : vector<64x128xf32>
    %24 = arith.mulf %23, %23 : vector<64x128xf32>
    %cst_6 = arith.constant dense<0.000000e+00> : vector<64xf32>
    %25 = vector.multi_reduction <add>, %24, %cst_6 [1] : vector<64x128xf32> to vector<64xf32>
    %26 = vector.shape_cast %25 : vector<64xf32> to vector<64x1xf32>
    %cst_7 = arith.constant 1.280000e+02 : f32
    %27 = vector.broadcast %cst_7 : f32 to vector<64x1xf32>
    %28 = arith.divf %26, %27 : vector<64x1xf32>
    %cst_8 = arith.constant 9.99999974E-6 : f32
    %29 = vector.broadcast %cst_8 : f32 to vector<64x1xf32>
    %30 = arith.addf %28, %29 : vector<64x1xf32>
    %31 = math.rsqrt %30 : vector<64x1xf32>
    %32 = vector.broadcast %31 : vector<64x1xf32> to vector<64x128xf32>
    %33 = arith.mulf %23, %32 : vector<64x128xf32>
    %34 = vector.broadcast %9 : vector<1x128xf32> to vector<64x128xf32>
    %35 = arith.mulf %33, %34 : vector<64x128xf32>
    %36 = vector.broadcast %10 : vector<1x128xf32> to vector<64x128xf32>
    %37 = arith.addf %35, %36 : vector<64x128xf32>
    %38 = arith.truncf %37 : vector<64x128xf32> to vector<64x128xbf16>
    %cst_9 = arith.constant dense<0.000000e+00> : vector<32xf32>
    %39 = vector.multi_reduction <add>, %6, %cst_9 [1] : vector<32x128xf32> to vector<32xf32>
    %40 = vector.shape_cast %39 : vector<32xf32> to vector<32x1xf32>
    %cst_10 = arith.constant 1.280000e+02 : f32
    %41 = vector.broadcast %cst_10 : f32 to vector<32x1xf32>
    %42 = arith.divf %40, %41 : vector<32x1xf32>
    %43 = vector.broadcast %42 : vector<32x1xf32> to vector<32x128xf32>
    %44 = arith.subf %6, %43 : vector<32x128xf32>
    %45 = arith.mulf %44, %44 : vector<32x128xf32>
    %cst_11 = arith.constant dense<0.000000e+00> : vector<32xf32>
    %46 = vector.multi_reduction <add>, %45, %cst_11 [1] : vector<32x128xf32> to vector<32xf32>
    %47 = vector.shape_cast %46 : vector<32xf32> to vector<32x1xf32>
    %cst_12 = arith.constant 1.280000e+02 : f32
    %48 = vector.broadcast %cst_12 : f32 to vector<32x1xf32>
    %49 = arith.divf %47, %48 : vector<32x1xf32>
    %cst_13 = arith.constant 9.99999974E-6 : f32
    %50 = vector.broadcast %cst_13 : f32 to vector<32x1xf32>
    %51 = arith.addf %49, %50 : vector<32x1xf32>
    %52 = math.rsqrt %51 : vector<32x1xf32>
    %53 = vector.broadcast %52 : vector<32x1xf32> to vector<32x128xf32>
    %54 = arith.mulf %44, %53 : vector<32x128xf32>
    %55 = vector.broadcast %9 : vector<1x128xf32> to vector<32x128xf32>
    %56 = arith.mulf %54, %55 : vector<32x128xf32>
    %57 = vector.broadcast %10 : vector<1x128xf32> to vector<32x128xf32>
    %58 = arith.addf %56, %57 : vector<32x128xf32>
    %59 = arith.truncf %58 : vector<32x128xf32> to vector<32x128xbf16>
    %c0_14 = arith.constant 0 : index
    %c0_15 = arith.constant 0 : index
    %c0_16 = arith.constant 0 : index
    %60 = vector.load %arg4[%c0_14, %c0_15, %c0_16] : memref<1x128x1024xbf16, #tpu.memory_space<vmem>>, vector<1x128x128xbf16>
    %61 = vector.shape_cast %60 : vector<1x128x128xbf16> to vector<128x128xbf16>
    %c0_17 = arith.constant 0 : index
    %c0_18 = arith.constant 0 : index
    %c128 = arith.constant 128 : index
    %62 = vector.load %arg4[%c0_17, %c0_18, %c128] : memref<1x128x1024xbf16, #tpu.memory_space<vmem>>, vector<1x128x256xbf16>
    %63 = vector.shape_cast %62 : vector<1x128x256xbf16> to vector<128x256xbf16>
    %c0_19 = arith.constant 0 : index
    %c0_20 = arith.constant 0 : index
    %c384 = arith.constant 384 : index
    %64 = vector.load %arg4[%c0_19, %c0_20, %c384] : memref<1x128x1024xbf16, #tpu.memory_space<vmem>>, vector<1x128x128xbf16>
    %65 = vector.shape_cast %64 : vector<1x128x128xbf16> to vector<128x128xbf16>
    %c0_21 = arith.constant 0 : index
    %c0_22 = arith.constant 0 : index
    %c512 = arith.constant 512 : index
    %66 = vector.load %arg4[%c0_21, %c0_22, %c512] : memref<1x128x1024xbf16, #tpu.memory_space<vmem>>, vector<1x128x512xbf16>
    %67 = vector.shape_cast %66 : vector<1x128x512xbf16> to vector<128x512xbf16>
    %cst_23 = arith.constant dense<0.000000e+00> : vector<64x128xf32>
    %68 = tpu.matmul %38, %61, %cst_23 {dimension_numbers = #tpu.dot_dimension_numbers<[1], [0], [0], [1], [0, 0, 1, 1], [], []>} : vector<64x128xbf16>, vector<128x128xbf16>, vector<64x128xf32> -> vector<64x128xf32>
    %69 = vector.broadcast %13 : vector<1x128xf32> to vector<64x128xf32>
    %70 = arith.addf %68, %69 : vector<64x128xf32>
    %71 = arith.truncf %70 : vector<64x128xf32> to vector<64x128xbf16>
    %cst_24 = arith.constant dense<0.000000e+00> : vector<32x256xf32>
    %72 = tpu.matmul %59, %63, %cst_24 {dimension_numbers = #tpu.dot_dimension_numbers<[1], [0], [0], [1], [0, 0, 1, 1], [], []>} : vector<32x128xbf16>, vector<128x256xbf16>, vector<32x256xf32> -> vector<32x256xf32>
    %73 = vector.extract_strided_slice %72 {offsets = [0, 0], sizes = [32, 128], strides = [1, 1]} : vector<32x256xf32> to vector<32x128xf32>
    %74 = vector.broadcast %14 : vector<1x128xf32> to vector<32x128xf32>
    %75 = arith.addf %73, %74 : vector<32x128xf32>
    %76 = arith.truncf %75 : vector<32x128xf32> to vector<32x128xbf16>
    %77 = vector.extract_strided_slice %72 {offsets = [0, 128], sizes = [32, 128], strides = [1, 1]} : vector<32x256xf32> to vector<32x128xf32>
    %78 = vector.broadcast %15 : vector<1x128xf32> to vector<32x128xf32>
    %79 = arith.addf %77, %78 : vector<32x128xf32>
    %80 = arith.truncf %79 : vector<32x128xf32> to vector<32x128xbf16>
    %81 = tpu.concatenate %76, %76 in 0 : vector<32x128xbf16>, vector<32x128xbf16> -> vector<64x128xbf16>
    %82 = tpu.concatenate %80, %80 in 0 : vector<32x128xbf16>, vector<32x128xbf16> -> vector<64x128xbf16>
    %83 = vector.extract_strided_slice %71 {offsets = [0, 0], sizes = [64, 32], strides = [1, 1]} : vector<64x128xbf16> to vector<64x32xbf16>
    %84 = vector.shape_cast %83 : vector<64x32xbf16> to vector<4x16x32xbf16>
    %85 = vector.extract_strided_slice %81 {offsets = [0, 0], sizes = [64, 32], strides = [1, 1]} : vector<64x128xbf16> to vector<64x32xbf16>
    %86 = vector.shape_cast %85 : vector<64x32xbf16> to vector<4x16x32xbf16>
    %87 = vector.extract_strided_slice %82 {offsets = [0, 0], sizes = [64, 32], strides = [1, 1]} : vector<64x128xbf16> to vector<64x32xbf16>
    %88 = vector.shape_cast %87 : vector<64x32xbf16> to vector<4x16x32xbf16>
    "tpu.trace_start"() <{level = 10 : i32, message = "bld,bmd->blm"}> : () -> ()
    %cst_25 = arith.constant dense<0.000000e+00> : vector<4x16x16xf32>
    %89 = tpu.matmul %84, %86, %cst_25 {dimension_numbers = #tpu.dot_dimension_numbers<[2], [2], [1], [1], [0, 0, 0, 1, 1, 1], [0], [0]>} : vector<4x16x32xbf16>, vector<4x16x32xbf16>, vector<4x16x16xf32> -> vector<4x16x16xf32>
    "tpu.trace_stop"() : () -> ()
    %cst_26 = arith.constant dense<0xFF800000> : vector<4x16xf32>
    %90 = vector.multi_reduction <maximumf>, %89, %cst_26 [2] : vector<4x16x16xf32> to vector<4x16xf32>
    %91 = vector.shape_cast %90 : vector<4x16xf32> to vector<4x16x1xf32>
    %92 = vector.broadcast %91 : vector<4x16x1xf32> to vector<4x16x16xf32>
    %93 = arith.subf %89, %92 : vector<4x16x16xf32>
    %94 = math.exp %93 : vector<4x16x16xf32>
    %cst_27 = arith.constant dense<0.000000e+00> : vector<4x16xf32>
    %95 = vector.multi_reduction <add>, %94, %cst_27 [2] : vector<4x16x16xf32> to vector<4x16xf32>
    %96 = vector.shape_cast %95 : vector<4x16xf32> to vector<4x16x1xf32>
    %97 = tpu.reciprocal %96 {approx = true} : vector<4x16x1xf32> -> vector<4x16x1xf32>
    %98 = vector.broadcast %97 : vector<4x16x1xf32> to vector<4x16x16xf32>
    %99 = arith.mulf %94, %98 : vector<4x16x16xf32>
    %100 = arith.truncf %99 : vector<4x16x16xf32> to vector<4x16x16xbf16>
    "tpu.trace_start"() <{level = 10 : i32, message = "blm,bmd->bld"}> : () -> ()
    %cst_28 = arith.constant dense<0.000000e+00> : vector<4x16x32xf32>
    %101 = tpu.matmul %100, %88, %cst_28 {dimension_numbers = #tpu.dot_dimension_numbers<[2], [1], [1], [2], [0, 0, 0, 1, 1, 2], [0], [0]>} : vector<4x16x16xbf16>, vector<4x16x32xbf16>, vector<4x16x32xf32> -> vector<4x16x32xf32>
    "tpu.trace_stop"() : () -> ()
    %102 = vector.shape_cast %101 : vector<4x16x32xf32> to vector<64x32xf32>
    %103 = vector.extract_strided_slice %71 {offsets = [0, 32], sizes = [64, 32], strides = [1, 1]} : vector<64x128xbf16> to vector<64x32xbf16>
    %104 = vector.shape_cast %103 : vector<64x32xbf16> to vector<4x16x32xbf16>
    %105 = vector.extract_strided_slice %81 {offsets = [0, 32], sizes = [64, 32], strides = [1, 1]} : vector<64x128xbf16> to vector<64x32xbf16>
    %106 = vector.shape_cast %105 : vector<64x32xbf16> to vector<4x16x32xbf16>
    %107 = vector.extract_strided_slice %82 {offsets = [0, 32], sizes = [64, 32], strides = [1, 1]} : vector<64x128xbf16> to vector<64x32xbf16>
    %108 = vector.shape_cast %107 : vector<64x32xbf16> to vector<4x16x32xbf16>
    "tpu.trace_start"() <{level = 10 : i32, message = "bld,bmd->blm"}> : () -> ()
    %cst_29 = arith.constant dense<0.000000e+00> : vector<4x16x16xf32>
    %109 = tpu.matmul %104, %106, %cst_29 {dimension_numbers = #tpu.dot_dimension_numbers<[2], [2], [1], [1], [0, 0, 0, 1, 1, 1], [0], [0]>} : vector<4x16x32xbf16>, vector<4x16x32xbf16>, vector<4x16x16xf32> -> vector<4x16x16xf32>
    "tpu.trace_stop"() : () -> ()
    %cst_30 = arith.constant dense<0xFF800000> : vector<4x16xf32>
    %110 = vector.multi_reduction <maximumf>, %109, %cst_30 [2] : vector<4x16x16xf32> to vector<4x16xf32>
    %111 = vector.shape_cast %110 : vector<4x16xf32> to vector<4x16x1xf32>
    %112 = vector.broadcast %111 : vector<4x16x1xf32> to vector<4x16x16xf32>
    %113 = arith.subf %109, %112 : vector<4x16x16xf32>
    %114 = math.exp %113 : vector<4x16x16xf32>
    %cst_31 = arith.constant dense<0.000000e+00> : vector<4x16xf32>
    %115 = vector.multi_reduction <add>, %114, %cst_31 [2] : vector<4x16x16xf32> to vector<4x16xf32>
    %116 = vector.shape_cast %115 : vector<4x16xf32> to vector<4x16x1xf32>
    %117 = tpu.reciprocal %116 {approx = true} : vector<4x16x1xf32> -> vector<4x16x1xf32>
    %118 = vector.broadcast %117 : vector<4x16x1xf32> to vector<4x16x16xf32>
    %119 = arith.mulf %114, %118 : vector<4x16x16xf32>
    %120 = arith.truncf %119 : vector<4x16x16xf32> to vector<4x16x16xbf16>
    "tpu.trace_start"() <{level = 10 : i32, message = "blm,bmd->bld"}> : () -> ()
    %cst_32 = arith.constant dense<0.000000e+00> : vector<4x16x32xf32>
    %121 = tpu.matmul %120, %108, %cst_32 {dimension_numbers = #tpu.dot_dimension_numbers<[2], [1], [1], [2], [0, 0, 0, 1, 1, 2], [0], [0]>} : vector<4x16x16xbf16>, vector<4x16x32xbf16>, vector<4x16x32xf32> -> vector<4x16x32xf32>
    "tpu.trace_stop"() : () -> ()
    %122 = vector.shape_cast %121 : vector<4x16x32xf32> to vector<64x32xf32>
    %123 = vector.extract_strided_slice %71 {offsets = [0, 64], sizes = [64, 32], strides = [1, 1]} : vector<64x128xbf16> to vector<64x32xbf16>
    %124 = vector.shape_cast %123 : vector<64x32xbf16> to vector<4x16x32xbf16>
    %125 = vector.extract_strided_slice %81 {offsets = [0, 64], sizes = [64, 32], strides = [1, 1]} : vector<64x128xbf16> to vector<64x32xbf16>
    %126 = vector.shape_cast %125 : vector<64x32xbf16> to vector<4x16x32xbf16>
    %127 = vector.extract_strided_slice %82 {offsets = [0, 64], sizes = [64, 32], strides = [1, 1]} : vector<64x128xbf16> to vector<64x32xbf16>
    %128 = vector.shape_cast %127 : vector<64x32xbf16> to vector<4x16x32xbf16>
    "tpu.trace_start"() <{level = 10 : i32, message = "bld,bmd->blm"}> : () -> ()
    %cst_33 = arith.constant dense<0.000000e+00> : vector<4x16x16xf32>
    %129 = tpu.matmul %124, %126, %cst_33 {dimension_numbers = #tpu.dot_dimension_numbers<[2], [2], [1], [1], [0, 0, 0, 1, 1, 1], [0], [0]>} : vector<4x16x32xbf16>, vector<4x16x32xbf16>, vector<4x16x16xf32> -> vector<4x16x16xf32>
    "tpu.trace_stop"() : () -> ()
    %cst_34 = arith.constant dense<0xFF800000> : vector<4x16xf32>
    %130 = vector.multi_reduction <maximumf>, %129, %cst_34 [2] : vector<4x16x16xf32> to vector<4x16xf32>
    %131 = vector.shape_cast %130 : vector<4x16xf32> to vector<4x16x1xf32>
    %132 = vector.broadcast %131 : vector<4x16x1xf32> to vector<4x16x16xf32>
    %133 = arith.subf %129, %132 : vector<4x16x16xf32>
    %134 = math.exp %133 : vector<4x16x16xf32>
    %cst_35 = arith.constant dense<0.000000e+00> : vector<4x16xf32>
    %135 = vector.multi_reduction <add>, %134, %cst_35 [2] : vector<4x16x16xf32> to vector<4x16xf32>
    %136 = vector.shape_cast %135 : vector<4x16xf32> to vector<4x16x1xf32>
    %137 = tpu.reciprocal %136 {approx = true} : vector<4x16x1xf32> -> vector<4x16x1xf32>
    %138 = vector.broadcast %137 : vector<4x16x1xf32> to vector<4x16x16xf32>
    %139 = arith.mulf %134, %138 : vector<4x16x16xf32>
    %140 = arith.truncf %139 : vector<4x16x16xf32> to vector<4x16x16xbf16>
    "tpu.trace_start"() <{level = 10 : i32, message = "blm,bmd->bld"}> : () -> ()
    %cst_36 = arith.constant dense<0.000000e+00> : vector<4x16x32xf32>
    %141 = tpu.matmul %140, %128, %cst_36 {dimension_numbers = #tpu.dot_dimension_numbers<[2], [1], [1], [2], [0, 0, 0, 1, 1, 2], [0], [0]>} : vector<4x16x16xbf16>, vector<4x16x32xbf16>, vector<4x16x32xf32> -> vector<4x16x32xf32>
    "tpu.trace_stop"() : () -> ()
    %142 = vector.shape_cast %141 : vector<4x16x32xf32> to vector<64x32xf32>
    %143 = vector.extract_strided_slice %71 {offsets = [0, 96], sizes = [64, 32], strides = [1, 1]} : vector<64x128xbf16> to vector<64x32xbf16>
    %144 = vector.shape_cast %143 : vector<64x32xbf16> to vector<4x16x32xbf16>
    %145 = vector.extract_strided_slice %81 {offsets = [0, 96], sizes = [64, 32], strides = [1, 1]} : vector<64x128xbf16> to vector<64x32xbf16>
    %146 = vector.shape_cast %145 : vector<64x32xbf16> to vector<4x16x32xbf16>
    %147 = vector.extract_strided_slice %82 {offsets = [0, 96], sizes = [64, 32], strides = [1, 1]} : vector<64x128xbf16> to vector<64x32xbf16>
    %148 = vector.shape_cast %147 : vector<64x32xbf16> to vector<4x16x32xbf16>
    "tpu.trace_start"() <{level = 10 : i32, message = "bld,bmd->blm"}> : () -> ()
    %cst_37 = arith.constant dense<0.000000e+00> : vector<4x16x16xf32>
    %149 = tpu.matmul %144, %146, %cst_37 {dimension_numbers = #tpu.dot_dimension_numbers<[2], [2], [1], [1], [0, 0, 0, 1, 1, 1], [0], [0]>} : vector<4x16x32xbf16>, vector<4x16x32xbf16>, vector<4x16x16xf32> -> vector<4x16x16xf32>
    "tpu.trace_stop"() : () -> ()
    %cst_38 = arith.constant dense<0xFF800000> : vector<4x16xf32>
    %150 = vector.multi_reduction <maximumf>, %149, %cst_38 [2] : vector<4x16x16xf32> to vector<4x16xf32>
    %151 = vector.shape_cast %150 : vector<4x16xf32> to vector<4x16x1xf32>
    %152 = vector.broadcast %151 : vector<4x16x1xf32> to vector<4x16x16xf32>
    %153 = arith.subf %149, %152 : vector<4x16x16xf32>
    %154 = math.exp %153 : vector<4x16x16xf32>
    %cst_39 = arith.constant dense<0.000000e+00> : vector<4x16xf32>
    %155 = vector.multi_reduction <add>, %154, %cst_39 [2] : vector<4x16x16xf32> to vector<4x16xf32>
    %156 = vector.shape_cast %155 : vector<4x16xf32> to vector<4x16x1xf32>
    %157 = tpu.reciprocal %156 {approx = true} : vector<4x16x1xf32> -> vector<4x16x1xf32>
    %158 = vector.broadcast %157 : vector<4x16x1xf32> to vector<4x16x16xf32>
    %159 = arith.mulf %154, %158 : vector<4x16x16xf32>
    %160 = arith.truncf %159 : vector<4x16x16xf32> to vector<4x16x16xbf16>
    "tpu.trace_start"() <{level = 10 : i32, message = "blm,bmd->bld"}> : () -> ()
    %cst_40 = arith.constant dense<0.000000e+00> : vector<4x16x32xf32>
    %161 = tpu.matmul %160, %148, %cst_40 {dimension_numbers = #tpu.dot_dimension_numbers<[2], [1], [1], [2], [0, 0, 0, 1, 1, 2], [0], [0]>} : vector<4x16x16xbf16>, vector<4x16x32xbf16>, vector<4x16x32xf32> -> vector<4x16x32xf32>
    "tpu.trace_stop"() : () -> ()
    %162 = vector.shape_cast %161 : vector<4x16x32xf32> to vector<64x32xf32>
    %163 = tpu.concatenate %102, %122, %142, %162 in 1 : vector<64x32xf32>, vector<64x32xf32>, vector<64x32xf32>, vector<64x32xf32> -> vector<64x128xf32>
    %164 = arith.truncf %163 : vector<64x128xf32> to vector<64x128xbf16>
    %cst_41 = arith.constant dense<0.000000e+00> : vector<64x128xf32>
    %165 = tpu.matmul %164, %65, %cst_41 {dimension_numbers = #tpu.dot_dimension_numbers<[1], [0], [0], [1], [0, 0, 1, 1], [], []>} : vector<64x128xbf16>, vector<128x128xbf16>, vector<64x128xf32> -> vector<64x128xf32>
    %166 = vector.broadcast %16 : vector<1x128xf32> to vector<64x128xf32>
    %167 = arith.addf %165, %166 : vector<64x128xf32>
    %168 = arith.addf %3, %167 : vector<64x128xf32>
    %cst_42 = arith.constant dense<0.000000e+00> : vector<64xf32>
    %169 = vector.multi_reduction <add>, %168, %cst_42 [1] : vector<64x128xf32> to vector<64xf32>
    %170 = vector.shape_cast %169 : vector<64xf32> to vector<64x1xf32>
    %cst_43 = arith.constant 1.280000e+02 : f32
    %171 = vector.broadcast %cst_43 : f32 to vector<64x1xf32>
    %172 = arith.divf %170, %171 : vector<64x1xf32>
    %173 = vector.broadcast %172 : vector<64x1xf32> to vector<64x128xf32>
    %174 = arith.subf %168, %173 : vector<64x128xf32>
    %175 = arith.mulf %174, %174 : vector<64x128xf32>
    %cst_44 = arith.constant dense<0.000000e+00> : vector<64xf32>
    %176 = vector.multi_reduction <add>, %175, %cst_44 [1] : vector<64x128xf32> to vector<64xf32>
    %177 = vector.shape_cast %176 : vector<64xf32> to vector<64x1xf32>
    %cst_45 = arith.constant 1.280000e+02 : f32
    %178 = vector.broadcast %cst_45 : f32 to vector<64x1xf32>
    %179 = arith.divf %177, %178 : vector<64x1xf32>
    %cst_46 = arith.constant 9.99999974E-6 : f32
    %180 = vector.broadcast %cst_46 : f32 to vector<64x1xf32>
    %181 = arith.addf %179, %180 : vector<64x1xf32>
    %182 = math.rsqrt %181 : vector<64x1xf32>
    %183 = vector.broadcast %182 : vector<64x1xf32> to vector<64x128xf32>
    %184 = arith.mulf %174, %183 : vector<64x128xf32>
    %185 = vector.broadcast %11 : vector<1x128xf32> to vector<64x128xf32>
    %186 = arith.mulf %184, %185 : vector<64x128xf32>
    %187 = vector.broadcast %12 : vector<1x128xf32> to vector<64x128xf32>
    %188 = arith.addf %186, %187 : vector<64x128xf32>
    %189 = arith.truncf %188 : vector<64x128xf32> to vector<64x128xbf16>
    %cst_47 = arith.constant dense<0.000000e+00> : vector<64x512xf32>
    %190 = tpu.matmul %189, %67, %cst_47 {dimension_numbers = #tpu.dot_dimension_numbers<[1], [0], [0], [1], [0, 0, 1, 1], [], []>} : vector<64x128xbf16>, vector<128x512xbf16>, vector<64x512xf32> -> vector<64x512xf32>
    %c0_48 = arith.constant 0 : index
    %c0_49 = arith.constant 0 : index
    %c0_50 = arith.constant 0 : index
    %191 = vector.load %arg3[%c0_48, %c0_49, %c0_50] : memref<1x1x512xf32, #tpu.memory_space<vmem>>, vector<1x1x512xf32>
    %192 = vector.shape_cast %191 : vector<1x1x512xf32> to vector<1x512xf32>
    %193 = vector.broadcast %192 : vector<1x512xf32> to vector<64x512xf32>
    %194 = arith.addf %190, %193 : vector<64x512xf32>
    %cst_51 = arith.constant 0.000000e+00 : f32
    %195 = vector.broadcast %cst_51 : f32 to vector<64x512xf32>
    %196 = arith.maximumf %194, %195 : vector<64x512xf32>
    %197 = arith.truncf %196 : vector<64x512xf32> to vector<64x512xbf16>
    %c0_52 = arith.constant 0 : index
    %c0_53 = arith.constant 0 : index
    %c0_54 = arith.constant 0 : index
    %198 = vector.load %arg5[%c0_52, %c0_53, %c0_54] : memref<1x512x128xbf16, #tpu.memory_space<vmem>>, vector<1x512x128xbf16>
    %199 = vector.shape_cast %198 : vector<1x512x128xbf16> to vector<512x128xbf16>
    %cst_55 = arith.constant dense<0.000000e+00> : vector<64x128xf32>
    %200 = tpu.matmul %197, %199, %cst_55 {dimension_numbers = #tpu.dot_dimension_numbers<[1], [0], [0], [1], [0, 0, 1, 1], [], []>} : vector<64x512xbf16>, vector<512x128xbf16>, vector<64x128xf32> -> vector<64x128xf32>
    %201 = vector.broadcast %17 : vector<1x128xf32> to vector<64x128xf32>
    %202 = arith.addf %200, %201 : vector<64x128xf32>
    %203 = arith.addf %168, %202 : vector<64x128xf32>
    %c0_56 = arith.constant 0 : index
    %c0_57 = arith.constant 0 : index
    %204 = vector.load %arg7[%c0_56, %c0_57] : memref<64x128xf32, #tpu.memory_space<vmem>>, vector<64x128xf32>
    tpu.vector_store %arg7[%c0_56, %c0_57], %203 {strides = array<i32>} : memref<64x128xf32, #tpu.memory_space<vmem>>, vector<64x128xf32>,
    %c0_58 = arith.constant 0 : index
    %c0_59 = arith.constant 0 : index
    %205 = vector.load %arg6[%c0_58, %c0_59] : memref<64x128xf32, #tpu.memory_space<vmem>>, vector<64x128xf32>
    tpu.vector_store %arg6[%c0_58, %c0_59], %203 {strides = array<i32>} : memref<64x128xf32, #tpu.memory_space<vmem>>, vector<64x128xf32>,
    return
  }
  func.func @transform_0(%arg0: i32) -> (i32, i32) {
    %c0_i32 = arith.constant 0 : i32
    %c0_i32_0 = arith.constant 0 : i32
    %c0_i32_1 = arith.constant 0 : i32
    return %c0_i32, %c0_i32_0 : i32, i32
  }
  func.func @transform_1(%arg0: i32) -> (i32, i32, i32) {
    %c0_i32 = arith.constant 0 : i32
    %c0_i32_0 = arith.constant 0 : i32
    %c0_i32_1 = arith.constant 0 : i32
    return %arg0, %c0_i32, %c0_i32_0 : i32, i32, i32
  }
  func.func @transform_2(%arg0: i32) -> (i32, i32, i32) {
    %c0_i32 = arith.constant 0 : i32
    %c0_i32_0 = arith.constant 0 : i32
    %c0_i32_1 = arith.constant 0 : i32
    return %arg0, %c0_i32, %c0_i32_0 : i32, i32, i32
  }
  func.func @transform_3(%arg0: i32) -> (i32, i32, i32) {
    %c0_i32 = arith.constant 0 : i32
    %c0_i32_0 = arith.constant 0 : i32
    %c0_i32_1 = arith.constant 0 : i32
    return %arg0, %c0_i32, %c0_i32_0 : i32, i32, i32
  }
  func.func @transform_4(%arg0: i32) -> (i32, i32, i32) {
    %c0_i32 = arith.constant 0 : i32
    %c0_i32_0 = arith.constant 0 : i32
    %c0_i32_1 = arith.constant 0 : i32
    return %arg0, %c0_i32, %c0_i32_0 : i32, i32, i32
  }
  func.func @transform_5(%arg0: i32) -> (i32, i32) {
    %c0_i32 = arith.constant 0 : i32
    %c0_i32_0 = arith.constant 0 : i32
    %c0_i32_1 = arith.constant 0 : i32
    return %c0_i32, %c0_i32_0 : i32, i32
  }
}

</mosaic_0001>

<bundles_post_ra>
// kernel: sub.14
= control target key start
LH: loop header
LB: loop body
LE: loop exit
PB: predicated region body
PF: predicated region fallthrough
CT: control target
= control target key end

     0   :  { %s56_s0 = inlined_call_operand.vmem [shape: f32[2,1,128], index: 0, kind: input, shape index: {}]   ;;  %s57_s1 = inlined_call_operand.vmem [shape: f32[2,1,128], index: 1, kind: input, shape index: {}]   ;;  %s58_s2 = inlined_call_operand.vmem [shape: f32[2,1,128], index: 2, kind: output, shape index: {}]  }
   0x1   :  { %v3_v0 = vld [vmem:[%s56_s0] sm:$0x1]  ;;  %v20_v2 = vld [vmem:[%s56_s0 + $0x1] sm:$0x1] }
   0x2   :  { %v4_v1 = vld [vmem:[%s57_s1] sm:$0x1]  ;;  %v21_v4 = vld [vmem:[%s57_s1 + $0x1] sm:$0x1] }
   0x3   :  { %v7_v3 = vsub.f32 %v3_v0, %v4_v1  ;;  %v16_v5 = vsub.f32 %v20_v2, %v21_v4 }
   0x5   :  { %9 = vst [vmem:[%s58_s2] sm:$0x1] %v7_v3  ;;  %22 = vst [vmem:[%s58_s2 + $0x1] sm:$0x1] %v16_v5 }

// kernel: proposed_sam_forward.1
= control target key start
LH: loop header
LB: loop body
LE: loop exit
PB: predicated region body
PF: predicated region fallthrough
CT: control target
= control target key end

     0   :  { %s4809_s18 = smov 0   ;;  %s5837_s0 = inlined_call_operand.vmem [shape: f32[64,128], index: 0, kind: input, shape index: {}]   ;;  %s5838_s1 = inlined_call_operand.vmem [shape: f32[2,9,128], index: 1, kind: input, shape index: {}]   ;;  %s5839_s2 = inlined_call_operand.vmem [shape: f32[2,1,512], index: 2, kind: input, shape index: {}]   ;;  %s5840_s3 = inlined_call_operand.vmem [shape: bf16[2,128,1024], index: 3, kind: input, shape index: {}]   ;;  %s5841_s4 = inlined_call_operand.vmem [shape: bf16[2,512,128], index: 4, kind: input, shape index: {}]   ;;  %s5842_s5 = inlined_call_operand.vmem [shape: f32[64,128], index: 5, kind: output, shape index: {}]  }
   0x1 LB: > { %s3912_s19 = sadd.s32 4294967295, %s4771_s18   ;;  %p3915_p0 = scmp.ge.s32.totalorder %s4771_s18, 1  ;;  %s4771_s18 = sphi %s4809_s18, %s15_s18  }
   0x2   : > { %p211_p1 = scmp.lt.s32.totalorder %s4771_s18, 3 }
   0x4   : > { %p212_p2 = pnand %p3915_p0, %p211_p1 }
   0x5   : > { %p248_p3 = scmp.lt.s32.totalorder (!%p212_p2), %s3912_s19, 1  ;;  %p3923_p4 = scmp.ne.s32.totalorder (!%p212_p2), %s3912_s19, 0 }
   0x6   : > { %215 = sbr.rel (%p212_p2) target bundleno = 4261 (0x10a5), region = 40 }
   0xd   : > { %s249_s20 = scalar_select %p248_p3, %s3912_s19, 1 }
   0xe   : > { %271 = sbr.rel (%p3923_p4) target bundleno = 21 (0x15), region = 44  ;;  %v272_v0 = vld [vmem:[%s5837_s0] sm:$0xff] (!%p3923_p4)  ;;  %v273_v1 = vld [vmem:[%s5837_s0 + $0x8] sm:$0xff] (!%p3923_p4)  ;;  %v274_v2 = vld [vmem:[%s5837_s0 + $0x10] sm:$0xff] (!%p3923_p4) }
   0xf   : > { %s4055_s21 = sshll.u32 %s249_s20, 4  ;;  %s3918_s22 = sshll.u32 %s249_s20, 2  ;;  %280 = vst [vmem:[#allocation2] sm:$0xff] (!%p3923_p4), %v272_v0  ;;  %281 = vst [vmem:[#allocation2 + $0x8] sm:$0xff] (!%p3923_p4), %v273_v1  ;;  %v275_v3 = vld [vmem:[%s5837_s0 + $0x18] sm:$0xff] (!%p3923_p4)  ;;  %v276_v4 = vld [vmem:[%s5837_s0 + $0x20] sm:$0xff] (!%p3923_p4) }
  0x10   : > { %s4820_s25 = scalar_lea.vmem %s5838_s1, %s4055_s21  ;;  %s4825_s28 = scalar_lea.vmem %s5839_s2, %s3918_s22  ;;  %282 = vst [vmem:[#allocation2 + $0x10] sm:$0xff] (!%p3923_p4), %v274_v2  ;;  %v277_v5 = vld [vmem:[%s5837_s0 + $0x28] sm:$0xff] (!%p3923_p4)  ;;  %283 = vst [vmem:[#allocation2 + $0x18] sm:$0xff] (!%p3923_p4), %v275_v3  ;;  %v278_v6 = vld [vmem:[%s5837_s0 + $0x30] sm:$0xff] (!%p3923_p4) }
  0x11   : > { %s4056_s29 = sshll.u32 %s249_s20, 9  ;;  %s4057_s30 = sshll.u32 %s249_s20, 8  ;;  %284 = vst [vmem:[#allocation2 + $0x20] sm:$0xff] (!%p3923_p4), %v276_v4  ;;  %285 = vst [vmem:[#allocation2 + $0x28] sm:$0xff] (!%p3923_p4), %v277_v5  ;;  %v279_v7 = vld [vmem:[%s5837_s0 + $0x38] sm:$0xff] (!%p3923_p4) }
  0x12   : > { %s4830_s8 = scalar_lea.vmem %s5840_s3, %s4056_s29  ;;  %s4835_s11 = scalar_lea.vmem %s5841_s4, %s4057_s30  ;;  %286 = vst [vmem:[#allocation2 + $0x30] sm:$0xff] (!%p3923_p4), %v278_v6  ;;  %287 = vst [vmem:[#allocation2 + $0x38] sm:$0xff] (!%p3923_p4), %v279_v7 }
  0x15 PF: > { %v489_v20 = vld [vmem:[%s4830_s8 + $0x4] sm:$0xff]  ;;  %vm4775_vm0 = vmmov 0   ;;  %vm827_vm1 = vcmask 261120   ;;  %vm1010_vm2 = vcmask 130048   ;;  %s4776_s6 = smov 96   ;;  %s4777_s7 = smov 64  }
  0x16   : > { %v288_v8 = vld [vmem:[#allocation2] sm:$0xff]  ;;  %v289_v13 = vld [vmem:[#allocation2 + $0x8] sm:$0xff]  ;;  %s4778_s9 = smov 32   ;;  %vm2795_vm3 = vcmask 523264   ;;  %vm2804_vm4 = vcmask 785408  }
  0x17   : > { %v4863_v10 = vld [vmem:[#allocation2 + $0x10] sm:$0xff]  ;;  %v291_v16 = vld [vmem:[#allocation2 + $0x18] sm:$0xff]  ;;  %v490_v21 = vld [vmem:[%s4830_s8 + $0x24] sm:$0xff] }
  0x18   : > { %v4861_v9 = vld [vmem:[#allocation2 + $0x20] sm:$0xff]  ;;  %v4868_v14 = vld [vmem:[#allocation2 + $0x28] sm:$0xff]  ;;  %v3933_v23 = vcombine.high %v489_v20, %v490_v21  ;;  %v3932_v24 = vcombine.low %v489_v20, %v490_v21 }
  0x19   : > { %v296_v11 = vsub.f32 %v4861_v9, %v288_v8  ;;  %v4866_v12 = vld [vmem:[#allocation2 + $0x30] sm:$0xff]  ;;  %v4872_v17 = vld [vmem:[#allocation2 + $0x38] sm:$0xff]  ;;  %v297_v18 = vsub.f32 %v4868_v14, %v289_v13  ;;  %v491_v22 = vld [vmem:[%s4830_s8 + $0x44] sm:$0xff] }
  0x1a   : > { %v298_v15 = vsub.f32 %v4866_v12, %v4863_v10  ;;  %v299_v19 = vsub.f32 %v4872_v17, %v291_v16  ;;  %v492_v25 = vld [vmem:[%s4830_s8 + $0x64] sm:$0xff]  ;;  %754 = vmatprep.subr.bf16.mxu1 %v3933_v23  ;;  %v475_v23 = vld [vmem:[%s4830_s8 + $0x40] sm:$0xf] }
  0x1b   : > { %419 = vadd.xlane.f32.xlu0 %v296_v11  ;;  %v3935_v26 = vcombine.high %v491_v22, %v492_v25  ;;  %755 = vmatpush1.bf16.msra.mxu1 %v3932_v24  ;;  %v3934_v0 = vcombine.low %v491_v22, %v492_v25  ;;  %v493_v6 = vld [vmem:[%s4830_s8 + $0x84] sm:$0xff]  ;;  %v476_v24 = vld [vmem:[%s4830_s8 + $0x60] sm:$0xf] }
  0x1c   : > { %423 = vadd.xlane.f32.xlu1 %v298_v15  ;;  %v494_v7 = vld [vmem:[%s4830_s8 + $0xa4] sm:$0xff] }
  0x1d   : > { %756 = vmatprep.subr.bf16.mxu1 %v3935_v26  ;;  %v496_v20 = vld [vmem:[%s4830_s8 + $0xe4] sm:$0xff]  ;;  %v3925_v26 = vcombine.low %v475_v23, %v476_v24 }
  0x1e   : > { %v497_v25 = vld [vmem:[%s4830_s8 + $0x104] sm:$0xff] }
  0x1f   : > { %421 = vadd.xlane.f32.xlu0 %v297_v18  ;;  %757 = vmatpush1.bf16.msra.mxu1 %v3934_v0  ;;  %v485_v0 = vld [vmem:[%s4830_s8 + $0x180] sm:$0xf] }
  0x20   : > { %425 = vadd.xlane.f32.xlu1 %v299_v19 }
  0x23   : > { %302 = vadd.xlane.f32.xlu0 %v288_v8 }
  0x24   : > { %304 = vadd.xlane.f32.xlu1 %v289_v13 }
  0x27   : > { %306 = vadd.xlane.f32.xlu0 %v4863_v10 }
  0x28   : > { %308 = vadd.xlane.f32.xlu1 %v291_v16 }
  0x2b   : > { %310 = vadd.xlane.f32.xlu0 %v4861_v9 }
  0x2c   : > { %312 = vadd.xlane.f32.xlu1 %v4868_v14 }
  0x2f   : > { %314 = vadd.xlane.f32.xlu0 %v4866_v12 }
  0x30   : > { %316 = vadd.xlane.f32.xlu1 %v4872_v17 }
  0xa8   : > { %v420_v27 = vpop.xlane.xlu0 %419 }
  0xa9   : > { %v427_v28 = vmul.f32 0.0078125, %v420_v27  ;;  %v424_v29 = vpop.xlane.xlu1 %423  ;;  %v498_v27 = vld [vmem:[%s4830_s8 + $0x124] sm:$0xff] }
  0xaa   : > { %v429_v30 = vmul.f32 0.0078125, %v424_v29  ;;  %v3940_v29 = vcombine.low %v497_v25, %v498_v27 }
  0xab   : > { %v4885_v31 = vsub.f32 %v296_v11, %v427_v28  ;;  %v3941_v28 = vcombine.high %v497_v25, %v498_v27 }
  0xac   : > { %v422_v32 = vpop.xlane.xlu0 %421  ;;  %v4887_v33 = vsub.f32 %v298_v15, %v429_v30  ;;  %v477_v30 = vld [vmem:[%s4830_s8 + $0x80] sm:$0xf] }
  0xad   : > { %v428_v34 = vmul.f32 0.0078125, %v422_v32  ;;  %v435_v35 = vmul.f32 %v4885_v31, %v4885_v31  ;;  %v426_v36 = vpop.xlane.xlu1 %425  ;;  %v478_v32 = vld [vmem:[%s4830_s8 + $0xa0] sm:$0xf] }
  0xae   : > { %v430_v37 = vmul.f32 0.0078125, %v426_v36  ;;  %v437_v38 = vmul.f32 %v4887_v33, %v4887_v33  ;;  %v500_v36 = vld [vmem:[%s4830_s8 + $0x164] sm:$0xff] }
  0xaf   : > { %439 = vadd.xlane.f32.xlu0 %v435_v35  ;;  %v4893_v39 = vsub.f32 %v297_v18, %v428_v34  ;;  %v474_v18 = vld [vmem:[%s4830_s8 + $0x20] sm:$0xf]  ;;  %v499_v34 = vld [vmem:[%s4830_s8 + $0x144] sm:$0xff]  ;;  %v3926_v35 = vcombine.low %v477_v30, %v478_v32 }
  0xb0   : > { %v303_v40 = vpop.xlane.xlu0 %302  ;;  %v4895_v41 = vsub.f32 %v299_v19, %v430_v37  ;;  %v495_v19 = vld [vmem:[%s4830_s8 + $0xc4] sm:$0xff]  ;;  %v3943_v37 = vcombine.high %v499_v34, %v500_v36 }
  0xb1   : > { %v319_v42 = vmul.f32 0.0078125, %v303_v40  ;;  %v436_v43 = vmul.f32 %v4893_v39, %v4893_v39  ;;  %v305_v44 = vpop.xlane.xlu1 %304  ;;  %v3939_v21 = vcombine.high %v495_v19, %v496_v20  ;;  %v3938_v22 = vcombine.low %v495_v19, %v496_v20  ;;  %v479_v40 = vld [vmem:[%s4830_s8 + $0xc0] sm:$0xf] }
  0xb2   : > { %v320_v45 = vmul.f32 0.0078125, %v305_v44  ;;  %v438_v46 = vmul.f32 %v4895_v41, %v4895_v41  ;;  %v4971_v32 = vld [vmem:[%s4820_s25] sm:$0xff] }
  0xb3   : > { %443 = vadd.xlane.f32.xlu0 %v437_v38  ;;  %441 = vadd.xlane.f32.xlu1 %v436_v43  ;;  %v4901_v47 = vsub.f32 %v288_v8, %v319_v42  ;;  %v3942_v38 = vcombine.low %v499_v34, %v500_v36  ;;  %v480_v42 = vld [vmem:[%s4830_s8 + $0xe0] sm:$0xf]  ;;  %v501_v43 = vld [vmem:[%s4830_s8 + $0x184] sm:$0xff] }
  0xb4   : > { %v307_v48 = vpop.xlane.xlu0 %306  ;;  %v4903_v49 = vsub.f32 %v289_v13, %v320_v45  ;;  %v3927_v44 = vcombine.low %v479_v40, %v480_v42  ;;  %v502_v45 = vld [vmem:[%s4830_s8 + $0x1a4] sm:$0xff] }
  0xb5   : > { %v321_v50 = vmul.f32 0.0078125, %v307_v48  ;;  %v335_v51 = vmul.f32 %v4901_v47, %v4901_v47  ;;  %v309_v52 = vpop.xlane.xlu1 %308  ;;  %v3944_v48 = vcombine.low %v501_v43, %v502_v45 }
  0xb6   : > { %v322_v53 = vmul.f32 0.0078125, %v309_v52  ;;  %v336_v54 = vmul.f32 %v4903_v49, %v4903_v49  ;;  %v503_v52 = vld [vmem:[%s4830_s8 + $0x1c4] sm:$0xff] }
  0xb7   : > { %445 = vadd.xlane.f32.xlu1 %v438_v46  ;;  %343 = vadd.xlane.f32.xlu0 %v335_v51  ;;  %v4910_v55 = vsub.f32 %v4863_v10, %v321_v50  ;;  %v3937_v10 = vcombine.high %v493_v6, %v494_v7  ;;  %v3945_v46 = vcombine.high %v501_v43, %v502_v45  ;;  %v481_v50 = vld [vmem:[%s4830_s8 + $0x100] sm:$0xf] }
  0xb8   : > { %v311_v56 = vpop.xlane.xlu0 %310  ;;  %v4912_v57 = vsub.f32 %v291_v16, %v322_v53  ;;  %v473_v16 = vld [vmem:[%s4830_s8] sm:$0xf] }
  0xb9   : > { %v323_v58 = vmul.f32 0.0078125, %v311_v56  ;;  %v337_v59 = vmul.f32 %v4910_v55, %v4910_v55  ;;  %v313_v60 = vpop.xlane.xlu1 %312  ;;  %758 = vmatprep.subr.bf16.mxu1 %v3937_v10  ;;  %v482_v51 = vld [vmem:[%s4830_s8 + $0x120] sm:$0xf] }
  0xba   : > { %v324_v61 = vmul.f32 0.0078125, %v313_v60  ;;  %v338_v62 = vmul.f32 %v4912_v57, %v4912_v57  ;;  %v3928_v53 = vcombine.low %v481_v50, %v482_v51  ;;  %v484_v60 = vld [vmem:[%s4830_s8 + $0x160] sm:$0xf] }
  0xbb   : > { %345 = vadd.xlane.f32.xlu1 %v336_v54  ;;  %347 = vadd.xlane.f32.xlu0 %v337_v59  ;;  %v4919_v63 = vsub.f32 %v4861_v9, %v323_v58  ;;  %v504_v54 = vld [vmem:[%s4830_s8 + $0x1e4] sm:$0xff]  ;;  %v483_v59 = vld [vmem:[%s4830_s8 + $0x140] sm:$0xf] }
  0xbc   : > { %v315_v1 = vpop.xlane.xlu0 %314  ;;  %v4922_v2 = vsub.f32 %v4868_v14, %v324_v61  ;;  %v3936_v14 = vcombine.low %v493_v6, %v494_v7  ;;  %v3947_v56 = vcombine.high %v503_v52, %v504_v54  ;;  %v3946_v58 = vcombine.low %v503_v52, %v504_v54 }
  0xbd   : > { %v325_v3 = vmul.f32 0.0078125, %v315_v1  ;;  %v339_v4 = vmul.f32 %v4919_v63, %v4919_v63  ;;  %v317_v5 = vpop.xlane.xlu1 %316  ;;  %v3929_v61 = vcombine.low %v483_v59, %v484_v60  ;;  %v486_v1 = vld [vmem:[%s4830_s8 + $0x1a0] sm:$0xf] }
  0xbe   : > { %v326_v8 = vmul.f32 0.0078125, %v317_v5  ;;  %v340_v9 = vmul.f32 %v4922_v2, %v4922_v2  ;;  %759 = vmatpush1.bf16.msra.mxu1 %v3936_v14  ;;  %v488_v5 = vld [vmem:[%s4830_s8 + $0x1e0] sm:$0xf] }
  0xbf   : > { %349 = vadd.xlane.f32.xlu1 %v338_v62  ;;  %351 = vadd.xlane.f32.xlu0 %v339_v4  ;;  %v4931_v11 = vsub.f32 %v4866_v12, %v325_v3  ;;  %v4773_v62 = vmov 0   ;;  %v487_v3 = vld [vmem:[%s4830_s8 + $0x1c0] sm:$0xf]  ;;  %v3930_v4 = vcombine.low %v485_v0, %v486_v1 }
  0xc0   : > { %v4934_v13 = vsub.f32 %v4872_v17, %v326_v8  ;;  %v3924_v17 = vcombine.low %v473_v16, %v474_v18  ;;  %760 = vmatprep.subr.bf16.mxu1 %v3939_v21  ;;  %786 = vmatprep.mubr.bf16.mxu1 %v4773_v62  ;;  %v3931_v6 = vcombine.low %v487_v3, %v488_v5 }
  0xc1   : > { %v341_v15 = vmul.f32 %v4931_v11, %v4931_v11 }
  0xc2   : > { %v342_v12 = vmul.f32 %v4934_v13, %v4934_v13  ;;  %4226 = vmatprep.subr.bf16.mxu0 %v3924_v17  ;;  %761 = vmatpush1.bf16.msra.mxu1 %v3938_v22 }
  0xc3   : > { %353 = vadd.xlane.f32.xlu1 %v340_v9  ;;  %355 = vadd.xlane.f32.xlu0 %v341_v15  ;;  %v391_v15 = vlaneseq }
  0xc4   : > { %4227 = vmatpush3.bf16.msra.mxu0 %v3924_v17  ;;  %762 = vmatprep.subr.bf16.mxu1 %v3941_v28 }
  0xc5   : > { %4228 = vmatprep.subr.bf16.mxu0 %v3925_v26  ;;  %v4967_v21 = vshrl.u32 %v391_v15, 7 }
  0xc6   : > { %763 = vmatpush1.bf16.msra.mxu1 %v3940_v29 }
  0xc7   : > { %357 = vadd.xlane.f32.xlu1 %v342_v12  ;;  %764 = vmatprep.subr.bf16.mxu1 %v3943_v37  ;;  %v393_v28 = vsub.s32 0, %v4967_v21  ;;  %v5843_v42 = vsub.s32 1, %v4967_v21 }
  0xc8   : > { %4229 = vmatpush3.bf16.msra.mxu0 %v3925_v26 }
  0xc9   : > { %4230 = vmatprep.subr.bf16.mxu0 %v3926_v35  ;;  %v4976_v40 = vrot.slane %v4971_v32, %v393_v28 }
  0xca   : > { %765 = vmatpush1.bf16.msra.mxu1 %v3942_v38 }
  0xcb   : > { %766 = vmatprep.subr.bf16.mxu1 %v3945_v46 }
  0xcc   : > { %4231 = vmatpush3.bf16.msra.mxu0 %v3926_v35 }
  0xcd   : > { %4232 = vmatprep.subr.bf16.mxu0 %v3927_v44 }
  0xce   : > { %767 = vmatpush1.bf16.msra.mxu1 %v3944_v48 }
  0xcf   : > { %768 = vmatprep.subr.bf16.mxu1 %v3947_v56 }
  0xd0   : > { %4233 = vmatpush3.bf16.msra.mxu0 %v3927_v44 }
  0xd1   : > { %4234 = vmatprep.subr.bf16.mxu0 %v3928_v53 }
  0xd2   : > { %769 = vmatpush1.bf16.msra.mxu1 %v3946_v58 }
  0xd4   : > { %4235 = vmatpush3.bf16.msra.mxu0 %v3928_v53  ;;  %v4983_v53 = vrot.slane %v4971_v32, %v5843_v42 }
  0xd5   : > { %4236 = vmatprep.subr.bf16.mxu0 %v3929_v61 }
  0xd8   : > { %4237 = vmatpush3.bf16.msra.mxu0 %v3929_v61 }
  0xd9   : > { %4238 = vmatprep.subr.bf16.mxu0 %v3930_v4 }
  0xdc   : > { %4239 = vmatpush3.bf16.msra.mxu0 %v3930_v4 }
  0xdd   : > { %4240 = vmatprep.subr.bf16.mxu0 %v3931_v6 }
  0xe0   : > { %4241 = vmatpush3.bf16.msra.mxu0 %v3931_v6 }
 0x13c   : > { %v440_v7 = vpop.xlane.xlu0 %439 }
 0x13d   : > { %v447_v8 = vmul.f32 0.0078125, %v440_v7 }
 0x13f   : > { %v451_v10 = vadd.f32 1e-05, %v447_v8 }
 0x140   : > { %v442_v9 = vpop.xlane.xlu1 %441  ;;  %v444_v14 = vpop.xlane.xlu0 %443 }
 0x141   : > { %4588 = vrsqrt.f32 %v451_v10  ;;  %v448_v16 = vmul.f32 0.0078125, %v442_v9  ;;  %v449_v18 = vmul.f32 0.0078125, %v444_v14 }
 0x143   : > { %v452_v19 = vadd.f32 1e-05, %v448_v16  ;;  %v453_v12 = vadd.f32 1e-05, %v449_v18 }
 0x144   : > { %v446_v17 = vpop.xlane.xlu1 %445  ;;  %v344_v20 = vpop.xlane.xlu0 %343 }
 0x145   : > { %4590 = vrsqrt.f32 %v452_v19  ;;  %v450_v22 = vmul.f32 0.0078125, %v446_v17  ;;  %v359_v23 = vmul.f32 0.0078125, %v344_v20 }
 0x146   : > { %4592 = vrsqrt.f32 %v453_v12 }
 0x147   : > { %v454_v24 = vadd.f32 1e-05, %v450_v22  ;;  %v367_v25 = vadd.f32 1e-05, %v359_v23 }
 0x148   : > { %v346_v26 = vpop.xlane.xlu1 %345  ;;  %v348_v27 = vpop.xlane.xlu0 %347 }
 0x149   : > { %4594 = vrsqrt.f32 %v454_v24  ;;  %v360_v29 = vmul.f32 0.0078125, %v346_v26  ;;  %v361_v30 = vmul.f32 0.0078125, %v348_v27 }
 0x14a   : > { %4596 = vrsqrt.f32 %v367_v25 }
 0x14b   : > { %v4589_v34 = vpop.eup %4588  ;;  %v368_v35 = vadd.f32 1e-05, %v360_v29  ;;  %v369_v36 = vadd.f32 1e-05, %v361_v30 }
 0x14c   : > { %v350_v37 = vpop.xlane.xlu1 %349  ;;  %v352_v38 = vpop.xlane.xlu0 %351  ;;  %v459_v43 = vmul.f32 %v4589_v34, %v4885_v31 }
 0x14d   : > { %4598 = vrsqrt.f32 %v368_v35  ;;  %v362_v44 = vmul.f32 0.0078125, %v350_v37  ;;  %v363_v45 = vmul.f32 0.0078125, %v352_v38 }
 0x14e   : > { %4600 = vrsqrt.f32 %v369_v36  ;;  %v463_v56 = vmul.f32 %v459_v43, %v4976_v40 }
 0x14f   : > { %v4591_v46 = vpop.eup %4590  ;;  %v370_v48 = vadd.f32 1e-05, %v362_v44  ;;  %v371_v50 = vadd.f32 1e-05, %v363_v45 }
 0x150   : > { %v354_v51 = vpop.xlane.xlu1 %353  ;;  %v356_v52 = vpop.xlane.xlu0 %355  ;;  %v460_v54 = vmul.f32 %v4591_v46, %v4893_v39  ;;  %v467_v5 = vadd.f32 %v463_v56, %v4983_v53 }
 0x151   : > { %v4593_v58 = vpop.eup %4592  ;;  %4602 = vrsqrt.f32 %v370_v48  ;;  %v364_v31 = vmul.f32 0.0078125, %v354_v51  ;;  %v365_v59 = vmul.f32 0.0078125, %v356_v52 }
 0x152   : > { %4604 = vrsqrt.f32 %v371_v50  ;;  %v464_v60 = vmul.f32 %v460_v54, %v4976_v40  ;;  %v461_v39 = vmul.f32 %v4593_v58, %v4887_v33  ;;  %v4774_v58 = vmov 0.0  }
 0x153   : > { %v4595_v61 = vpop.eup %4594  ;;  %v372_v0 = vadd.f32 1e-05, %v364_v31  ;;  %v373_v1 = vadd.f32 1e-05, %v365_v59  ;;  %4250 = vmatprep.subr.bf16.mxu0 %v4774_v58  ;;  %4256 = vmatprep.subr.bf16.mxu1 %v4774_v58 }
 0x154   : > { %v4597_v3 = vpop.eup %4596  ;;  %v358_v4 = vpop.xlane.xlu1 %357  ;;  %v468_v6 = vadd.f32 %v464_v60, %v4983_v53  ;;  %v462_v7 = vmul.f32 %v4595_v61, %v4895_v41  ;;  %v465_v33 = vmul.f32 %v461_v39, %v4976_v40 }
 0x155   : > { %4606 = vrsqrt.f32 %v372_v0  ;;  %v366_v8 = vmul.f32 0.0078125, %v358_v4  ;;  %v383_v10 = vmul.f32 %v4597_v3, %v4901_v47 }
 0x156   : > { %4608 = vrsqrt.f32 %v373_v1  ;;  %v471_v9 = vpack.c.bf16 %v468_v6, %v467_v5  ;;  %v466_v14 = vmul.f32 %v462_v7, %v4976_v40  ;;  %v469_v25 = vadd.f32 %v465_v33, %v4983_v53 }
 0x157   : > { %v4599_v15 = vpop.eup %4598  ;;  %v374_v16 = vadd.f32 1e-05, %v366_v8  ;;  %v395_v12 = vmul.f32 %v4976_v40, %v383_v10  ;;  %v555_v8 = vsub.s32 4, %v4967_v21 }
 0x158   : > { %v4601_v18 = vpop.eup %4600  ;;  %787 = vmatmul.mubr.bf16.vlgmr.msra.gmra.mrb[0].mxu1 %v471_v9  ;;  %v384_v19 = vmul.f32 %v4599_v15, %v4903_v49  ;;  %v470_v17 = vadd.f32 %v466_v14, %v4983_v53 }
 0x159   : > { %4610 = vrsqrt.f32 %v374_v16  ;;  %796 = vmatprep.mubr.bf16.mxu1 %v4773_v62  ;;  %v385_v41 = vmul.f32 %v4601_v18, %v4910_v55  ;;  %v407_v24 = vadd.f32 %v4983_v53, %v395_v12 }
 0x15a   : > { %v396_v47 = vmul.f32 %v4976_v40, %v384_v19  ;;  %v472_v55 = vpack.c.bf16 %v470_v17, %v469_v25  ;;  %v556_v19 = vrot.slane %v4971_v32, %v555_v8 }
 0x15b   : > { %v4603_v20 = vpop.eup %4602  ;;  %v397_v22 = vmul.f32 %v4976_v40, %v385_v41 }
 0x15c   : > { %v4605_v23 = vpop.eup %4604  ;;  %v408_v49 = vadd.f32 %v4983_v53, %v396_v47  ;;  %v386_v26 = vmul.f32 %v4603_v20, %v4912_v57 }
 0x15d   : > { %v387_v27 = vmul.f32 %v4605_v23, %v4919_v63  ;;  %v409_v35 = vadd.f32 %v4983_v53, %v397_v22 }
 0x15e   : > { %v415_v29 = vpack.c.bf16 %v408_v49, %v407_v24  ;;  %v398_v30 = vmul.f32 %v4976_v40, %v386_v26 }
 0x15f   : > { %v4607_v34 = vpop.eup %4606  ;;  %v399_v43 = vmul.f32 %v4976_v40, %v387_v27 }
 0x160   : > { %v4609_v36 = vpop.eup %4608  ;;  %4242 = vmatprep.mubr.bf16.mxu0 %v415_v29  ;;  %797 = vmatmul.mubr.bf16.gmra.mrb[4].mxu1 %v472_v55  ;;  %v410_v37 = vadd.f32 %v4983_v53, %v398_v30  ;;  %v388_v38 = vmul.f32 %v4607_v34, %v4922_v2 }
 0x161   : > { %v389_v57 = vmul.f32 %v4609_v36, %v4931_v11  ;;  %v411_v46 = vadd.f32 %v4983_v53, %v399_v43  ;;  %4258 = vmatprep.mubr.msk.bf16.mxu1 %vm4775_vm0, %v4774_v58 }
 0x162   : > { %v416_v44 = vpack.c.bf16 %v410_v37, %v409_v35  ;;  %v400_v63 = vmul.f32 %v4976_v40, %v388_v38 }
 0x163   : > { %v4611_v45 = vpop.eup %4610  ;;  %v401_v51 = vmul.f32 %v4976_v40, %v389_v57 }
 0x164   : > { %4243 = vmatmul.mubr.bf16.vlgmr.msra.gmra.mrb[0].mxu0 %v416_v44  ;;  %v412_v48 = vadd.f32 %v4983_v53, %v400_v63  ;;  %v390_v50 = vmul.f32 %v4611_v45, %v4934_v13  ;;  %v809_v13 = vsub.s32 5, %v4967_v21 }
 0x165   : > { %v413_v54 = vadd.f32 %v4983_v53, %v401_v51 }
 0x166   : > { %v417_v52 = vpack.c.bf16 %v412_v48, %v411_v46  ;;  %v402_v2 = vmul.f32 %v4976_v40, %v390_v50  ;;  %v819_v40 = vsub.s32 6, %v4967_v21 }
 0x168   : > { %4246 = vmatprep.mubr.bf16.mxu0 %v417_v52  ;;  %v414_v11 = vadd.f32 %v4983_v53, %v402_v2  ;;  %v810_v53 = vrot.slane %v4971_v32, %v809_v13  ;;  %v820_v59 = vrot.slane %v4971_v32, %v819_v40 }
 0x16a   : > { %v418_v56 = vpack.c.bf16 %v414_v11, %v413_v54 }
 0x16c   : > { %4247 = vmatmul.mubr.bf16.gmra.mrb[4].mxu0 %v418_v56 }
 0x16d   : > { %4252 = vmatprep.mubr.msk.bf16.mxu0 %vm4775_vm0, %v4774_v58 }
 0x22b   : > { %v788_v31 = vpop.f32.mrb[0].mxu1 }
 0x22c   : > { %v790_v60 = vpop.f32.mrb[1].mxu1  ;;  %v811_v0 = vadd.f32 %v810_v53, %v788_v31 }
 0x22d   : > { %v792_v61 = vpop.f32.mrb[2].mxu1  ;;  %v821_v4 = vadd.f32 %v820_v59, %v790_v60 }
 0x22e   : > { %v812_v1 = vadd.f32 %v810_v53, %v792_v61  ;;  %v794_v3 = vpop.f32.mrb[3].mxu1 }
 0x22f   : > { %v822_v5 = vadd.f32 %v820_v59, %v794_v3 }
 0x230   : > { %v5031_v6 = vpack.c.bf16 %v812_v1, %v811_v0 }
 0x231   : > { %v5033_v39 = vpack.c.bf16 %v822_v5, %v821_v4 }
 0x232   : > { %v832_v7 = vsel %vm827_vm1, %v5031_v6, 0 }
 0x233   : > { %v798_v10 = vpop.f32.mrb[4].mxu1  ;;  %4251 = vmatpush3.bf16.xpose.msra.mxu0 %v832_v7 }
 0x234   : > { %v800_v9 = vpop.f32.mrb[5].mxu1  ;;  %4262 = vmatprep.subr.bf16.mxu0 %v4774_v58  ;;  %v813_v15 = vadd.f32 %v810_v53, %v798_v10 }
 0x235   : > { %v802_v14 = vpop.f32.mrb[6].mxu1  ;;  %v823_v12 = vadd.f32 %v820_v59, %v800_v9 }
 0x236   : > { %v814_v16 = vadd.f32 %v810_v53, %v802_v14  ;;  %v804_v18 = vpop.f32.mrb[7].mxu1 }
 0x237   : > { %v824_v33 = vadd.f32 %v820_v59, %v804_v18  ;;  %v4244_v41 = vpop.f32.mrb[0].mxu0 }
 0x238   : > { %v5040_v47 = vpack.c.bf16 %v814_v16, %v813_v15  ;;  %v639_v17 = vpop.f32.mrb[1].mxu0  ;;  %v648_v23 = vadd.f32 %v4244_v41, %v556_v19 }
 0x239   : > { %v5042_v20 = vpack.c.bf16 %v824_v33, %v823_v12  ;;  %v4245_v22 = vpop.f32.mrb[2].mxu0  ;;  %v640_v26 = vadd.f32 %v639_v17, %v556_v19 }
 0x23a   : > { %v651_v24 = vadd.f32 %v4245_v22, %v556_v19  ;;  %v642_v49 = vpop.f32.mrb[3].mxu0  ;;  %v879_v25 = vsel %vm827_vm1, %v5040_v47, 0 }
 0x23b   : > { %v643_v27 = vadd.f32 %v642_v49, %v556_v19  ;;  %4257 = vmatpush3.bf16.xpose.msra.mxu1 %v879_v25 }
 0x23c   : > { %v5046_v29 = vpack.c.bf16 %v651_v24, %v648_v23  ;;  %4268 = vmatprep.subr.bf16.mxu1 %v4774_v58 }
 0x23d   : > { %v5049_v32 = vpack.c.bf16 %v643_v27, %v640_v26 }
 0x23f   : > { %v4248_v55 = vpop.f32.mrb[4].mxu0  ;;  %4253 = vmatmul.mubr.msk.bf16.vlgmr.msra.gmra.mrb[8].mxu0 %vm827_vm1, %v5049_v32 }
 0x240   : > { %4263 = vmatpush3.bf16.xpose.msra.mxu0 %v832_v7  ;;  %v655_v30 = vpop.f32.mrb[5].mxu0  ;;  %4264 = vmatprep.mubr.msk.bf16.mxu0 %vm4775_vm0, %v4774_v58  ;;  %v664_v35 = vadd.f32 %v4248_v55, %v556_v19 }
 0x241   : > { %v4249_v34 = vpop.f32.mrb[6].mxu0  ;;  %4274 = vmatprep.subr.bf16.mxu0 %v4774_v58  ;;  %v656_v38 = vadd.f32 %v655_v30, %v556_v19 }
 0x242   : > { %v667_v36 = vadd.f32 %v4249_v34, %v556_v19  ;;  %v658_v37 = vpop.f32.mrb[7].mxu0  ;;  %4259 = vmatmul.mubr.msk.bf16.vlgmr.msra.gmra.mrb[8].mxu1 %vm827_vm1, %v5046_v29 }
 0x243   : > { %v659_v43 = vadd.f32 %v658_v37, %v556_v19  ;;  %4269 = vmatpush3.bf16.xpose.msra.mxu1 %v879_v25  ;;  %4270 = vmatprep.mubr.msk.bf16.mxu1 %vm4775_vm0, %v4774_v58 }
 0x244   : > { %v5060_v57 = vpack.c.bf16 %v667_v36, %v664_v35  ;;  %4280 = vmatprep.subr.bf16.mxu1 %v4774_v58 }
 0x245   : > { %v5063_v44 = vpack.c.bf16 %v659_v43, %v656_v38 }
 0x247   : > { %4265 = vmatmul.mubr.msk.bf16.vlgmr.msra.gmra.mrb[12].mxu0 %vm827_vm1, %v5063_v44 }
 0x248   : > { %4275 = vmatpush3.bf16.msra.mxu0 %v5033_v39  ;;  %4276 = vmatprep.mubr.msk.bf16.mxu0 %vm4775_vm0, %v4774_v58 }
 0x249   : > { %4286 = vmatprep.subr.bf16.mxu0 %v4774_v58 }
 0x24a   : > { %4271 = vmatmul.mubr.msk.bf16.vlgmr.msra.gmra.mrb[12].mxu1 %vm827_vm1, %v5060_v57 }
 0x24b   : > { %4281 = vmatpush3.bf16.msra.mxu1 %v5042_v20  ;;  %4282 = vmatprep.mubr.msk.bf16.mxu1 %vm4775_vm0, %v4774_v58 }
 0x24c   : > { %4292 = vmatprep.subr.bf16.mxu1 %v4774_v58 }
 0x312   : > { %v868_v63 = vpop.f32.mrb[8].mxu0 }
 0x313   : > { %v4254_v45 = vpop.f32.mrb[9].mxu0  ;;  %v1011_v46 = vsel %vm1010_vm2, %v868_v63, -inf }
 0x314   : > { %1012 = vmax.xlane.f32.xlu0 %v1011_v46  ;;  %v871_v48 = vpop.f32.mrb[10].mxu0 }
 0x315   : > { %v4255_v50 = vpop.f32.mrb[11].mxu0  ;;  %v915_v51 = vpop.f32.mrb[8].mxu1  ;;  %v1014_v52 = vsel %vm1010_vm2, %v871_v48, -inf }
 0x316   : > { %v4260_v2 = vpop.f32.mrb[9].mxu1  ;;  %1015 = vmax.xlane.f32.xlu1 %v1014_v52  ;;  %v1017_v54 = vsel %vm1010_vm2, %v915_v51, -inf }
 0x317   : > { %v918_v11 = vpop.f32.mrb[10].mxu1 }
 0x318   : > { %v4261_v56 = vpop.f32.mrb[11].mxu1  ;;  %1018 = vmax.xlane.f32.xlu0 %v1017_v54  ;;  %v1020_v13 = vsel %vm1010_vm2, %v918_v11, -inf }
 0x31a   : > { %1021 = vmax.xlane.f32.xlu1 %v1020_v13  ;;  %v959_v40 = vpop.f32.mrb[12].mxu0 }
 0x31b   : > { %v4266_v53 = vpop.f32.mrb[13].mxu0  ;;  %v1023_v31 = vsel %vm1010_vm2, %v959_v40, -inf }
 0x31c   : > { %1024 = vmax.xlane.f32.xlu0 %v1023_v31  ;;  %v962_v59 = vpop.f32.mrb[14].mxu0 }
 0x31d   : > { %v4267_v60 = vpop.f32.mrb[15].mxu0  ;;  %v1003_v61 = vpop.f32.mrb[12].mxu1  ;;  %v1026_v0 = vsel %vm1010_vm2, %v962_v59, -inf }
 0x31e   : > { %v4272_v1 = vpop.f32.mrb[13].mxu1  ;;  %1027 = vmax.xlane.f32.xlu1 %v1026_v0  ;;  %v1029_v3 = vsel %vm1010_vm2, %v1003_v61, -inf }
 0x31f   : > { %v1006_v4 = vpop.f32.mrb[14].mxu1 }
 0x320   : > { %v4273_v5 = vpop.f32.mrb[15].mxu1  ;;  %1030 = vmax.xlane.f32.xlu0 %v1029_v3  ;;  %v1032_v7 = vsel %vm1010_vm2, %v1006_v4, -inf }
 0x322   : > { %1033 = vmax.xlane.f32.xlu1 %v1032_v7 }
 0x3a1   : > { %v1013_v8 = vpop.xlane.xlu0 %1012 }
 0x3a2   : > { %v1035_v10 = vsub.f32 %v868_v63, %v1013_v8 }
 0x3a3   : > { %v1016_v9 = vpop.xlane.xlu1 %1015 }
 0x3a4   : > { %v1043_v14 = vmul.f32 1.442695, %v1035_v10  ;;  %v1036_v15 = vsub.f32 %v871_v48, %v1016_v9 }
 0x3a5   : > { %v1019_v16 = vpop.xlane.xlu0 %1018 }
 0x3a6   : > { %4612 = vpow2.f32 %v1043_v14  ;;  %v1045_v18 = vmul.f32 1.442695, %v1036_v15  ;;  %v1037_v19 = vsub.f32 %v915_v51, %v1019_v16 }
 0x3a7   : > { %v1022_v12 = vpop.xlane.xlu1 %1021 }
 0x3a8   : > { %4614 = vpow2.f32 %v1045_v18  ;;  %v1047_v33 = vmul.f32 1.442695, %v1037_v19  ;;  %v1038_v41 = vsub.f32 %v918_v11, %v1022_v12 }
 0x3a9   : > { %v1025_v17 = vpop.xlane.xlu0 %1024 }
 0x3aa   : > { %4616 = vpow2.f32 %v1047_v33  ;;  %v1049_v22 = vmul.f32 1.442695, %v1038_v41  ;;  %v1039_v23 = vsub.f32 %v959_v40, %v1025_v17 }
 0x3ab   : > { %v1028_v24 = vpop.xlane.xlu1 %1027 }
 0x3ac   : > { %4618 = vpow2.f32 %v1049_v22  ;;  %v1051_v49 = vmul.f32 1.442695, %v1039_v23  ;;  %v1040_v25 = vsub.f32 %v962_v59, %v1028_v24 }
 0x3ad   : > { %v1031_v26 = vpop.xlane.xlu0 %1030 }
 0x3ae   : > { %4620 = vpow2.f32 %v1051_v49  ;;  %v1053_v27 = vmul.f32 1.442695, %v1040_v25  ;;  %v1041_v55 = vsub.f32 %v1003_v61, %v1031_v26 }
 0x3af   : > { %v1034_v54 = vpop.xlane.xlu1 %1033 }
 0x3b0   : > { %v4613_v30 = vpop.eup %4612  ;;  %4622 = vpow2.f32 %v1053_v27  ;;  %v1055_v34 = vmul.f32 1.442695, %v1041_v55  ;;  %v1042_v11 = vsub.f32 %v1006_v4, %v1034_v54 }
 0x3b1   : > { %v1059_v35 = vsel %vm1010_vm2, %v4613_v30, 0.0 }
 0x3b2   : > { %v4615_v36 = vpop.eup %4614  ;;  %4624 = vpow2.f32 %v1055_v34  ;;  %1060 = vadd.xlane.f32.xlu0 %v1059_v35  ;;  %v1057_v56 = vmul.f32 1.442695, %v1042_v11 }
 0x3b3   : > { %v1062_v37 = vsel %vm1010_vm2, %v4615_v36, 0.0 }
 0x3b4   : > { %v4617_v38 = vpop.eup %4616  ;;  %1063 = vadd.xlane.f32.xlu1 %v1062_v37  ;;  %4626 = vpow2.f32 %v1057_v56 }
 0x3b5   : > { %v1065_v43 = vsel %vm1010_vm2, %v4617_v38, 0.0 }
 0x3b6   : > { %v4619_v63 = vpop.eup %4618  ;;  %1066 = vadd.xlane.f32.xlu0 %v1065_v43 }
 0x3b7   : > { %v1068_v45 = vsel %vm1010_vm2, %v4619_v63, 0.0 }
 0x3b8   : > { %v4621_v46 = vpop.eup %4620  ;;  %1069 = vadd.xlane.f32.xlu1 %v1068_v45 }
 0x3b9   : > { %v1071_v48 = vsel %vm1010_vm2, %v4621_v46, 0.0 }
 0x3ba   : > { %v4623_v50 = vpop.eup %4622  ;;  %1072 = vadd.xlane.f32.xlu0 %v1071_v48 }
 0x3bb   : > { %v1074_v51 = vsel %vm1010_vm2, %v4623_v50, 0.0 }
 0x3bc   : > { %v5091_v52 = vpop.eup %4624  ;;  %1075 = vadd.xlane.f32.xlu1 %v1074_v51 }
 0x3bd   : > { %v1077_v2 = vsel %vm1010_vm2, %v5091_v52, 0.0 }
 0x3be   : > { %1078 = vadd.xlane.f32.xlu0 %v1077_v2  ;;  %v4627_v13 = vpop.eup %4626 }
 0x3bf   : > { %v1080_v40 = vsel %vm1010_vm2, %v4627_v13, 0.0 }
 0x3cd   : > { %1336 = vrot.lane.b32.xlu1 %v5040_v47, %s4776_s6 }
 0x3d4   : > { %1283 = vrot.lane.b32.xlu0 %v5031_v6, %s4776_s6 }
 0x3d8   : > { %1386 = vrot.lane.b32.xlu0 %v5063_v44, %s4776_s6 }
 0x3f1   : > { %1081 = vadd.xlane.f32.xlu1 %v1080_v40 }
 0x402   : > { %1280 = vrot.lane.b32.xlu1 %v5049_v32, %s4776_s6 }
 0x406   : > { %1333 = vrot.lane.b32.xlu1 %v5046_v29, %s4776_s6 }
 0x40a   : > { %1433 = vrot.lane.b32.xlu1 %v5060_v57, %s4776_s6 }
 0x43f   : > { %v1061_v53 = vpop.xlane.xlu0 %1060 }
 0x440   : > { %4628 = vrcp.f32 %v1061_v53 }
 0x441   : > { %v1064_v31 = vpop.xlane.xlu1 %1063 }
 0x442   : > { %4630 = vrcp.f32 %v1064_v31 }
 0x443   : > { %v1067_v59 = vpop.xlane.xlu0 %1066 }
 0x444   : > { %4632 = vrcp.f32 %v1067_v59 }
 0x445   : > { %v1070_v60 = vpop.xlane.xlu1 %1069 }
 0x446   : > { %4634 = vrcp.f32 %v1070_v60 }
 0x447   : > { %v1073_v61 = vpop.xlane.xlu0 %1072 }
 0x448   : > { %4636 = vrcp.f32 %v1073_v61 }
 0x449   : > { %v1076_v0 = vpop.xlane.xlu1 %1075 }
 0x44a   : > { %v4629_v1 = vpop.eup %4628  ;;  %4638 = vrcp.f32 %v1076_v0 }
 0x44b   : > { %v1091_v4 = vmul.f32 %v4629_v1, %v4613_v30  ;;  %v1079_v15 = vpop.xlane.xlu0 %1078 }
 0x44c   : > { %v4631_v3 = vpop.eup %4630  ;;  %4640 = vrcp.f32 %v1079_v15 }
 0x44d   : > { %v1092_v5 = vmul.f32 %v4631_v3, %v4615_v36  ;;  %v1337_v23 = vpop.permute.xlu1 %1336 }
 0x44e   : > { %v4633_v7 = vpop.eup %4632  ;;  %v1342_v35 = vsel %vm827_vm1, %v1337_v23, 0 }
 0x44f   : > { %v1099_v8 = vpack.c.bf16 %v1092_v5, %v1091_v4  ;;  %v1093_v9 = vmul.f32 %v4633_v7, %v4617_v38  ;;  %v1284_v41 = vpop.permute.xlu0 %1283 }
 0x450   : > { %v4635_v10 = vpop.eup %4634  ;;  %v1289_v22 = vsel %vm827_vm1, %v1284_v41, 0 }
 0x451   : > { %v1094_v14 = vmul.f32 %v4635_v10, %v4619_v63  ;;  %4277 = vmatmul.mubr.msk.bf16.vlgmr.msra.gmra.mrb[16].mxu0 %vm1010_vm2, %v1099_v8 }
 0x452   : > { %v4637_v16 = vpop.eup %4636  ;;  %4287 = vmatpush3.bf16.msra.mxu0 %v5033_v39  ;;  %4288 = vmatprep.mubr.msk.bf16.mxu0 %vm4775_vm0, %v4774_v58 }
 0x453   : > { %v1100_v18 = vpack.c.bf16 %v1094_v14, %v1093_v9  ;;  %4298 = vmatprep.subr.bf16.mxu0 %v4774_v58  ;;  %v1095_v12 = vmul.f32 %v4637_v16, %v4621_v46  ;;  %v1387_v55 = vpop.permute.xlu0 %1386 }
 0x454   : > { %v4639_v19 = vpop.eup %4638 }
 0x455   : > { %v1096_v33 = vmul.f32 %v4639_v19, %v4623_v50  ;;  %4283 = vmatmul.mubr.msk.bf16.vlgmr.msra.gmra.mrb[16].mxu1 %vm1010_vm2, %v1100_v18 }
 0x456   : > { %4293 = vmatpush3.bf16.msra.mxu1 %v5042_v20  ;;  %4294 = vmatprep.mubr.msk.bf16.mxu1 %vm4775_vm0, %v4774_v58  ;;  %v4641_v25 = vpop.eup %4640 }
 0x457   : > { %v1101_v17 = vpack.c.bf16 %v1096_v33, %v1095_v12  ;;  %4304 = vmatprep.subr.bf16.mxu1 %v4774_v58  ;;  %v1097_v27 = vmul.f32 %v4641_v25, %v5091_v52 }
 0x459   : > { %4289 = vmatmul.mubr.msk.bf16.vlgmr.msra.gmra.mrb[20].mxu0 %vm1010_vm2, %v1101_v17 }
 0x45a   : > { %4300 = vmatprep.mubr.msk.bf16.mxu0 %vm4775_vm0, %v4774_v58 }
 0x45b   : > { %4299 = vmatpush3.bf16.xpose.msra.mxu0 %v1289_v22 }
 0x45c   : > { %4310 = vmatprep.subr.bf16.mxu0 %v4774_v58 }
 0x47e   : > { %v1082_v24 = vpop.xlane.xlu1 %1081 }
 0x47f   : > { %4642 = vrcp.f32 %v1082_v24 }
 0x482   : > { %v1281_v49 = vpop.permute.xlu1 %1280 }
 0x483   : > { %4301 = vmatmul.mubr.msk.bf16.vlgmr.msra.gmra.mrb[24].mxu0 %vm827_vm1, %v1281_v49 }
 0x484   : > { %4311 = vmatpush3.bf16.xpose.msra.mxu0 %v1289_v22  ;;  %4312 = vmatprep.mubr.msk.bf16.mxu0 %vm4775_vm0, %v4774_v58 }
 0x485   : > { %4322 = vmatprep.subr.bf16.mxu0 %v4774_v58 }
 0x486   : > { %v1334_v36 = vpop.permute.xlu1 %1333 }
 0x489   : > { %v4643_v26 = vpop.eup %4642 }
 0x48a   : > { %v1098_v30 = vmul.f32 %v4643_v26, %v4627_v13  ;;  %v1434_v37 = vpop.permute.xlu1 %1433 }
 0x48b   : > { %4313 = vmatmul.mubr.msk.bf16.vlgmr.msra.gmra.mrb[28].mxu0 %vm827_vm1, %v1387_v55 }
 0x48c   : > { %v1102_v34 = vpack.c.bf16 %v1098_v30, %v1097_v27  ;;  %4324 = vmatprep.mubr.msk.bf16.mxu0 %vm4775_vm0, %v4774_v58 }
 0x48e   : > { %4295 = vmatmul.mubr.msk.bf16.vlgmr.msra.gmra.mrb[20].mxu1 %vm1010_vm2, %v1102_v34 }
 0x48f   : > { %4305 = vmatpush3.bf16.xpose.msra.mxu1 %v1342_v35  ;;  %4306 = vmatprep.mubr.msk.bf16.mxu1 %vm4775_vm0, %v4774_v58 }
 0x490   : > { %4316 = vmatprep.subr.bf16.mxu1 %v4774_v58 }
 0x496   : > { %4307 = vmatmul.mubr.msk.bf16.vlgmr.msra.gmra.mrb[24].mxu1 %vm827_vm1, %v1334_v36 }
 0x497   : > { %4317 = vmatpush3.bf16.xpose.msra.mxu1 %v1342_v35  ;;  %4318 = vmatprep.mubr.msk.bf16.mxu1 %vm4775_vm0, %v4774_v58 }
 0x498   : > { %4328 = vmatprep.subr.bf16.mxu1 %v4774_v58 }
 0x49e   : > { %4319 = vmatmul.mubr.msk.bf16.vlgmr.msra.gmra.mrb[28].mxu1 %vm827_vm1, %v1434_v37 }
 0x49f   : > { %4330 = vmatprep.mubr.msk.bf16.mxu1 %vm4775_vm0, %v4774_v58 }
 0x524   : > { %v5143_v38 = vpop.f32.mrb[16].mxu0 }
 0x525   : > { %v4278_v43 = vpop.f32.mrb[17].mxu0 }
 0x526   : > { %v5145_v63 = vpop.f32.mrb[18].mxu0 }
 0x527   : > { %v4279_v45 = vpop.f32.mrb[19].mxu0 }
 0x528   : > { %v5147_v46 = vpop.f32.mrb[16].mxu1 }
 0x529   : > { %v4284_v48 = vpop.f32.mrb[17].mxu1 }
 0x52a   : > { %v5149_v50 = vpop.f32.mrb[18].mxu1 }
 0x52b   : > { %v4285_v51 = vpop.f32.mrb[19].mxu1 }
 0x52c   : > { %v5151_v52 = vpop.f32.mrb[20].mxu0 }
 0x52d   : > { %v4290_v2 = vpop.f32.mrb[21].mxu0 }
 0x52e   : > { %v5153_v54 = vpop.f32.mrb[22].mxu0 }
 0x52f   : > { %v4291_v11 = vpop.f32.mrb[23].mxu0 }
 0x556   : > { %v1325_v56 = vpop.f32.mrb[24].mxu0 }
 0x557   : > { %v4302_v13 = vpop.f32.mrb[25].mxu0  ;;  %v1479_v40 = vsel %vm1010_vm2, %v1325_v56, -inf }
 0x558   : > { %1480 = vmax.xlane.f32.xlu0 %v1479_v40  ;;  %v1328_v53 = vpop.f32.mrb[26].mxu0 }
 0x559   : > { %v4303_v31 = vpop.f32.mrb[27].mxu0  ;;  %v1482_v59 = vsel %vm1010_vm2, %v1328_v53, -inf }
 0x55a   : > { %1483 = vmax.xlane.f32.xlu1 %v1482_v59 }
 0x55e   : > { %v1425_v60 = vpop.f32.mrb[28].mxu0 }
 0x55f   : > { %v4314_v61 = vpop.f32.mrb[29].mxu0  ;;  %v1491_v33 = vsel %vm1010_vm2, %v1425_v60, -inf }
 0x560   : > { %v1428_v0 = vpop.f32.mrb[30].mxu0 }
 0x561   : > { %v5157_v1 = vpop.f32.mrb[20].mxu1  ;;  %v4315_v3 = vpop.f32.mrb[31].mxu0  ;;  %v1494_v4 = vsel %vm1010_vm2, %v1428_v0, -inf }
 0x562   : > { %v4296_v5 = vpop.f32.mrb[21].mxu1  ;;  %1495 = vmax.xlane.f32.xlu1 %v1494_v4 }
 0x563   : > { %v5160_v7 = vpop.f32.mrb[22].mxu1 }
 0x564   : > { %v4297_v8 = vpop.f32.mrb[23].mxu1 }
 0x569   : > { %v1378_v10 = vpop.f32.mrb[24].mxu1 }
 0x56a   : > { %v4308_v9 = vpop.f32.mrb[25].mxu1  ;;  %v1485_v14 = vsel %vm1010_vm2, %v1378_v10, -inf }
 0x56b   : > { %v1381_v15 = vpop.f32.mrb[26].mxu1  ;;  %1486 = vmax.xlane.f32.xlu0 %v1485_v14 }
 0x56c   : > { %v4309_v16 = vpop.f32.mrb[27].mxu1  ;;  %v1488_v18 = vsel %vm1010_vm2, %v1381_v15, -inf }
 0x56f   : > { %1489 = vmax.xlane.f32.xlu0 %v1488_v18 }
 0x571   : > { %v1472_v19 = vpop.f32.mrb[28].mxu1 }
 0x572   : > { %v4320_v12 = vpop.f32.mrb[29].mxu1  ;;  %v1497_v23 = vsel %vm1010_vm2, %v1472_v19, -inf }
 0x573   : > { %v5165_v41 = vpop.f32.mrb[30].mxu1  ;;  %1492 = vmax.xlane.f32.xlu0 %v1491_v33 }
 0x574   : > { %v4321_v17 = vpop.f32.mrb[31].mxu1  ;;  %v1500_v22 = vsel %vm1010_vm2, %v5165_v41, -inf }
 0x575   : > { %1501 = vmax.xlane.f32.xlu1 %v1500_v22 }
 0x577   : > { %1498 = vmax.xlane.f32.xlu0 %v1497_v23 }
 0x5e5   : > { %v1481_v24 = vpop.xlane.xlu0 %1480 }
 0x5e6   : > { %v1503_v49 = vsub.f32 %v1325_v56, %v1481_v24 }
 0x5e7   : > { %v1484_v25 = vpop.xlane.xlu1 %1483 }
 0x5e8   : > { %v1511_v26 = vmul.f32 1.442695, %v1503_v49  ;;  %v1504_v27 = vsub.f32 %v1328_v53, %v1484_v25 }
 0x5ea   : > { %4644 = vpow2.f32 %v1511_v26  ;;  %v1513_v55 = vmul.f32 1.442695, %v1504_v27 }
 0x5ec   : > { %4646 = vpow2.f32 %v1513_v55 }
 0x5ef   : > { %v1496_v37 = vpop.xlane.xlu1 %1495 }
 0x5f0   : > { %v1508_v48 = vsub.f32 %v1428_v0, %v1496_v37 }
 0x5f2   : > { %v1521_v56 = vmul.f32 1.442695, %v1508_v48 }
 0x5f4   : > { %v5170_v30 = vpop.eup %4644 }
 0x5f5   : > { %v1527_v34 = vsel %vm1010_vm2, %v5170_v30, 0.0 }
 0x5f6   : > { %v5174_v35 = vpop.eup %4646  ;;  %1528 = vadd.xlane.f32.xlu0 %v1527_v34 }
 0x5f7   : > { %v1530_v36 = vsel %vm1010_vm2, %v5174_v35, 0.0 }
 0x5f8   : > { %v1487_v43 = vpop.xlane.xlu0 %1486  ;;  %1531 = vadd.xlane.f32.xlu1 %v1530_v36 }
 0x5f9   : > { %v1505_v45 = vsub.f32 %v1378_v10, %v1487_v43 }
 0x5fb   : > { %v1515_v51 = vmul.f32 1.442695, %v1505_v45 }
 0x5fc   : > { %v1490_v2 = vpop.xlane.xlu0 %1489 }
 0x5fd   : > { %4648 = vpow2.f32 %v1515_v51  ;;  %v1506_v11 = vsub.f32 %v1381_v15, %v1490_v2 }
 0x5ff   : > { %v1517_v13 = vmul.f32 1.442695, %v1506_v11 }
 0x600   : > { %v1493_v40 = vpop.xlane.xlu0 %1492 }
 0x601   : > { %4650 = vpow2.f32 %v1517_v13  ;;  %v1507_v53 = vsub.f32 %v1425_v60, %v1493_v40 }
 0x602   : > { %4652 = vpow2.f32 %v1521_v56  ;;  %v1502_v18 = vpop.xlane.xlu1 %1501 }
 0x603   : > { %v1519_v31 = vmul.f32 1.442695, %v1507_v53 }
 0x604   : > { %v1499_v59 = vpop.xlane.xlu0 %1498 }
 0x605   : > { %4654 = vpow2.f32 %v1519_v31  ;;  %v1509_v61 = vsub.f32 %v1472_v19, %v1499_v59  ;;  %v1510_v19 = vsub.f32 %v5165_v41, %v1502_v18 }
 0x607   : > { %v4649_v3 = vpop.eup %4648  ;;  %v1523_v4 = vmul.f32 1.442695, %v1509_v61  ;;  %v1525_v12 = vmul.f32 1.442695, %v1510_v19 }
 0x608   : > { %v1533_v5 = vsel %vm1010_vm2, %v4649_v3, 0.0 }
 0x609   : > { %4656 = vpow2.f32 %v1523_v4  ;;  %1534 = vadd.xlane.f32.xlu0 %v1533_v5 }
 0x60a   : > { %4658 = vpow2.f32 %v1525_v12 }
 0x60b   : > { %v4651_v0 = vpop.eup %4650 }
 0x60c   : > { %v1536_v8 = vsel %vm1010_vm2, %v4651_v0, 0.0  ;;  %v4653_v10 = vpop.eup %4652 }
 0x60d   : > { %1537 = vadd.xlane.f32.xlu1 %v1536_v8  ;;  %v1542_v60 = vsel %vm1010_vm2, %v4653_v10, 0.0 }
 0x60f   : > { %v4655_v9 = vpop.eup %4654 }
 0x610   : > { %v1539_v14 = vsel %vm1010_vm2, %v4655_v9, 0.0 }
 0x611   : > { %1540 = vadd.xlane.f32.xlu0 %v1539_v14  ;;  %1543 = vadd.xlane.f32.xlu1 %v1542_v60 }
 0x613   : > { %v5182_v15 = vpop.eup %4656 }
 0x614   : > { %v1545_v16 = vsel %vm1010_vm2, %v5182_v15, 0.0  ;;  %v5197_v33 = vpop.eup %4658 }
 0x615   : > { %1546 = vadd.xlane.f32.xlu0 %v1545_v16  ;;  %v1548_v17 = vsel %vm1010_vm2, %v5197_v33, 0.0 }
 0x622   : > { %1620 = vrot.lane.b32.xlu1 %v5042_v20, %s4776_s6 }
 0x626   : > { %1757 = vrot.lane.b32.xlu1 %v5031_v6, %s4777_s7 }
 0x62b   : > { %1572 = vrot.lane.b32.xlu0 %v5033_v39, %s4776_s6 }
 0x62f   : > { %1755 = vrot.lane.b32.xlu0 %v5049_v32, %s4777_s7 }
 0x633   : > { %1857 = vrot.lane.b32.xlu0 %v5063_v44, %s4777_s7 }
 0x64a   : > { %1549 = vadd.xlane.f32.xlu1 %v1548_v17 }
 0x65b   : > { %1808 = vrot.lane.b32.xlu1 %v5040_v47, %s4777_s7 }
 0x65f   : > { %1806 = vrot.lane.b32.xlu1 %v5046_v29, %s4777_s7 }
 0x663   : > { %1903 = vrot.lane.b32.xlu1 %v5060_v57, %s4777_s7 }
 0x683   : > { %v1529_v22 = vpop.xlane.xlu0 %1528 }
 0x685   : > { %v1532_v23 = vpop.xlane.xlu1 %1531 }
 0x686   : > { %4660 = vrcp.f32 %v1532_v23 }
 0x687   : > { %4662 = vrcp.f32 %v1529_v22 }
 0x690   : > { %v4661_v26 = vpop.eup %4660 }
 0x691   : > { %v4663_v27 = vpop.eup %4662  ;;  %v1560_v37 = vmul.f32 %v4661_v26, %v5174_v35 }
 0x692   : > { %v1559_v45 = vmul.f32 %v4663_v27, %v5170_v30 }
 0x694   : > { %v1567_v11 = vpack.c.bf16 %v1560_v37, %v1559_v45 }
 0x696   : > { %v1535_v41 = vpop.xlane.xlu0 %1534 }
 0x697   : > { %4664 = vrcp.f32 %v1535_v41 }
 0x69a   : > { %v1538_v24 = vpop.xlane.xlu1 %1537 }
 0x69b   : > { %4666 = vrcp.f32 %v1538_v24 }
 0x69e   : > { %v1541_v49 = vpop.xlane.xlu0 %1540  ;;  %v1544_v25 = vpop.xlane.xlu1 %1543 }
 0x69f   : > { %4668 = vrcp.f32 %v1541_v49 }
 0x6a0   : > { %4670 = vrcp.f32 %v1544_v25 }
 0x6a1   : > { %v4665_v36 = vpop.eup %4664 }
 0x6a2   : > { %v1547_v55 = vpop.xlane.xlu0 %1546  ;;  %v1621_v34 = vpop.permute.xlu1 %1620  ;;  %v1561_v48 = vmul.f32 %v4665_v36, %v4649_v3 }
 0x6a3   : > { %4329 = vmatpush3.bf16.msra.mxu1 %v1621_v34  ;;  %4672 = vrcp.f32 %v1547_v55 }
 0x6a4   : > { %4340 = vmatprep.subr.bf16.mxu1 %v4774_v58 }
 0x6a5   : > { %v4667_v43 = vpop.eup %4666 }
 0x6a6   : > { %v1562_v51 = vmul.f32 %v4667_v43, %v4651_v0  ;;  %v1573_v2 = vpop.permute.xlu0 %1572  ;;  %v1758_v30 = vpop.permute.xlu1 %1757 }
 0x6a7   : > { %4323 = vmatpush3.bf16.msra.mxu0 %v1573_v2  ;;  %v1763_v59 = vsel %vm827_vm1, %v1758_v30, 0 }
 0x6a8   : > { %4334 = vmatprep.subr.bf16.mxu0 %v4774_v58  ;;  %v1568_v56 = vpack.c.bf16 %v1562_v51, %v1561_v48 }
 0x6a9   : > { %v4669_v13 = vpop.eup %4668 }
 0x6aa   : > { %v4671_v40 = vpop.eup %4670  ;;  %4325 = vmatmul.mubr.msk.bf16.vlgmr.msra.gmra.mrb[32].mxu0 %vm1010_vm2, %v1567_v11  ;;  %4331 = vmatmul.mubr.msk.bf16.vlgmr.msra.gmra.mrb[32].mxu1 %vm1010_vm2, %v1568_v56  ;;  %v1563_v35 = vmul.f32 %v4669_v13, %v4655_v9  ;;  %v1756_v61 = vpop.permute.xlu0 %1755 }
 0x6ab   : > { %4341 = vmatpush3.bf16.msra.mxu1 %v1621_v34  ;;  %4335 = vmatpush3.bf16.msra.mxu0 %v1573_v2  ;;  %v1564_v53 = vmul.f32 %v4671_v40, %v4653_v10 }
 0x6ac   : > { %4336 = vmatprep.mubr.msk.bf16.mxu0 %vm4775_vm0, %v4774_v58  ;;  %4346 = vmatprep.subr.bf16.mxu0 %v4774_v58 }
 0x6ad   : > { %4342 = vmatprep.mubr.msk.bf16.mxu1 %vm4775_vm0, %v4774_v58  ;;  %4352 = vmatprep.subr.bf16.mxu1 %v4774_v58  ;;  %v1569_v31 = vpack.c.bf16 %v1564_v53, %v1563_v35  ;;  %v4673_v5 = vpop.eup %4672 }
 0x6ae   : > { %v1858_v3 = vpop.permute.xlu0 %1857  ;;  %v1565_v8 = vmul.f32 %v4673_v5, %v5182_v15 }
 0x6b2   : > { %4337 = vmatmul.mubr.msk.bf16.vlgmr.msra.gmra.mrb[36].mxu0 %vm1010_vm2, %v1569_v31 }
 0x6b3   : > { %4348 = vmatprep.mubr.msk.bf16.mxu0 %vm4775_vm0, %v4774_v58 }
 0x6b4   : > { %4347 = vmatpush3.bf16.xpose.msra.mxu0 %v1763_v59 }
 0x6b5   : > { %4358 = vmatprep.subr.bf16.mxu0 %v4774_v58 }
 0x6bb   : > { %4349 = vmatmul.mubr.msk.bf16.vlgmr.msra.gmra.mrb[40].mxu0 %vm827_vm1, %v1756_v61 }
 0x6bc   : > { %4359 = vmatpush3.bf16.xpose.msra.mxu0 %v1763_v59  ;;  %4360 = vmatprep.mubr.msk.bf16.mxu0 %vm4775_vm0, %v4774_v58 }
 0x6bd   : > { %4370 = vmatprep.subr.bf16.mxu0 %v4774_v58 }
 0x6c3   : > { %4361 = vmatmul.mubr.msk.bf16.vlgmr.msra.gmra.mrb[44].mxu0 %vm827_vm1, %v1858_v3 }
 0x6c4   : > { %4372 = vmatprep.mubr.msk.bf16.mxu0 %vm4775_vm0, %v4774_v58 }
 0x6d7   : > { %v1550_v4 = vpop.xlane.xlu1 %1549 }
 0x6d8   : > { %4674 = vrcp.f32 %v1550_v4 }
 0x6db   : > { %v1809_v9 = vpop.permute.xlu1 %1808 }
 0x6dc   : > { %v1814_v60 = vsel %vm827_vm1, %v1809_v9, 0 }
 0x6df   : > { %v1807_v16 = vpop.permute.xlu1 %1806 }
 0x6e2   : > { %v4675_v0 = vpop.eup %4674 }
 0x6e3   : > { %v1566_v10 = vmul.f32 %v4675_v0, %v5197_v33  ;;  %v1904_v15 = vpop.permute.xlu1 %1903 }
 0x6e5   : > { %v1570_v14 = vpack.c.bf16 %v1566_v10, %v1565_v8 }
 0x6e7   : > { %4343 = vmatmul.mubr.msk.bf16.vlgmr.msra.gmra.mrb[36].mxu1 %vm1010_vm2, %v1570_v14 }
 0x6e8   : > { %4353 = vmatpush3.bf16.xpose.msra.mxu1 %v1814_v60  ;;  %4354 = vmatprep.mubr.msk.bf16.mxu1 %vm4775_vm0, %v4774_v58 }
 0x6e9   : > { %4364 = vmatprep.subr.bf16.mxu1 %v4774_v58 }
 0x6ef   : > { %4355 = vmatmul.mubr.msk.bf16.vlgmr.msra.gmra.mrb[40].mxu1 %vm827_vm1, %v1807_v16 }
 0x6f0   : > { %4365 = vmatpush3.bf16.xpose.msra.mxu1 %v1814_v60  ;;  %4366 = vmatprep.mubr.msk.bf16.mxu1 %vm4775_vm0, %v4774_v58 }
 0x6f1   : > { %4376 = vmatprep.subr.bf16.mxu1 %v4774_v58 }
 0x6f7   : > { %4367 = vmatmul.mubr.msk.bf16.vlgmr.msra.gmra.mrb[44].mxu1 %vm827_vm1, %v1904_v15 }
 0x6f8   : > { %4378 = vmatprep.mubr.msk.bf16.mxu1 %vm4775_vm0, %v4774_v58 }
 0x77d   : > { %v5245_v18 = vpop.f32.mrb[32].mxu0  ;;  %v5247_v19 = vpop.f32.mrb[32].mxu1 }
 0x77e   : > { %v4326_v12 = vpop.f32.mrb[33].mxu0  ;;  %v4332_v33 = vpop.f32.mrb[33].mxu1 }
 0x77f   : > { %v5249_v17 = vpop.f32.mrb[34].mxu0  ;;  %v5251_v22 = vpop.f32.mrb[34].mxu1 }
 0x780   : > { %v4496_v23 = vpack.i.bf16 %v5249_v17, %v5245_v18  ;;  %v4501_v41 = vpack.i.bf16 %v5251_v22, %v5247_v19  ;;  %v4327_v24 = vpop.f32.mrb[35].mxu0  ;;  %v4333_v49 = vpop.f32.mrb[35].mxu1 }
 0x785   : > { %v5257_v25 = vpop.f32.mrb[36].mxu0 }
 0x786   : > { %v4338_v26 = vpop.f32.mrb[37].mxu0 }
 0x787   : > { %v5259_v27 = vpop.f32.mrb[38].mxu0 }
 0x788   : > { %v4526_v55 = vpack.i.bf16 %v5259_v27, %v5257_v25  ;;  %v4339_v34 = vpop.f32.mrb[39].mxu0 }
 0x78e   : > { %v1799_v36 = vpop.f32.mrb[40].mxu0 }
 0x78f   : > { %v4350_v37 = vpop.f32.mrb[41].mxu0  ;;  %v1949_v43 = vsel %vm1010_vm2, %v1799_v36, -inf }
 0x790   : > { %1950 = vmax.xlane.f32.xlu0 %v1949_v43  ;;  %v1802_v45 = vpop.f32.mrb[42].mxu0 }
 0x791   : > { %v4351_v48 = vpop.f32.mrb[43].mxu0  ;;  %v1952_v51 = vsel %vm1010_vm2, %v1802_v45, -inf }
 0x792   : > { %1953 = vmax.xlane.f32.xlu1 %v1952_v51 }
 0x796   : > { %v1896_v2 = vpop.f32.mrb[44].mxu0 }
 0x797   : > { %v4362_v11 = vpop.f32.mrb[45].mxu0  ;;  %v1961_v14 = vsel %vm1010_vm2, %v1896_v2, -inf }
 0x798   : > { %v1899_v56 = vpop.f32.mrb[46].mxu0 }
 0x799   : > { %v4363_v13 = vpop.f32.mrb[47].mxu0  ;;  %v1964_v40 = vsel %vm1010_vm2, %v1899_v56, -inf }
 0x79a   : > { %1965 = vmax.xlane.f32.xlu1 %v1964_v40 }
 0x7ba   : > { %v5266_v35 = vpop.f32.mrb[36].mxu1 }
 0x7bb   : > { %v4344_v53 = vpop.f32.mrb[37].mxu1 }
 0x7bc   : > { %v5268_v30 = vpop.f32.mrb[38].mxu1 }
 0x7bd   : > { %v4531_v31 = vpack.i.bf16 %v5268_v30, %v5266_v35  ;;  %v4345_v59 = vpop.f32.mrb[39].mxu1 }
 0x7c2   : > { %v1850_v61 = vpop.f32.mrb[40].mxu1 }
 0x7c3   : > { %v4356_v3 = vpop.f32.mrb[41].mxu1  ;;  %v1955_v4 = vsel %vm1010_vm2, %v1850_v61, -inf }
 0x7c4   : > { %v1853_v5 = vpop.f32.mrb[42].mxu1  ;;  %1956 = vmax.xlane.f32.xlu0 %v1955_v4 }
 0x7c5   : > { %v4357_v0 = vpop.f32.mrb[43].mxu1  ;;  %v1958_v8 = vsel %vm1010_vm2, %v1853_v5, -inf }
 0x7c8   : > { %1959 = vmax.xlane.f32.xlu0 %v1958_v8 }
 0x7ca   : > { %v1942_v10 = vpop.f32.mrb[44].mxu1 }
 0x7cb   : > { %v4368_v9 = vpop.f32.mrb[45].mxu1  ;;  %v1967_v12 = vsel %vm1010_vm2, %v1942_v10, -inf }
 0x7cc   : > { %v5275_v60 = vpop.f32.mrb[46].mxu1  ;;  %1962 = vmax.xlane.f32.xlu0 %v1961_v14 }
 0x7cd   : > { %v4369_v16 = vpop.f32.mrb[47].mxu1  ;;  %v1970_v15 = vsel %vm1010_vm2, %v5275_v60, -inf }
 0x7ce   : > { %1971 = vmax.xlane.f32.xlu1 %v1970_v15 }
 0x7d0   : > { %1968 = vmax.xlane.f32.xlu0 %v1967_v12 }
 0x81d   : > { %v1951_v33 = vpop.xlane.xlu0 %1950 }
 0x81e   : > { %v1973_v24 = vsub.f32 %v1799_v36, %v1951_v33 }
 0x81f   : > { %v1954_v49 = vpop.xlane.xlu1 %1953 }
 0x820   : > { %v1981_v26 = vmul.f32 1.442695, %v1973_v24  ;;  %v1974_v34 = vsub.f32 %v1802_v45, %v1954_v49 }
 0x822   : > { %4676 = vpow2.f32 %v1981_v26  ;;  %v1983_v37 = vmul.f32 1.442695, %v1974_v34 }
 0x824   : > { %4678 = vpow2.f32 %v1983_v37 }
 0x827   : > { %v1966_v13 = vpop.xlane.xlu1 %1965 }
 0x828   : > { %v1978_v53 = vsub.f32 %v1899_v56, %v1966_v13 }
 0x82a   : > { %v1991_v4 = vmul.f32 1.442695, %v1978_v53 }
 0x82c   : > { %v5280_v43 = vpop.eup %4676 }
 0x82d   : > { %v1997_v48 = vsel %vm1010_vm2, %v5280_v43, 0.0 }
 0x82e   : > { %v5284_v51 = vpop.eup %4678  ;;  %1998 = vadd.xlane.f32.xlu0 %v1997_v48 }
 0x82f   : > { %v2000_v11 = vsel %vm1010_vm2, %v5284_v51, 0.0 }
 0x830   : > { %2001 = vadd.xlane.f32.xlu1 %v2000_v11 }
 0x851   : > { %v1957_v36 = vpop.xlane.xlu0 %1956 }
 0x852   : > { %v1975_v40 = vsub.f32 %v1850_v61, %v1957_v36 }
 0x854   : > { %v1985_v45 = vmul.f32 1.442695, %v1975_v40 }
 0x855   : > { %v1960_v59 = vpop.xlane.xlu0 %1959 }
 0x856   : > { %4680 = vpow2.f32 %v1985_v45  ;;  %v1976_v3 = vsub.f32 %v1853_v5, %v1960_v59 }
 0x858   : > { %v1987_v0 = vmul.f32 1.442695, %v1976_v3 }
 0x859   : > { %v1963_v8 = vpop.xlane.xlu0 %1962 }
 0x85a   : > { %4682 = vpow2.f32 %v1987_v0  ;;  %v1977_v9 = vsub.f32 %v1896_v2, %v1963_v8 }
 0x85b   : > { %4684 = vpow2.f32 %v1991_v4  ;;  %v1972_v37 = vpop.xlane.xlu1 %1971 }
 0x85c   : > { %v1989_v14 = vmul.f32 1.442695, %v1977_v9  ;;  %v1980_v48 = vsub.f32 %v5275_v60, %v1972_v37 }
 0x85d   : > { %v1969_v16 = vpop.xlane.xlu0 %1968 }
 0x85e   : > { %4686 = vpow2.f32 %v1989_v14  ;;  %v1979_v15 = vsub.f32 %v1942_v10, %v1969_v16  ;;  %v1995_v11 = vmul.f32 1.442695, %v1980_v48 }
 0x860   : > { %v4681_v12 = vpop.eup %4680  ;;  %v1993_v33 = vmul.f32 1.442695, %v1979_v15 }
 0x861   : > { %v2003_v24 = vsel %vm1010_vm2, %v4681_v12, 0.0 }
 0x862   : > { %4688 = vpow2.f32 %v1993_v33  ;;  %2004 = vadd.xlane.f32.xlu0 %v2003_v24 }
 0x863   : > { %4690 = vpow2.f32 %v1995_v11 }
 0x864   : > { %v4683_v56 = vpop.eup %4682 }
 0x865   : > { %v2006_v61 = vsel %vm1010_vm2, %v4683_v56, 0.0  ;;  %v4685_v5 = vpop.eup %4684 }
 0x866   : > { %2007 = vadd.xlane.f32.xlu1 %v2006_v61  ;;  %v2012_v2 = vsel %vm1010_vm2, %v4685_v5, 0.0 }
 0x868   : > { %v4687_v49 = vpop.eup %4686 }
 0x869   : > { %v2009_v26 = vsel %vm1010_vm2, %v4687_v49, 0.0 }
 0x86a   : > { %2010 = vadd.xlane.f32.xlu0 %v2009_v26  ;;  %2013 = vadd.xlane.f32.xlu1 %v2012_v2 }
 0x86c   : > { %v5292_v34 = vpop.eup %4688 }
 0x86d   : > { %v2015_v10 = vsel %vm1010_vm2, %v5292_v34, 0.0  ;;  %v5307_v13 = vpop.eup %4690 }
 0x86e   : > { %2016 = vadd.xlane.f32.xlu0 %v2015_v10  ;;  %v2018_v36 = vsel %vm1010_vm2, %v5307_v13, 0.0 }
 0x87b   : > { %2088 = vrot.lane.b32.xlu1 %v5042_v20, %s4777_s7 }
 0x87f   : > { %2225 = vrot.lane.b32.xlu1 %v5031_v6, %s4778_s9 }
 0x884   : > { %2041 = vrot.lane.b32.xlu0 %v5033_v39, %s4777_s7 }
 0x888   : > { %2223 = vrot.lane.b32.xlu0 %v5049_v32, %s4778_s9 }
 0x88c   : > { %2325 = vrot.lane.b32.xlu0 %v5063_v44, %s4778_s9 }
 0x8a3   : > { %2019 = vadd.xlane.f32.xlu1 %v2018_v36 }
 0x8b4   : > { %2276 = vrot.lane.b32.xlu1 %v5040_v47, %s4778_s9 }
 0x8b8   : > { %2274 = vrot.lane.b32.xlu1 %v5046_v29, %s4778_s9 }
 0x8bb   : > { %v1999_v6 = vpop.xlane.xlu0 %1998 }
 0x8bc   : > { %2371 = vrot.lane.b32.xlu1 %v5060_v57, %s4778_s9 }
 0x8bd   : > { %v2002_v32 = vpop.xlane.xlu1 %2001 }
 0x8be   : > { %4692 = vrcp.f32 %v2002_v32 }
 0x8bf   : > { %4694 = vrcp.f32 %v1999_v6 }
 0x8c8   : > { %v4693_v45 = vpop.eup %4692 }
 0x8c9   : > { %v4695_v47 = vpop.eup %4694  ;;  %v2030_v57 = vmul.f32 %v4693_v45, %v5284_v51 }
 0x8ca   : > { %v2029_v0 = vmul.f32 %v4695_v47, %v5280_v43 }
 0x8cc   : > { %v2037_v16 = vpack.c.bf16 %v2030_v57, %v2029_v0 }
 0x8ef   : > { %v2005_v44 = vpop.xlane.xlu0 %2004 }
 0x8f0   : > { %4696 = vrcp.f32 %v2005_v44 }
 0x8f3   : > { %v2008_v60 = vpop.xlane.xlu1 %2007 }
 0x8f4   : > { %4698 = vrcp.f32 %v2008_v60 }
 0x8f7   : > { %v2011_v40 = vpop.xlane.xlu0 %2010  ;;  %v2014_v53 = vpop.xlane.xlu1 %2013 }
 0x8f8   : > { %4700 = vrcp.f32 %v2011_v40 }
 0x8f9   : > { %4702 = vrcp.f32 %v2014_v53 }
 0x8fa   : > { %v4697_v29 = vpop.eup %4696 }
 0x8fb   : > { %v2017_v59 = vpop.xlane.xlu0 %2016  ;;  %v2089_v3 = vpop.permute.xlu1 %2088  ;;  %v2031_v8 = vmul.f32 %v4697_v29, %v4681_v12 }
 0x8fc   : > { %4377 = vmatpush3.bf16.msra.mxu1 %v2089_v3  ;;  %4704 = vrcp.f32 %v2017_v59 }
 0x8fd   : > { %4388 = vmatprep.subr.bf16.mxu1 %v4774_v58 }
 0x8fe   : > { %v4699_v4 = vpop.eup %4698 }
 0x8ff   : > { %v2032_v9 = vmul.f32 %v4699_v4, %v4683_v56  ;;  %v2042_v14 = vpop.permute.xlu0 %2041  ;;  %v2226_v43 = vpop.permute.xlu1 %2225 }
 0x900   : > { %4371 = vmatpush3.bf16.msra.mxu0 %v2042_v14  ;;  %v2231_v56 = vsel %vm827_vm1, %v2226_v43, 0 }
 0x901   : > { %4382 = vmatprep.subr.bf16.mxu0 %v4774_v58  ;;  %v2038_v15 = vpack.c.bf16 %v2032_v9, %v2031_v8 }
 0x902   : > { %v4701_v33 = vpop.eup %4700 }
 0x903   : > { %v4703_v24 = vpop.eup %4702  ;;  %4373 = vmatmul.mubr.msk.bf16.vlgmr.msra.gmra.mrb[48].mxu0 %vm1010_vm2, %v2037_v16  ;;  %4379 = vmatmul.mubr.msk.bf16.vlgmr.msra.gmra.mrb[48].mxu1 %vm1010_vm2, %v2038_v15  ;;  %v2033_v51 = vmul.f32 %v4701_v33, %v4687_v49 }
 0x904   : > { %4389 = vmatpush3.bf16.msra.mxu1 %v2089_v3  ;;  %4383 = vmatpush3.bf16.msra.mxu0 %v2042_v14  ;;  %v2034_v61 = vmul.f32 %v4703_v24, %v4685_v5  ;;  %v2224_v5 = vpop.permute.xlu0 %2223 }
 0x905   : > { %4384 = vmatprep.mubr.msk.bf16.mxu0 %vm4775_vm0, %v4774_v58  ;;  %4394 = vmatprep.subr.bf16.mxu0 %v4774_v58 }
 0x906   : > { %4390 = vmatprep.mubr.msk.bf16.mxu1 %vm4775_vm0, %v4774_v58  ;;  %4400 = vmatprep.subr.bf16.mxu1 %v4774_v58  ;;  %v2039_v12 = vpack.c.bf16 %v2034_v61, %v2033_v51  ;;  %v4705_v2 = vpop.eup %4704 }
 0x907   : > { %v2035_v37 = vmul.f32 %v4705_v2, %v5292_v34 }
 0x908   : > { %v2326_v49 = vpop.permute.xlu0 %2325 }
 0x90b   : > { %4385 = vmatmul.mubr.msk.bf16.vlgmr.msra.gmra.mrb[52].mxu0 %vm1010_vm2, %v2039_v12 }
 0x90c   : > { %4396 = vmatprep.mubr.msk.bf16.mxu0 %vm4775_vm0, %v4774_v58 }
 0x90d   : > { %4395 = vmatpush3.bf16.xpose.msra.mxu0 %v2231_v56 }
 0x90e   : > { %4406 = vmatprep.subr.bf16.mxu0 %v4774_v58 }
 0x914   : > { %4397 = vmatmul.mubr.msk.bf16.vlgmr.msra.gmra.mrb[56].mxu0 %vm827_vm1, %v2224_v5 }
 0x915   : > { %4407 = vmatpush3.bf16.xpose.msra.mxu0 %v2231_v56  ;;  %4408 = vmatprep.mubr.msk.bf16.mxu0 %vm4775_vm0, %v4774_v58 }
 0x916   : > { %4418 = vmatprep.subr.bf16.mxu0 %v4774_v58 }
 0x91c   : > { %4409 = vmatmul.mubr.msk.bf16.vlgmr.msra.gmra.mrb[60].mxu0 %vm827_vm1, %v2326_v49 }
 0x91d   : > { %4420 = vmatprep.mubr.msk.bf16.mxu0 %vm4775_vm0, %v4774_v58 }
 0x930   : > { %v2020_v26 = vpop.xlane.xlu1 %2019 }
 0x931   : > { %4706 = vrcp.f32 %v2020_v26 }
 0x934   : > { %v2277_v11 = vpop.permute.xlu1 %2276 }
 0x935   : > { %v2282_v6 = vsel %vm827_vm1, %v2277_v11, 0 }
 0x938   : > { %v2275_v32 = vpop.permute.xlu1 %2274 }
 0x93b   : > { %v4707_v10 = vpop.eup %4706 }
 0x93c   : > { %v2036_v48 = vmul.f32 %v4707_v10, %v5307_v13  ;;  %v2372_v34 = vpop.permute.xlu1 %2371 }
 0x93e   : > { %v2040_v36 = vpack.c.bf16 %v2036_v48, %v2035_v37 }
 0x940   : > { %4391 = vmatmul.mubr.msk.bf16.vlgmr.msra.gmra.mrb[52].mxu1 %vm1010_vm2, %v2040_v36 }
 0x941   : > { %4401 = vmatpush3.bf16.xpose.msra.mxu1 %v2282_v6  ;;  %4402 = vmatprep.mubr.msk.bf16.mxu1 %vm4775_vm0, %v4774_v58 }
 0x942   : > { %4412 = vmatprep.subr.bf16.mxu1 %v4774_v58 }
 0x948   : > { %4403 = vmatmul.mubr.msk.bf16.vlgmr.msra.gmra.mrb[56].mxu1 %vm827_vm1, %v2275_v32 }
 0x949   : > { %4413 = vmatpush3.bf16.xpose.msra.mxu1 %v2282_v6  ;;  %4414 = vmatprep.mubr.msk.bf16.mxu1 %vm4775_vm0, %v4774_v58 }
 0x94a   : > { %4424 = vmatprep.subr.bf16.mxu1 %v4774_v58 }
 0x950   : > { %4415 = vmatmul.mubr.msk.bf16.vlgmr.msra.gmra.mrb[60].mxu1 %vm827_vm1, %v2372_v34 }
 0x951   : > { %4426 = vmatprep.mubr.msk.bf16.mxu1 %vm4775_vm0, %v4774_v58 }
 0x9d6   : > { %v5355_v13 = vpop.f32.mrb[48].mxu0  ;;  %v5357_v44 = vpop.f32.mrb[48].mxu1 }
 0x9d7   : > { %v4374_v60 = vpop.f32.mrb[49].mxu0  ;;  %v4380_v40 = vpop.f32.mrb[49].mxu1 }
 0x9d8   : > { %v5359_v53 = vpop.f32.mrb[50].mxu0  ;;  %v5361_v45 = vpop.f32.mrb[50].mxu1 }
 0x9d9   : > { %v4506_v47 = vpack.i.bf16 %v5359_v53, %v5355_v13  ;;  %v4511_v59 = vpack.i.bf16 %v5361_v45, %v5357_v44  ;;  %v4375_v3 = vpop.f32.mrb[51].mxu0  ;;  %v4381_v29 = vpop.f32.mrb[51].mxu1 }
 0x9de   : > { %v5367_v57 = vpop.f32.mrb[52].mxu0 }
 0x9df   : > { %v4386_v4 = vpop.f32.mrb[53].mxu0 }
 0x9e0   : > { %v5369_v0 = vpop.f32.mrb[54].mxu0 }
 0x9e1   : > { %v4536_v8 = vpack.i.bf16 %v5369_v0, %v5367_v57  ;;  %v4387_v9 = vpop.f32.mrb[55].mxu0 }
 0x9e7   : > { %v2267_v14 = vpop.f32.mrb[56].mxu0 }
 0x9e8   : > { %v4398_v16 = vpop.f32.mrb[57].mxu0  ;;  %v2417_v15 = vsel %vm1010_vm2, %v2267_v14, -inf }
 0x9e9   : > { %2418 = vmax.xlane.f32.xlu0 %v2417_v15  ;;  %v2270_v33 = vpop.f32.mrb[58].mxu0 }
 0x9ea   : > { %v4399_v24 = vpop.f32.mrb[59].mxu0  ;;  %v2420_v51 = vsel %vm1010_vm2, %v2270_v33, -inf }
 0x9eb   : > { %2421 = vmax.xlane.f32.xlu1 %v2420_v51 }
 0x9ef   : > { %v2364_v61 = vpop.f32.mrb[60].mxu0 }
 0x9f0   : > { %v4410_v43 = vpop.f32.mrb[61].mxu0  ;;  %v2429_v3 = vsel %vm1010_vm2, %v2364_v61, -inf }
 0x9f1   : > { %v2367_v12 = vpop.f32.mrb[62].mxu0 }
 0x9f2   : > { %v4411_v56 = vpop.f32.mrb[63].mxu0  ;;  %v2432_v5 = vsel %vm1010_vm2, %v2367_v12, -inf }
 0x9f3   : > { %2433 = vmax.xlane.f32.xlu1 %v2432_v5 }
 0xa13   : > { %v5376_v49 = vpop.f32.mrb[52].mxu1 }
 0xa14   : > { %v4392_v26 = vpop.f32.mrb[53].mxu1 }
 0xa15   : > { %v5378_v2 = vpop.f32.mrb[54].mxu1 }
 0xa16   : > { %v4541_v10 = vpack.i.bf16 %v5378_v2, %v5376_v49  ;;  %v4393_v37 = vpop.f32.mrb[55].mxu1 }
 0xa1b   : > { %v2318_v48 = vpop.f32.mrb[56].mxu1 }
 0xa1c   : > { %v4404_v11 = vpop.f32.mrb[57].mxu1  ;;  %v2423_v36 = vsel %vm1010_vm2, %v2318_v48, -inf }
 0xa1d   : > { %v2321_v6 = vpop.f32.mrb[58].mxu1  ;;  %2424 = vmax.xlane.f32.xlu0 %v2423_v36 }
 0xa1e   : > { %v4405_v32 = vpop.f32.mrb[59].mxu1  ;;  %v2426_v34 = vsel %vm1010_vm2, %v2321_v6, -inf }
 0xa21   : > { %2427 = vmax.xlane.f32.xlu0 %v2426_v34 }
 0xa23   : > { %v2410_v60 = vpop.f32.mrb[60].mxu1 }
 0xa24   : > { %v4416_v40 = vpop.f32.mrb[61].mxu1  ;;  %v2435_v16 = vsel %vm1010_vm2, %v2410_v60, -inf }
 0xa25   : > { %v2413_v29 = vpop.f32.mrb[62].mxu1  ;;  %2430 = vmax.xlane.f32.xlu0 %v2429_v3 }
 0xa26   : > { %v4417_v4 = vpop.f32.mrb[63].mxu1  ;;  %v2438_v9 = vsel %vm1010_vm2, %v2413_v29, -inf }
 0xa27   : > { %2439 = vmax.xlane.f32.xlu1 %v2438_v9 }
 0xa29   : > { %2436 = vmax.xlane.f32.xlu0 %v2435_v16 }
 0xa76   : > { %v2419_v15 = vpop.xlane.xlu0 %2418 }
 0xa77   : > { %v2441_v24 = vsub.f32 %v2267_v14, %v2419_v15 }
 0xa78   : > { %v2422_v51 = vpop.xlane.xlu1 %2421 }
 0xa79   : > { %v2449_v43 = vmul.f32 1.442695, %v2441_v24  ;;  %v2442_v56 = vsub.f32 %v2270_v33, %v2422_v51 }
 0xa7b   : > { %4708 = vpow2.f32 %v2449_v43  ;;  %v2451_v5 = vmul.f32 1.442695, %v2442_v56 }
 0xa7d   : > { %4710 = vpow2.f32 %v2451_v5 }
 0xa80   : > { %v2434_v32 = vpop.xlane.xlu1 %2433 }
 0xa81   : > { %v2446_v40 = vsub.f32 %v2367_v12, %v2434_v32 }
 0xa83   : > { %v2459_v9 = vmul.f32 1.442695, %v2446_v40 }
 0xa85   : > { %v5387_v26 = vpop.eup %4708 }
 0xa86   : > { %v2465_v37 = vsel %vm1010_vm2, %v5387_v26, 0.0 }
 0xa87   : > { %v5391_v11 = vpop.eup %4710  ;;  %2466 = vadd.xlane.f32.xlu0 %v2465_v37 }
 0xa88   : > { %v2468_v36 = vsel %vm1010_vm2, %v5391_v11, 0.0 }
 0xa89   : > { %2469 = vadd.xlane.f32.xlu1 %v2468_v36 }
 0xaaa   : > { %v2425_v14 = vpop.xlane.xlu0 %2424 }
 0xaab   : > { %v2443_v34 = vsub.f32 %v2318_v48, %v2425_v14 }
 0xaad   : > { %v2453_v33 = vmul.f32 1.442695, %v2443_v34 }
 0xaae   : > { %v2428_v3 = vpop.xlane.xlu0 %2427 }
 0xaaf   : > { %4712 = vpow2.f32 %v2453_v33  ;;  %v2444_v4 = vsub.f32 %v2321_v6, %v2428_v3 }
 0xab1   : > { %v2455_v16 = vmul.f32 1.442695, %v2444_v4 }
 0xab2   : > { %v2431_v15 = vpop.xlane.xlu0 %2430 }
 0xab3   : > { %4714 = vpow2.f32 %v2455_v16  ;;  %v2445_v24 = vsub.f32 %v2364_v61, %v2431_v15 }
 0xab4   : > { %v2440_v51 = vpop.xlane.xlu1 %2439  ;;  %4716 = vpow2.f32 %v2459_v9 }
 0xab5   : > { %v2457_v43 = vmul.f32 1.442695, %v2445_v24  ;;  %v2448_v56 = vsub.f32 %v2413_v29, %v2440_v51 }
 0xab6   : > { %v2437_v5 = vpop.xlane.xlu0 %2436 }
 0xab7   : > { %4718 = vpow2.f32 %v2457_v43  ;;  %v2463_v37 = vmul.f32 1.442695, %v2448_v56  ;;  %v2447_v36 = vsub.f32 %v2410_v60, %v2437_v5 }
 0xab9   : > { %v4713_v42 = vpop.eup %4712  ;;  %4720 = vpow2.f32 %v2463_v37  ;;  %v2461_v12 = vmul.f32 1.442695, %v2447_v36 }
 0xaba   : > { %v2471_v48 = vsel %vm1010_vm2, %v4713_v42, 0.0 }
 0xabb   : > { %4722 = vpow2.f32 %v2461_v12  ;;  %2472 = vadd.xlane.f32.xlu0 %v2471_v48 }
 0xabd   : > { %v4715_v6 = vpop.eup %4714 }
 0xabe   : > { %v2474_v32 = vsel %vm1010_vm2, %v4715_v6, 0.0  ;;  %v4717_v14 = vpop.eup %4716 }
 0xabf   : > { %2475 = vadd.xlane.f32.xlu1 %v2474_v32  ;;  %v2480_v29 = vsel %vm1010_vm2, %v4717_v14, 0.0  ;;  %v506_v32 = vld [vmem:[%s4830_s8 + $0x2c] sm:$0xf] }
 0xac1   : > { %v4719_v61 = vpop.eup %4718 }
 0xac2   : > { %v2477_v34 = vsel %vm1010_vm2, %v4719_v61, 0.0 }
 0xac3   : > { %v4721_v40 = vpop.eup %4720  ;;  %2478 = vadd.xlane.f32.xlu0 %v2477_v34  ;;  %2481 = vadd.xlane.f32.xlu1 %v2480_v29  ;;  %v509_v29 = vld [vmem:[%s4830_s8 + $0x8c] sm:$0xf] }
 0xac4   : > { %v2486_v3 = vsel %vm1010_vm2, %v4721_v40, 0.0 }
 0xac5   : > { %v4723_v60 = vpop.eup %4722 }
 0xac6   : > { %v2483_v33 = vsel %vm1010_vm2, %v4723_v60, 0.0 }
 0xac7   : > { %2484 = vadd.xlane.f32.xlu0 %v2483_v33  ;;  %2487 = vadd.xlane.f32.xlu1 %v2486_v3  ;;  %v511_v33 = vld [vmem:[%s4830_s8 + $0xcc] sm:$0xf] }
 0xac8   : > { %v512_v3 = vld [vmem:[%s4830_s8 + $0xec] sm:$0xf] }
 0xad8   : > { %2556 = vrot.lane.b32.xlu1 %v5042_v20, %s4778_s9 }
 0xadc   : > { %4497 = vrot.lane.b32.xlu1 %v4496_v23, %s4778_s9 }
 0xadd   : > { %2509 = vrot.lane.b32.xlu0 %v5033_v39, %s4778_s9 }
 0xae0   : > { %4502 = vrot.lane.b32.xlu1 %v4501_v41, %s4778_s9 }
 0xae1   : > { %4507 = vrot.lane.b32.xlu0 %v4506_v47, %s4777_s7 }
 0xae4   : > { %4512 = vrot.lane.b32.xlu1 %v4511_v59, %s4777_s7 }
 0xb14   : > { %v2467_v20 = vpop.xlane.xlu0 %2466 }
 0xb16   : > { %v2470_v18 = vpop.xlane.xlu1 %2469 }
 0xb17   : > { %4724 = vrcp.f32 %v2470_v18  ;;  %v513_v18 = vld [vmem:[%s4830_s8 + $0x10c] sm:$0xf] }
 0xb18   : > { %4726 = vrcp.f32 %v2467_v20  ;;  %v3983_v20 = vcombine.low %v511_v33, %v512_v3 }
 0xb21   : > { %v4725_v23 = vpop.eup %4724 }
 0xb22   : > { %v4727_v41 = vpop.eup %4726  ;;  %v2498_v44 = vmul.f32 %v4725_v23, %v5391_v11 }
 0xb23   : > { %v2497_v59 = vmul.f32 %v4727_v41, %v5387_v26  ;;  %v517_v41 = vld [vmem:[%s4830_s8 + $0x18c] sm:$0xf] }
 0xb25   : > { %v2505_v24 = vpack.c.bf16 %v2498_v44, %v2497_v59  ;;  %v520_v44 = vld [vmem:[%s4830_s8 + $0x1ec] sm:$0xf] }
 0xb48   : > { %v2473_v17 = vpop.xlane.xlu0 %2472 }
 0xb49   : > { %4728 = vrcp.f32 %v2473_v17  ;;  %v514_v17 = vld [vmem:[%s4830_s8 + $0x12c] sm:$0xf] }
 0xb4c   : > { %v2476_v39 = vpop.xlane.xlu1 %2475 }
 0xb4d   : > { %4730 = vrcp.f32 %v2476_v39  ;;  %v3984_v39 = vcombine.low %v513_v18, %v514_v17 }
 0xb50   : > { %v2479_v19 = vpop.xlane.xlu0 %2478  ;;  %v2482_v22 = vpop.xlane.xlu1 %2481 }
 0xb51   : > { %4732 = vrcp.f32 %v2479_v19  ;;  %v515_v19 = vld [vmem:[%s4830_s8 + $0x14c] sm:$0xf] }
 0xb52   : > { %4734 = vrcp.f32 %v2482_v22  ;;  %v516_v22 = vld [vmem:[%s4830_s8 + $0x16c] sm:$0xf] }
 0xb53   : > { %v4729_v47 = vpop.eup %4728  ;;  %v3985_v23 = vcombine.low %v515_v19, %v516_v22 }
 0xb54   : > { %v2485_v13 = vpop.xlane.xlu0 %2484  ;;  %v2488_v53 = vpop.xlane.xlu1 %2487  ;;  %v2499_v4 = vmul.f32 %v4729_v47, %v4713_v42  ;;  %v519_v47 = vld [vmem:[%s4830_s8 + $0x1cc] sm:$0xf] }
 0xb55   : > { %4736 = vrcp.f32 %v2485_v13  ;;  %v518_v13 = vld [vmem:[%s4830_s8 + $0x1ac] sm:$0xf] }
 0xb56   : > { %4738 = vrcp.f32 %v2488_v53  ;;  %v3986_v53 = vcombine.low %v517_v41, %v518_v13 }
 0xb57   : > { %v4731_v45 = vpop.eup %4730 }
 0xb58   : > { %v2500_v9 = vmul.f32 %v4731_v45, %v4715_v6  ;;  %v2510_v16 = vpop.permute.xlu0 %2509  ;;  %v2557_v15 = vpop.permute.xlu1 %2556  ;;  %v505_v6 = vld [vmem:[%s4830_s8 + $0xc] sm:$0xf]  ;;  %v3987_v45 = vcombine.low %v519_v47, %v520_v44 }
 0xb59   : > { %4419 = vmatpush3.bf16.msra.mxu0 %v2510_v16  ;;  %4425 = vmatpush3.bf16.msra.mxu1 %v2557_v15 }
 0xb5a   : > { %4430 = vmatprep.subr.bf16.mxu0 %v4774_v58  ;;  %v2506_v51 = vpack.c.bf16 %v2500_v9, %v2499_v4  ;;  %4436 = vmatprep.subr.bf16.mxu1 %v4774_v58 }
 0xb5b   : > { %v4733_v43 = vpop.eup %4732 }
 0xb5c   : > { %v4735_v56 = vpop.eup %4734  ;;  %4421 = vmatmul.mubr.msk.bf16.vlgmr.msra.gmra.mrb[64].mxu0 %vm1010_vm2, %v2505_v24  ;;  %4427 = vmatmul.mubr.msk.bf16.vlgmr.msra.gmra.mrb[64].mxu1 %vm1010_vm2, %v2506_v51  ;;  %v2501_v42 = vmul.f32 %v4733_v43, %v4719_v61  ;;  %v508_v61 = vld [vmem:[%s4830_s8 + $0x6c] sm:$0xf]  ;;  %v4498_v25 = vpop.permute.xlu1 %4497 }
 0xb5d   : > { %4431 = vmatpush3.bf16.msra.mxu0 %v2510_v16  ;;  %4437 = vmatpush3.bf16.msra.mxu1 %v2557_v15  ;;  %v2502_v26 = vmul.f32 %v4735_v56, %v4717_v14  ;;  %v3980_v14 = vcombine.low %v505_v6, %v506_v32  ;;  %v4500_v35 = vunpack.i.h.bf16 %v4498_v25  ;;  %v4499_v30 = vunpack.i.l.bf16 %v4498_v25 }
 0xb5e   : > { %4432 = vmatprep.mubr.msk.bf16.mxu0 %vm4775_vm0, %v4774_v58  ;;  %4438 = vmatprep.mubr.msk.bf16.mxu1 %vm4775_vm0, %v4774_v58  ;;  %v507_v58 = vld [vmem:[%s4830_s8 + $0x4c] sm:$0xf] }
 0xb5f   : > { %v4737_v11 = vpop.eup %4736  ;;  %v2507_v12 = vpack.c.bf16 %v2502_v26, %v2501_v42  ;;  %v3981_v34 = vcombine.low %v507_v58, %v508_v61  ;;  %4442 = vmatprep.subr.bf16.mxu0 %v3980_v14  ;;  %v2788_v57 = vsel %vm827_vm1, %v5145_v63, %v4500_v35  ;;  %v2787_v0 = vsel %vm827_vm1, %v5143_v38, %v4499_v30  ;;  %v5505_v30 = vld [vmem:[%s4820_s25] sm:$0xff] }
 0xb60   : > { %v4739_v5 = vpop.eup %4738  ;;  %v2503_v37 = vmul.f32 %v4737_v11, %v4723_v60  ;;  %v4503_v27 = vpop.permute.xlu1 %4502  ;;  %v2819_v35 = vsub.s32 7, %v4967_v21 }
 0xb61   : > { %v2504_v36 = vmul.f32 %v4739_v5, %v4721_v40  ;;  %v510_v40 = vld [vmem:[%s4830_s8 + $0xac] sm:$0xf]  ;;  %v4504_v61 = vunpack.i.l.bf16 %v4503_v27 }
 0xb62   : > { %v3982_v60 = vcombine.low %v509_v29, %v510_v40 }
 0xb63   : > { %v2508_v48 = vpack.c.bf16 %v2504_v36, %v2503_v37  ;;  %v2789_v29 = vsel %vm827_vm1, %v5147_v46, %v4504_v61 }
 0xb64   : > { %4433 = vmatmul.mubr.msk.bf16.vlgmr.msra.gmra.mrb[68].mxu0 %vm1010_vm2, %v2507_v12 }
 0xb65   : > { %4439 = vmatmul.mubr.msk.bf16.vlgmr.msra.gmra.mrb[68].mxu1 %vm1010_vm2, %v2508_v48  ;;  %4443 = vmatpush3.bf16.msra.mxu0 %v3980_v14  ;;  %v4505_v14 = vunpack.i.h.bf16 %v4503_v27 }
 0xb66   : > { %3272 = vmatprep.mubr.bf16.mxu1 %v4773_v62  ;;  %4444 = vmatprep.subr.bf16.mxu0 %v3981_v34 }
 0xb69   : > { %4445 = vmatpush3.bf16.msra.mxu0 %v3981_v34 }
 0xb6a   : > { %4446 = vmatprep.subr.bf16.mxu0 %v3982_v60 }
 0xb6d   : > { %4447 = vmatpush3.bf16.msra.mxu0 %v3982_v60 }
 0xb6e   : > { %4448 = vmatprep.subr.bf16.mxu0 %v3983_v20 }
 0xb71   : > { %4449 = vmatpush3.bf16.msra.mxu0 %v3983_v20 }
 0xb72   : > { %4450 = vmatprep.subr.bf16.mxu0 %v3984_v39 }
 0xb75   : > { %4451 = vmatpush3.bf16.msra.mxu0 %v3984_v39 }
 0xb76   : > { %4452 = vmatprep.subr.bf16.mxu0 %v3985_v23 }
 0xb79   : > { %4453 = vmatpush3.bf16.msra.mxu0 %v3985_v23 }
 0xb7a   : > { %4454 = vmatprep.subr.bf16.mxu0 %v3986_v53 }
 0xb7d   : > { %4455 = vmatpush3.bf16.msra.mxu0 %v3986_v53 }
 0xb7e   : > { %4456 = vmatprep.subr.bf16.mxu0 %v3987_v45 }
 0xb81   : > { %4457 = vmatpush3.bf16.msra.mxu0 %v3987_v45 }
 0xc2f   : > { %v2549_v59 = vpop.f32.mrb[64].mxu0  ;;  %v2596_v4 = vpop.f32.mrb[64].mxu1 }
 0xc30   : > { %v4422_v9 = vpop.f32.mrb[65].mxu0  ;;  %v4428_v16 = vpop.f32.mrb[65].mxu1 }
 0xc31   : > { %v2552_v15 = vpop.f32.mrb[66].mxu0  ;;  %v2599_v24 = vpop.f32.mrb[66].mxu1 }
 0xc32   : > { %v4516_v51 = vpack.i.bf16 %v2552_v15, %v2549_v59  ;;  %v4521_v43 = vpack.i.bf16 %v2599_v24, %v2596_v4  ;;  %v4423_v56 = vpop.f32.mrb[67].mxu0  ;;  %v4429_v42 = vpop.f32.mrb[67].mxu1 }
 0xc34   : > { %4522 = vrot.lane.b32.xlu1 %v4521_v43, %s4776_s6  ;;  %4517 = vrot.lane.b32.xlu0 %v4516_v51, %s4776_s6 }
 0xc37   : > { %v2640_v26 = vpop.f32.mrb[68].mxu0 }
 0xc38   : > { %v2684_v11 = vpop.f32.mrb[68].mxu1  ;;  %4532 = vrot.lane.b32.xlu1 %v4531_v31, %s4778_s9  ;;  %4527 = vrot.lane.b32.xlu0 %v4526_v55, %s4778_s9  ;;  %v4434_v5 = vpop.f32.mrb[69].mxu0 }
 0xc39   : > { %v4440_v37 = vpop.f32.mrb[69].mxu1  ;;  %v2643_v36 = vpop.f32.mrb[70].mxu0 }
 0xc3a   : > { %v4546_v12 = vpack.i.bf16 %v2643_v36, %v2640_v26  ;;  %v2687_v48 = vpop.f32.mrb[70].mxu1  ;;  %v4435_v6 = vpop.f32.mrb[71].mxu0 }
 0xc3b   : > { %v4551_v32 = vpack.i.bf16 %v2687_v48, %v2684_v11  ;;  %v4441_v58 = vpop.f32.mrb[71].mxu1  ;;  %v4508_v55 = vpop.permute.xlu0 %4507 }
 0xc3c   : > { %4542 = vrot.lane.b32.xlu1 %v4541_v10, %s4777_s7  ;;  %4537 = vrot.lane.b32.xlu0 %v4536_v8, %s4777_s7  ;;  %v4513_v31 = vpop.permute.xlu1 %4512  ;;  %v4510_v34 = vunpack.i.h.bf16 %v4508_v55  ;;  %v4509_v49 = vunpack.i.l.bf16 %v4508_v55  ;;  %v2790_v8 = vsel %vm827_vm1, %v5149_v50, %v4505_v14 }
 0xc3d   : > { %v4515_v2 = vunpack.i.h.bf16 %v4513_v31  ;;  %v4514_v10 = vunpack.i.l.bf16 %v4513_v31  ;;  %v2820_v31 = vrot.slane %v5505_v30, %v2819_v35 }
 0xc3e   : > { %v2796_v38 = vsel %vm2795_vm3, %v2787_v0, %v4509_v49  ;;  %v2797_v39 = vsel %vm2795_vm3, %v2788_v57, %v4510_v34  ;;  %v4757_v57 = vld [vmem:[#allocation2] sm:$0xff] }
 0xc3f   : > { %v2798_v17 = vsel %vm2795_vm3, %v2789_v29, %v4514_v10  ;;  %v2799_v63 = vsel %vm2795_vm3, %v2790_v8, %v4515_v2  ;;  %v4758_v29 = vld [vmem:[#allocation2 + $0x8] sm:$0xff] }
 0xc40   : > { %4552 = vrot.lane.b32.xlu1 %v4551_v32, %s4776_s6  ;;  %4547 = vrot.lane.b32.xlu0 %v4546_v12, %s4776_s6 }
 0xca6   : > { %v4523_v40 = vpop.permute.xlu1 %4522  ;;  %v4518_v60 = vpop.permute.xlu0 %4517 }
 0xca7   : > { %v4525_v33 = vunpack.i.h.bf16 %v4523_v40  ;;  %v4524_v3 = vunpack.i.l.bf16 %v4523_v40  ;;  %v4520_v20 = vunpack.i.h.bf16 %v4518_v60  ;;  %v4519_v18 = vunpack.i.l.bf16 %v4518_v60  ;;  %v4759_v60 = vld [vmem:[#allocation2 + $0x10] sm:$0xff] }
 0xca9   : > { %v2807_v50 = vsel %vm2804_vm4, %v2798_v17, %v4524_v3  ;;  %v2808_v19 = vsel %vm2804_vm4, %v2799_v63, %v4525_v33  ;;  %v2805_v46 = vsel %vm2804_vm4, %v2796_v38, %v4519_v18  ;;  %v2806_v22 = vsel %vm2804_vm4, %v2797_v39, %v4520_v20  ;;  %v4760_v20 = vld [vmem:[#allocation2 + $0x18] sm:$0xff] }
 0xcaa   : > { %v2814_v23 = vpack.c.bf16 %v2808_v19, %v2807_v50  ;;  %v4533_v41 = vpop.permute.xlu1 %4532  ;;  %v4528_v13 = vpop.permute.xlu0 %4527  ;;  %v2813_v53 = vpack.c.bf16 %v2806_v22, %v2805_v46  ;;  %v4761_v46 = vld [vmem:[#allocation2 + $0x20] sm:$0xff] }
 0xcab   : > { %v4535_v47 = vunpack.i.h.bf16 %v4533_v41  ;;  %v4534_v44 = vunpack.i.l.bf16 %v4533_v41  ;;  %v4530_v45 = vunpack.i.h.bf16 %v4528_v13  ;;  %v4529_v59 = vunpack.i.l.bf16 %v4528_v13  ;;  %v4762_v13 = vld [vmem:[#allocation2 + $0x28] sm:$0xff] }
 0xcac   : > { %4458 = vmatprep.mubr.bf16.mxu0 %v2813_v53 }
 0xcad   : > { %4459 = vmatmul.mubr.bf16.vlgmr.msra.gmra.mrb[72].mxu0 %v2814_v23  ;;  %v2794_v43 = vsel %vm827_vm1, %v5160_v7, %v4535_v47  ;;  %v2793_v56 = vsel %vm827_vm1, %v5157_v1, %v4534_v44  ;;  %v2792_v42 = vsel %vm827_vm1, %v5153_v54, %v4530_v45  ;;  %v2791_v26 = vsel %vm827_vm1, %v5151_v52, %v4529_v59  ;;  %v4763_v47 = vld [vmem:[#allocation2 + $0x30] sm:$0xff]  ;;  %v4764_v45 = vld [vmem:[#allocation2 + $0x38] sm:$0xff] }
 0xcae   : > { %v4543_v4 = vpop.permute.xlu1 %4542  ;;  %v4538_v9 = vpop.permute.xlu0 %4537 }
 0xcaf   : > { %v4545_v16 = vunpack.i.h.bf16 %v4543_v4  ;;  %v4544_v15 = vunpack.i.l.bf16 %v4543_v4  ;;  %v4540_v24 = vunpack.i.h.bf16 %v4538_v9  ;;  %v4539_v51 = vunpack.i.l.bf16 %v4538_v9  ;;  %v521_v4 = vld [vmem:[%s4830_s8 + $0x10] sm:$0xff] }
 0xcb0   : > { %v523_v9 = vld [vmem:[%s4830_s8 + $0x30] sm:$0xff] }
 0xcb1   : > { %v2802_v6 = vsel %vm2795_vm3, %v2793_v56, %v4544_v15  ;;  %v2803_v7 = vsel %vm2795_vm3, %v2794_v43, %v4545_v16  ;;  %v2800_v32 = vsel %vm2795_vm3, %v2791_v26, %v4539_v51  ;;  %v2801_v1 = vsel %vm2795_vm3, %v2792_v42, %v4540_v24  ;;  %v522_v16 = vld [vmem:[%s4830_s8 + $0x18] sm:$0xff]  ;;  %v525_v43 = vld [vmem:[%s4830_s8 + $0x50] sm:$0xff] }
 0xcb2   : > { %v4553_v11 = vpop.permute.xlu1 %4552  ;;  %v4548_v5 = vpop.permute.xlu0 %4547  ;;  %v3988_v15 = vcombine.low %v521_v4, %v523_v9  ;;  %v3989_v24 = vcombine.high %v521_v4, %v523_v9  ;;  %v524_v51 = vld [vmem:[%s4830_s8 + $0x38] sm:$0xff]  ;;  %v527_v56 = vld [vmem:[%s4830_s8 + $0x70] sm:$0xff] }
 0xcb3   : > { %v4555_v37 = vunpack.i.h.bf16 %v4553_v11  ;;  %v4554_v36 = vunpack.i.l.bf16 %v4553_v11  ;;  %v4550_v12 = vunpack.i.h.bf16 %v4548_v5  ;;  %v4549_v48 = vunpack.i.l.bf16 %v4548_v5  ;;  %v526_v5 = vld [vmem:[%s4830_s8 + $0x58] sm:$0xff] }
 0xcb4   : > { %v3990_v42 = vcombine.low %v522_v16, %v524_v51  ;;  %v3991_v26 = vcombine.high %v522_v16, %v524_v51  ;;  %v3993_v11 = vcombine.high %v525_v43, %v527_v56  ;;  %3240 = vmatprep.subr.bf16.mxu1 %v3989_v24  ;;  %v533_v24 = vld [vmem:[%s4830_s8 + $0xd0] sm:$0xff] }
 0xcb5   : > { %v2809_v54 = vsel %vm2804_vm4, %v2800_v32, %v4549_v48  ;;  %v2810_v58 = vsel %vm2804_vm4, %v2801_v1, %v4550_v12  ;;  %v2811_v52 = vsel %vm2804_vm4, %v2802_v6, %v4554_v36  ;;  %v2812_v25 = vsel %vm2804_vm4, %v2803_v7, %v4555_v37  ;;  %v528_v37 = vld [vmem:[%s4830_s8 + $0x78] sm:$0xff]  ;;  %3241 = vmatpush1.bf16.msra.mxu1 %v3988_v15  ;;  %v535_v51 = vld [vmem:[%s4830_s8 + $0xf0] sm:$0xff] }
 0xcb6   : > { %v2815_v27 = vpack.c.bf16 %v2810_v58, %v2809_v54  ;;  %v2816_v55 = vpack.c.bf16 %v2812_v25, %v2811_v52  ;;  %v3995_v36 = vcombine.high %v526_v5, %v528_v37  ;;  %3313 = vmatprep.subr.bf16.mxu0 %v3991_v26  ;;  %v3992_v12 = vcombine.low %v525_v43, %v527_v56  ;;  %v534_v43 = vld [vmem:[%s4830_s8 + $0xd8] sm:$0xff] }
 0xcb7   : > { %3314 = vmatpush1.bf16.msra.mxu0 %v3990_v42  ;;  %3242 = vmatprep.subr.bf16.mxu1 %v3993_v11  ;;  %v3994_v48 = vcombine.low %v526_v5, %v528_v37  ;;  %v4001_v56 = vcombine.high %v533_v24, %v535_v51  ;;  %v536_v42 = vld [vmem:[%s4830_s8 + $0xf8] sm:$0xff]  ;;  %v4000_v26 = vcombine.low %v533_v24, %v535_v51  ;;  %v537_v37 = vld [vmem:[%s4830_s8 + $0x110] sm:$0xff] }
 0xcb8   : > { %4462 = vmatprep.mubr.bf16.mxu0 %v2815_v27  ;;  %3315 = vmatprep.subr.bf16.mxu0 %v3995_v36  ;;  %v4002_v11 = vcombine.low %v534_v43, %v536_v42  ;;  %v4003_v5 = vcombine.high %v534_v43, %v536_v42  ;;  %v539_v36 = vld [vmem:[%s4830_s8 + $0x130] sm:$0xff] }
 0xcb9   : > { %4463 = vmatmul.mubr.bf16.gmra.mrb[76].mxu0 %v2816_v55  ;;  %3243 = vmatpush1.bf16.msra.mxu1 %v3992_v12  ;;  %v538_v12 = vld [vmem:[%s4830_s8 + $0x118] sm:$0xff] }
 0xcba   : > { %3345 = vmatprep.mubr.bf16.mxu0 %v4773_v62 }
 0xcbb   : > { %3316 = vmatpush1.bf16.msra.mxu0 %v3994_v48  ;;  %v4005_v48 = vcombine.high %v537_v37, %v539_v36 }
 0xd80   : > { %v4460_v14 = vpop.f32.mrb[72].mxu0 }
 0xd81   : > { %v2903_v61 = vpop.f32.mrb[73].mxu0  ;;  %v2912_v10 = vadd.f32 %v4460_v14, %v2820_v31 }
 0xd82   : > { %v2904_v34 = vadd.f32 %v2903_v61, %v2820_v31  ;;  %v4461_v49 = vpop.f32.mrb[74].mxu0 }
 0xd83   : > { %v2906_v2 = vpop.f32.mrb[75].mxu0  ;;  %v5513_v33 = vadd.f32 %v4759_v60, %v2912_v10  ;;  %v2915_v3 = vadd.f32 %v4461_v49, %v2820_v31 }
 0xd84   : > { %v5508_v0 = vadd.f32 %v4757_v57, %v2904_v34  ;;  %v2907_v8 = vadd.f32 %v2906_v2, %v2820_v31 }
 0xd85   : > { %v5517_v18 = vadd.f32 %v4760_v20, %v2915_v3 }
 0xd86   : > { %v5510_v40 = vadd.f32 %v4758_v29, %v2907_v8  ;;  %2942 = vadd.xlane.f32.xlu0 %v5508_v0 }
 0xd88   : > { %2944 = vadd.xlane.f32.xlu1 %v5510_v40 }
 0xd8a   : > { %2946 = vadd.xlane.f32.xlu0 %v5513_v33 }
 0xd8c   : > { %v4464_v17 = vpop.f32.mrb[76].mxu0 }
 0xd8d   : > { %v2919_v63 = vpop.f32.mrb[77].mxu0  ;;  %v2928_v19 = vadd.f32 %v4464_v17, %v2820_v31 }
 0xd8e   : > { %v2920_v38 = vadd.f32 %v2919_v63, %v2820_v31  ;;  %v4465_v39 = vpop.f32.mrb[78].mxu0  ;;  %2948 = vadd.xlane.f32.xlu0 %v5517_v18 }
 0xd8f   : > { %v2922_v50 = vpop.f32.mrb[79].mxu0  ;;  %v2931_v41 = vadd.f32 %v4465_v39, %v2820_v31  ;;  %v5525_v44 = vadd.f32 %v4763_v47, %v2928_v19  ;;  %v529_v19 = vld [vmem:[%s4830_s8 + $0x90] sm:$0xff] }
 0xd90   : > { %v5520_v22 = vadd.f32 %v4761_v46, %v2920_v38  ;;  %v2923_v23 = vadd.f32 %v2922_v50, %v2820_v31  ;;  %v531_v46 = vld [vmem:[%s4830_s8 + $0xb0] sm:$0xff] }
 0xd91   : > { %v5528_v59 = vadd.f32 %v4764_v45, %v2931_v41  ;;  %v3997_v47 = vcombine.high %v529_v19, %v531_v46  ;;  %v532_v45 = vld [vmem:[%s4830_s8 + $0xb8] sm:$0xff]  ;;  %v3996_v4 = vcombine.low %v529_v19, %v531_v46 }
 0xd92   : > { %v5522_v53 = vadd.f32 %v4762_v13, %v2923_v23  ;;  %2950 = vadd.xlane.f32.xlu0 %v5520_v22  ;;  %v530_v23 = vld [vmem:[%s4830_s8 + $0x98] sm:$0xff] }
 0xd93   : > { %v3998_v9 = vcombine.low %v530_v23, %v532_v45  ;;  %v3999_v16 = vcombine.high %v530_v23, %v532_v45  ;;  %3244 = vmatprep.subr.bf16.mxu1 %v3997_v47  ;;  %v550_v19 = vld [vmem:[%s4830_s8 + $0x1d8] sm:$0xff] }
 0xd94   : > { %2952 = vadd.xlane.f32.xlu1 %v5522_v53  ;;  %3245 = vmatpush1.bf16.msra.mxu1 %v3996_v4  ;;  %v552_v23 = vld [vmem:[%s4830_s8 + $0x1f8] sm:$0xff]  ;;  %v4556_v4 = vld [vmem:[%s4835_s11 + $0x40] sm:$0xff]  }
 0xd95   : > { %3317 = vmatprep.subr.bf16.mxu0 %v3999_v16  ;;  %3246 = vmatprep.subr.bf16.mxu1 %v4001_v56  ;;  %v4018_v47 = vcombine.low %v550_v19, %v552_v23  ;;  %v4019_v45 = vcombine.high %v550_v19, %v552_v23  ;;  %v4558_v23 = vld [vmem:[%s4835_s11] sm:$0xff]  }
 0xd96   : > { %2954 = vadd.xlane.f32.xlu0 %v5525_v44  ;;  %3318 = vmatpush1.bf16.msra.mxu0 %v3998_v9  ;;  %v5606_v9 = vld [vmem:[%s4835_s11 + $0xc0] sm:$0xff]  }
 0xd97   : > { %3319 = vmatprep.subr.bf16.mxu0 %v4003_v5 }
 0xd98   : > { %2956 = vadd.xlane.f32.xlu1 %v5528_v59  ;;  %3247 = vmatpush1.bf16.msra.mxu1 %v4000_v26 }
 0xd99   : > { %3248 = vmatprep.subr.bf16.mxu1 %v4005_v48 }
 0xd9a   : > { %3320 = vmatpush1.bf16.msra.mxu0 %v4002_v11 }
 0xe13   : > { %v2943_v6 = vpop.xlane.xlu0 %2942 }
 0xe14   : > { %v2958_v7 = vmul.f32 0.0078125, %v2943_v6  ;;  %v540_v6 = vld [vmem:[%s4830_s8 + $0x138] sm:$0xff] }
 0xe15   : > { %v2945_v32 = vpop.xlane.xlu1 %2944 }
 0xe16   : > { %v5541_v1 = vsub.f32 %v5508_v0, %v2958_v7  ;;  %v2959_v54 = vmul.f32 0.0078125, %v2945_v32  ;;  %v4004_v7 = vcombine.low %v537_v37, %v539_v36  ;;  %v4006_v32 = vcombine.low %v538_v12, %v540_v6 }
 0xe17   : > { %v2947_v58 = vpop.xlane.xlu0 %2946  ;;  %v3032_v36 = vsub.s32 2, %v4967_v21 }
 0xe18   : > { %v5544_v52 = vsub.f32 %v5510_v40, %v2959_v54  ;;  %v2960_v25 = vmul.f32 0.0078125, %v2947_v58  ;;  %v2974_v27 = vmul.f32 %v5541_v1, %v5541_v1  ;;  %v4007_v54 = vcombine.high %v538_v12, %v540_v6  ;;  %3249 = vmatpush1.bf16.msra.mxu1 %v4004_v7  ;;  %v541_v58 = vld [vmem:[%s4830_s8 + $0x150] sm:$0xff] }
 0xe1a   : > { %v5549_v55 = vsub.f32 %v5513_v33, %v2960_v25  ;;  %2982 = vadd.xlane.f32.xlu0 %v2974_v27  ;;  %v2975_v35 = vmul.f32 %v5544_v52, %v5544_v52  ;;  %3321 = vmatprep.subr.bf16.mxu0 %v4007_v54  ;;  %v543_v25 = vld [vmem:[%s4830_s8 + $0x170] sm:$0xff]  ;;  %v542_v27 = vld [vmem:[%s4830_s8 + $0x158] sm:$0xff]  ;;  %v3044_v54 = vsub.s32 3, %v4967_v21 }
 0xe1b   : > { %v2949_v31 = vpop.xlane.xlu0 %2948  ;;  %3322 = vmatpush1.bf16.msra.mxu0 %v4006_v32  ;;  %v5613_v32 = vrot.slane %v5505_v30, %v3032_v36 }
 0xe1c   : > { %v2961_v14 = vmul.f32 0.0078125, %v2949_v31  ;;  %2984 = vadd.xlane.f32.xlu1 %v2975_v35  ;;  %v2976_v61 = vmul.f32 %v5549_v55, %v5549_v55  ;;  %v4009_v35 = vcombine.high %v541_v58, %v543_v25  ;;  %v544_v31 = vld [vmem:[%s4830_s8 + $0x178] sm:$0xff] }
 0xe1e   : > { %v5556_v34 = vsub.f32 %v5517_v18, %v2961_v14  ;;  %2986 = vadd.xlane.f32.xlu0 %v2976_v61  ;;  %v4008_v14 = vcombine.low %v541_v58, %v543_v25  ;;  %v4010_v61 = vcombine.low %v542_v27, %v544_v31  ;;  %3250 = vmatprep.subr.bf16.mxu1 %v4009_v35 }
 0xe1f   : > { %v2951_v49 = vpop.xlane.xlu0 %2950 }
 0xe20   : > { %v2962_v2 = vmul.f32 0.0078125, %v2951_v49  ;;  %v2977_v10 = vmul.f32 %v5556_v34, %v5556_v34  ;;  %v4011_v49 = vcombine.high %v542_v27, %v544_v31  ;;  %3251 = vmatpush1.bf16.msra.mxu1 %v4008_v14 }
 0xe21   : > { %v2953_v57 = vpop.xlane.xlu1 %2952 }
 0xe22   : > { %v5561_v8 = vsub.f32 %v5520_v22, %v2962_v2  ;;  %v2963_v29 = vmul.f32 0.0078125, %v2953_v57  ;;  %2988 = vadd.xlane.f32.xlu1 %v2977_v10  ;;  %3323 = vmatprep.subr.bf16.mxu0 %v4011_v49  ;;  %v545_v2 = vld [vmem:[%s4830_s8 + $0x190] sm:$0xff]  ;;  %v546_v57 = vld [vmem:[%s4830_s8 + $0x198] sm:$0xff] }
 0xe23   : > { %v2955_v60 = vpop.xlane.xlu0 %2954  ;;  %v547_v10 = vld [vmem:[%s4830_s8 + $0x1b0] sm:$0xff]  ;;  %3324 = vmatpush1.bf16.msra.mxu0 %v4010_v61 }
 0xe24   : > { %v5564_v3 = vsub.f32 %v5522_v53, %v2963_v29  ;;  %v2964_v20 = vmul.f32 0.0078125, %v2955_v60  ;;  %v2978_v17 = vmul.f32 %v5561_v8, %v5561_v8  ;;  %v4013_v29 = vcombine.high %v545_v2, %v547_v10  ;;  %v548_v60 = vld [vmem:[%s4830_s8 + $0x1b8] sm:$0xff] }
 0xe25   : > { %v2957_v63 = vpop.xlane.xlu1 %2956 }
 0xe26   : > { %v5569_v38 = vsub.f32 %v5525_v44, %v2964_v20  ;;  %v2965_v39 = vmul.f32 0.0078125, %v2957_v63  ;;  %2990 = vadd.xlane.f32.xlu0 %v2978_v17  ;;  %v2979_v50 = vmul.f32 %v5564_v3, %v5564_v3  ;;  %v4012_v20 = vcombine.low %v545_v2, %v547_v10  ;;  %3252 = vmatprep.subr.bf16.mxu1 %v4013_v29 }
 0xe27   : > { %v4014_v17 = vcombine.low %v546_v57, %v548_v60  ;;  %v4015_v63 = vcombine.high %v546_v57, %v548_v60  ;;  %v5622_v29 = vrot.slane %v5505_v30, %v3044_v54 }
 0xe28   : > { %v5577_v41 = vsub.f32 %v5528_v59, %v2965_v39  ;;  %2992 = vadd.xlane.f32.xlu1 %v2979_v50  ;;  %v2980_v13 = vmul.f32 %v5569_v38, %v5569_v38  ;;  %3253 = vmatpush1.bf16.msra.mxu1 %v4012_v20  ;;  %v549_v39 = vld [vmem:[%s4830_s8 + $0x1d0] sm:$0xff] }
 0xe29   : > { %3325 = vmatprep.subr.bf16.mxu0 %v4015_v63  ;;  %v551_v50 = vld [vmem:[%s4830_s8 + $0x1f0] sm:$0xff] }
 0xe2a   : > { %2994 = vadd.xlane.f32.xlu0 %v2980_v13  ;;  %v2981_v15 = vmul.f32 %v5577_v41, %v5577_v41  ;;  %3326 = vmatpush1.bf16.msra.mxu0 %v4014_v17  ;;  %v4017_v46 = vcombine.high %v549_v39, %v551_v50  ;;  %v4016_v13 = vcombine.low %v549_v39, %v551_v50 }
 0xe2b   : > { %3327 = vmatprep.subr.bf16.mxu0 %v4019_v45  ;;  %v5635_v45 = vld [vmem:[%s4835_s11 + $0xc8] sm:$0xff]  }
 0xe2c   : > { %2996 = vadd.xlane.f32.xlu1 %v2981_v15  ;;  %3254 = vmatprep.subr.bf16.mxu1 %v4017_v46 }
 0xe2d   : > { %3255 = vmatpush1.bf16.msra.mxu1 %v4016_v13  ;;  %v5631_v13 = vld [vmem:[%s4835_s11 + $0x80] sm:$0xff]  }
 0xe2e   : > { %3328 = vmatpush1.bf16.msra.mxu0 %v4018_v47  ;;  %4146 = vmatprep.subr.bf16.mxu1 %v4556_v4  ;;  %v4560_v47 = vld [vmem:[%s4835_s11 + $0x48] sm:$0xff]  }
 0xe2f   : > { %4186 = vmatprep.subr.bf16.mxu0 %v5606_v9 }
 0xea7   : > { %v2983_v16 = vpop.xlane.xlu0 %2982 }
 0xea8   : > { %v2998_v15 = vmul.f32 0.0078125, %v2983_v16 }
 0xea9   : > { %v2985_v24 = vpop.xlane.xlu1 %2984 }
 0xeaa   : > { %v3006_v51 = vadd.f32 1e-05, %v2998_v15  ;;  %v2999_v43 = vmul.f32 0.0078125, %v2985_v24  ;;  %v4562_v15 = vld [vmem:[%s4835_s11 + $0x8] sm:$0xff]  }
 0xeab   : > { %v2987_v56 = vpop.xlane.xlu0 %2986  ;;  %v5645_v24 = vld [vmem:[%s4835_s11 + $0x88] sm:$0xff]  }
 0xeac   : > { %4740 = vrsqrt.f32 %v3006_v51  ;;  %v3007_v42 = vadd.f32 1e-05, %v2999_v43  ;;  %v3000_v26 = vmul.f32 0.0078125, %v2987_v56  ;;  %v4564_v43 = vld [vmem:[%s4835_s11 + $0x50] sm:$0xff]  }
 0xead   : > { %v5650_v56 = vld [vmem:[%s4835_s11 + $0xd0] sm:$0xff]  }
 0xeae   : > { %4742 = vrsqrt.f32 %v3007_v42  ;;  %v3008_v11 = vadd.f32 1e-05, %v3000_v26 }
 0xeaf   : > { %v2989_v5 = vpop.xlane.xlu1 %2988 }
 0xeb0   : > { %4744 = vrsqrt.f32 %v3008_v11  ;;  %v3001_v37 = vmul.f32 0.0078125, %v2989_v5 }
 0xeb2   : > { %v3009_v12 = vadd.f32 1e-05, %v3001_v37 }
 0xeb3   : > { %v2991_v48 = vpop.xlane.xlu0 %2990 }
 0xeb4   : > { %4746 = vrsqrt.f32 %v3009_v12  ;;  %v3002_v6 = vmul.f32 0.0078125, %v2991_v48  ;;  %v4566_v12 = vld [vmem:[%s4835_s11 + $0x10] sm:$0xff]  }
 0xeb5   : > { %v2993_v7 = vpop.xlane.xlu1 %2992  ;;  %v5659_v48 = vld [vmem:[%s4835_s11 + $0x90] sm:$0xff]  }
 0xeb6   : > { %v4741_v58 = vpop.eup %4740  ;;  %v3010_v25 = vadd.f32 1e-05, %v3002_v6  ;;  %v3003_v27 = vmul.f32 0.0078125, %v2993_v7  ;;  %v4568_v7 = vld [vmem:[%s4835_s11 + $0x58] sm:$0xff]  }
 0xeb7   : > { %v3022_v35 = vmul.f32 %v4741_v58, %v5541_v1  ;;  %v2995_v31 = vpop.xlane.xlu0 %2994 }
 0xeb8   : > { %v4743_v14 = vpop.eup %4742  ;;  %4748 = vrsqrt.f32 %v3010_v25  ;;  %v3011_v61 = vadd.f32 1e-05, %v3003_v27  ;;  %v3004_v49 = vmul.f32 0.0078125, %v2995_v31  ;;  %v5674_v31 = vld [vmem:[%s4835_s11 + $0x98] sm:$0xff]  }
 0xeb9   : > { %v3023_v2 = vmul.f32 %v4743_v14, %v5544_v52  ;;  %v2997_v10 = vpop.xlane.xlu1 %2996  ;;  %v3034_v57 = vmul.f32 %v5613_v32, %v3022_v35  ;;  %v4570_v35 = vld [vmem:[%s4835_s11 + $0x18] sm:$0xff]   ;;  %v4572_v14 = vld [vmem:[%s4835_s11 + $0x60] sm:$0xff]  }
 0xeba   : > { %v4745_v60 = vpop.eup %4744  ;;  %4750 = vrsqrt.f32 %v3011_v61  ;;  %v3005_v1 = vmul.f32 0.0078125, %v2997_v10  ;;  %v3012_v17 = vadd.f32 1e-05, %v3004_v49  ;;  %v5679_v61 = vld [vmem:[%s4835_s11 + $0xe0] sm:$0xff]  }
 0xebb   : > { %v3035_v20 = vmul.f32 %v5613_v32, %v3023_v2  ;;  %v3046_v52 = vadd.f32 %v5622_v29, %v3034_v57  ;;  %v3024_v50 = vmul.f32 %v4745_v60, %v5549_v55  ;;  %v4574_v57 = vld [vmem:[%s4835_s11 + $0x20] sm:$0xff]  }
 0xebc   : > { %v3013_v63 = vadd.f32 1e-05, %v3005_v1  ;;  %v5687_v60 = vld [vmem:[%s4835_s11 + $0xa0] sm:$0xff]   ;;  %v4576_v1 = vld [vmem:[%s4835_s11 + $0x68] sm:$0xff]  }
 0xebd   : > { %v3047_v39 = vadd.f32 %v5622_v29, %v3035_v20  ;;  %v3036_v55 = vmul.f32 %v5613_v32, %v3024_v50  ;;  %v5692_v20 = vld [vmem:[%s4835_s11 + $0xe8] sm:$0xff]   ;;  %v5708_v50 = vld [vmem:[%s4835_s11 + $0xf0] sm:$0xff]  }
 0xebe   : > { %v4747_v19 = vpop.eup %4746  ;;  %4752 = vrsqrt.f32 %v3013_v63 }
 0xebf   : > { %v3054_v46 = vpack.c.bf16 %v3047_v39, %v3046_v52  ;;  %v3025_v30 = vmul.f32 %v4747_v19, %v5556_v34  ;;  %4754 = vrsqrt.f32 %v3012_v17  ;;  %v3048_v42 = vadd.f32 %v5622_v29, %v3036_v55  ;;  %v5703_v52 = vld [vmem:[%s4835_s11 + $0xa8] sm:$0xff]   ;;  %v4580_v39 = vld [vmem:[%s4835_s11 + $0x70] sm:$0xff]   ;;  %v3058_v55 = vld [vmem:[%s4825_s28] sm:$0xf] }
 0xec0   : > { %v4582_v19 = vld [vmem:[%s4835_s11 + $0x30] sm:$0xff]  }
 0xec1   : > { %3273 = vmatmul.mubr.bf16.vlgmr.msra.gmra.mrb[72].mxu1 %v3054_v46  ;;  %3346 = vmatmul.mubr.bf16.vlgmr.msra.gmra.mrb[80].mxu0 %v3054_v46  ;;  %v3037_v4 = vmul.f32 %v5613_v32, %v3025_v30  ;;  %v5712_v46 = vld [vmem:[%s4835_s11 + $0xb0] sm:$0xff]   ;;  %v5718_v30 = vld [vmem:[%s4835_s11 + $0xf8] sm:$0xff]  }
 0xec2   : > { %v4749_v16 = vpop.eup %4748  ;;  %3282 = vmatprep.mubr.bf16.mxu1 %v4773_v62  ;;  %3355 = vmatprep.mubr.bf16.mxu0 %v4773_v62 }
 0xec3   : > { %v3049_v34 = vadd.f32 %v5622_v29, %v3037_v4  ;;  %4147 = vmatpush3.bf16.msra.mxu1 %v4558_v23  ;;  %4187 = vmatpush3.bf16.msra.mxu0 %v5631_v13  ;;  %v3026_v26 = vmul.f32 %v4749_v16, %v5561_v8  ;;  %v5664_v8 = vld [vmem:[%s4835_s11 + $0xd8] sm:$0xff]   ;;  %v5730_v4 = vrot.slane %v3058_v55, %v393_v28 }
 0xec4   : > { %v4751_v51 = vpop.eup %4750  ;;  %4148 = vmatprep.subr.bf16.mxu1 %v4560_v47  ;;  %4188 = vmatprep.subr.bf16.mxu0 %v5635_v45  ;;  %v4586_v23 = vld [vmem:[%s4835_s11 + $0x38] sm:$0xff]   ;;  %v5734_v16 = vrot.slane %v3058_v55, %v3032_v36 }
 0xec5   : > { %v3027_v11 = vmul.f32 %v4751_v51, %v5564_v3  ;;  %v3055_v5 = vpack.c.bf16 %v3049_v34, %v3048_v42  ;;  %v3038_v3 = vmul.f32 %v5613_v32, %v3026_v26  ;;  %v5722_v47 = vld [vmem:[%s4835_s11 + $0xb8] sm:$0xff]   ;;  %v5844_v34 = vsub.s32 1, %v4967_v21 }
 0xec6   : > { %v5742_v51 = vrot.slane %v3058_v55, %v3044_v54 }
 0xec7   : > { %v3039_v37 = vmul.f32 %v5613_v32, %v3027_v11  ;;  %4149 = vmatpush3.bf16.msra.mxu1 %v4562_v15  ;;  %4189 = vmatpush3.bf16.msra.mxu0 %v5645_v24  ;;  %v3050_v49 = vadd.f32 %v5622_v29, %v3038_v3  ;;  %v5738_v15 = vrot.slane %v3058_v55, %v5844_v34 }
 0xec8   : > { %v4753_v6 = vpop.eup %4752  ;;  %4150 = vmatprep.subr.bf16.mxu1 %v4564_v43  ;;  %4190 = vmatprep.subr.bf16.mxu0 %v5650_v56 }
 0xec9   : > { %3283 = vmatmul.mubr.bf16.gmra.mrb[76].mxu1 %v3055_v5  ;;  %3356 = vmatmul.mubr.bf16.gmra.mrb[84].mxu0 %v3055_v5  ;;  %v4755_v58 = vpop.eup %4754  ;;  %v3051_v25 = vadd.f32 %v5622_v29, %v3039_v37  ;;  %v3029_v27 = vmul.f32 %v4753_v6, %v5577_v41 }
 0xeca   : > { %3292 = vmatprep.mubr.bf16.mxu1 %v4773_v62  ;;  %3365 = vmatprep.mubr.bf16.mxu0 %v4773_v62  ;;  %v3028_v2 = vmul.f32 %v4755_v58, %v5569_v38 }
 0xecb   : > { %4151 = vmatpush3.bf16.msra.mxu1 %v4566_v12  ;;  %4191 = vmatpush3.bf16.msra.mxu0 %v5659_v48  ;;  %v3056_v41 = vpack.c.bf16 %v3051_v25, %v3050_v49  ;;  %v3041_v10 = vmul.f32 %v5613_v32, %v3029_v27 }
 0xecc   : > { %4152 = vmatprep.subr.bf16.mxu1 %v4568_v7  ;;  %4192 = vmatprep.subr.bf16.mxu0 %v5664_v8  ;;  %v3040_v38 = vmul.f32 %v5613_v32, %v3028_v2 }
 0xecd   : > { %v3053_v17 = vadd.f32 %v5622_v29, %v3041_v10 }
 0xece   : > { %v3052_v63 = vadd.f32 %v5622_v29, %v3040_v38  ;;  %v4584_v29 = vld [vmem:[%s4835_s11 + $0x78] sm:$0xff]  }
 0xecf   : > { %4153 = vmatpush3.bf16.msra.mxu1 %v4570_v35  ;;  %4193 = vmatpush3.bf16.msra.mxu0 %v5674_v31 }
 0xed0   : > { %4154 = vmatprep.subr.bf16.mxu1 %v4572_v14  ;;  %4194 = vmatprep.subr.bf16.mxu0 %v5679_v61  ;;  %v3057_v32 = vpack.c.bf16 %v3053_v17, %v3052_v63 }
 0xed1   : > { %3293 = vmatmul.mubr.bf16.gmra.mrb[80].mxu1 %v3056_v41  ;;  %3366 = vmatmul.mubr.bf16.gmra.mrb[88].mxu0 %v3056_v41 }
 0xed2   : > { %3302 = vmatprep.mubr.bf16.mxu1 %v4773_v62  ;;  %3375 = vmatprep.mubr.bf16.mxu0 %v4773_v62  ;;  %v4578_v62 = vld [vmem:[%s4835_s11 + $0x28] sm:$0xff]  }
 0xed3   : > { %4155 = vmatpush3.bf16.msra.mxu1 %v4574_v57  ;;  %4195 = vmatpush3.bf16.msra.mxu0 %v5687_v60 }
 0xed4   : > { %4156 = vmatprep.subr.bf16.mxu1 %v4576_v1  ;;  %4196 = vmatprep.subr.bf16.mxu0 %v5692_v20 }
 0xed7   : > { %4157 = vmatpush3.bf16.msra.mxu1 %v4578_v62  ;;  %4197 = vmatpush3.bf16.msra.mxu0 %v5703_v52 }
 0xed8   : > { %4158 = vmatprep.subr.bf16.mxu1 %v4580_v39  ;;  %4198 = vmatprep.subr.bf16.mxu0 %v5708_v50 }
 0xed9   : > { %3303 = vmatmul.mubr.bf16.gmra.mrb[84].mxu1 %v3057_v32  ;;  %3376 = vmatmul.mubr.bf16.gmra.mrb[92].mxu0 %v3057_v32 }
 0xedb   : > { %4159 = vmatpush3.bf16.msra.mxu1 %v4582_v19  ;;  %4199 = vmatpush3.bf16.msra.mxu0 %v5712_v46 }
 0xedc   : > { %4160 = vmatprep.subr.bf16.mxu1 %v4584_v29  ;;  %4200 = vmatprep.subr.bf16.mxu0 %v5718_v30 }
 0xedf   : > { %4161 = vmatpush3.bf16.msra.mxu1 %v4586_v23  ;;  %4201 = vmatpush3.bf16.msra.mxu0 %v5722_v47 }
 0xee0   : > { %4466 = vmatprep.subr.bf16.mxu1 %v5606_v9 }
 0xf94   : > { %v3274_v43 = vpop.f32.mrb[72].mxu1  ;;  %v3347_v42 = vpop.f32.mrb[80].mxu0 }
 0xf95   : > { %v3275_v9 = vadd.f32 %v3274_v43, %v5730_v4  ;;  %v3348_v26 = vadd.f32 %v3347_v42, %v5734_v16  ;;  %v3276_v28 = vpop.f32.mrb[73].mxu1  ;;  %v3349_v11 = vpop.f32.mrb[81].mxu0 }
 0xf96   : > { %v3277_v5 = vadd.f32 %v3276_v28, %v5738_v15  ;;  %v3350_v36 = vadd.f32 %v3349_v11, %v5742_v51  ;;  %v3278_v37 = vpop.f32.mrb[74].mxu1  ;;  %v3351_v12 = vpop.f32.mrb[82].mxu0 }
 0xf97   : > { %v3279_v6 = vadd.f32 %v3278_v37, %v5730_v4  ;;  %v3352_v21 = vadd.f32 %v3351_v12, %v5734_v16  ;;  %v3280_v54 = vpop.f32.mrb[75].mxu1  ;;  %v3353_v7 = vpop.f32.mrb[83].mxu0  ;;  %v3386_v25 = vmax.f32 %v3275_v9, 0.0  ;;  %v3388_v27 = vmax.f32 %v3348_v26, 0.0 }
 0xf98   : > { %v3281_v3 = vadd.f32 %v3280_v54, %v5738_v15  ;;  %v3354_v58 = vadd.f32 %v3353_v7, %v5742_v51  ;;  %v3387_v49 = vmax.f32 %v3277_v5, 0.0  ;;  %v3389_v2 = vmax.f32 %v3350_v36, 0.0 }
 0xf99   : > { %v3390_v35 = vmax.f32 %v3279_v6, 0.0  ;;  %v3392_v14 = vmax.f32 %v3352_v21, 0.0 }
 0xf9a   : > { %v3391_v41 = vmax.f32 %v3281_v3, 0.0  ;;  %v3393_v10 = vmax.f32 %v3354_v58, 0.0 }
 0xf9b   : > { %v3418_v57 = vpack.c.bf16 %v3390_v35, %v3386_v25  ;;  %v3420_v1 = vpack.c.bf16 %v3392_v14, %v3388_v27 }
 0xf9c   : > { %v3419_v38 = vpack.c.bf16 %v3391_v41, %v3387_v49  ;;  %v3421_v17 = vpack.c.bf16 %v3393_v10, %v3389_v2  ;;  %v3284_v63 = vpop.f32.mrb[76].mxu1  ;;  %v3357_v32 = vpop.f32.mrb[84].mxu0 }
 0xf9d   : > { %v3285_v62 = vadd.f32 %v3284_v63, %v5730_v4  ;;  %v3358_v39 = vadd.f32 %v3357_v32, %v5734_v16  ;;  %v3286_v19 = vpop.f32.mrb[77].mxu1  ;;  %v3359_v29 = vpop.f32.mrb[85].mxu0 }
 0xf9e   : > { %v3287_v23 = vadd.f32 %v3286_v19, %v5738_v15  ;;  %v3360_v55 = vadd.f32 %v3359_v29, %v5742_v51  ;;  %v3288_v34 = vpop.f32.mrb[78].mxu1  ;;  %v3361_v43 = vpop.f32.mrb[86].mxu0  ;;  %3726 = vmatprep.mubr.bf16.mxu1 %v3419_v38  ;;  %3791 = vmatprep.mubr.bf16.mxu0 %v3421_v17 }
 0xf9f   : > { %v3289_v42 = vadd.f32 %v3288_v34, %v5730_v4  ;;  %v3362_v9 = vadd.f32 %v3361_v43, %v5734_v16  ;;  %v3290_v26 = vpop.f32.mrb[79].mxu1  ;;  %v3363_v28 = vpop.f32.mrb[87].mxu0  ;;  %3727 = vmatmul.mubr.bf16.vlgmr.msra.gmra.mrb[88].mxu1 %v3418_v57  ;;  %3792 = vmatmul.mubr.bf16.vlgmr.msra.gmra.mrb[96].mxu0 %v3420_v1  ;;  %v3394_v36 = vmax.f32 %v3285_v62, 0.0  ;;  %v3396_v37 = vmax.f32 %v3358_v39, 0.0 }
 0xfa0   : > { %v3291_v11 = vadd.f32 %v3290_v26, %v5738_v15  ;;  %v3364_v5 = vadd.f32 %v3363_v28, %v5742_v51  ;;  %4474 = vmatpush3.bf16.msra.mxu1 %v5631_v13  ;;  %v3395_v21 = vmax.f32 %v3287_v23, 0.0  ;;  %v3397_v54 = vmax.f32 %v3360_v55, 0.0 }
 0xfa1   : > { %v3398_v12 = vmax.f32 %v3289_v42, 0.0  ;;  %v3400_v6 = vmax.f32 %v3362_v9, 0.0  ;;  %4467 = vmatprep.subr.bf16.mxu1 %v5635_v45 }
 0xfa2   : > { %v3399_v7 = vmax.f32 %v3291_v11, 0.0  ;;  %v3401_v3 = vmax.f32 %v3364_v5, 0.0 }
 0xfa3   : > { %v3422_v58 = vpack.c.bf16 %v3398_v12, %v3394_v36  ;;  %v3424_v25 = vpack.c.bf16 %v3400_v6, %v3396_v37 }
 0xfa4   : > { %v3423_v27 = vpack.c.bf16 %v3399_v7, %v3395_v21  ;;  %v3425_v35 = vpack.c.bf16 %v3401_v3, %v3397_v54  ;;  %v3294_v14 = vpop.f32.mrb[80].mxu1  ;;  %v3367_v49 = vpop.f32.mrb[88].mxu0  ;;  %4475 = vmatpush3.bf16.msra.mxu1 %v5645_v24 }
 0xfa5   : > { %v3295_v13 = vadd.f32 %v3294_v14, %v5730_v4  ;;  %v3368_v2 = vadd.f32 %v3367_v49, %v5734_v16  ;;  %v3296_v41 = vpop.f32.mrb[81].mxu1  ;;  %v3369_v10 = vpop.f32.mrb[89].mxu0  ;;  %4468 = vmatprep.subr.bf16.mxu1 %v5650_v56 }
 0xfa6   : > { %v3297_v45 = vadd.f32 %v3296_v41, %v5738_v15  ;;  %v3370_v57 = vadd.f32 %v3369_v10, %v5742_v51  ;;  %v3298_v1 = vpop.f32.mrb[82].mxu1  ;;  %v3371_v38 = vpop.f32.mrb[90].mxu0  ;;  %3734 = vmatprep.mubr.bf16.mxu1 %v3423_v27  ;;  %3799 = vmatprep.mubr.bf16.mxu0 %v3425_v35 }
 0xfa7   : > { %v3299_v17 = vadd.f32 %v3298_v1, %v5730_v4  ;;  %v3372_v24 = vadd.f32 %v3371_v38, %v5734_v16  ;;  %v3300_v63 = vpop.f32.mrb[83].mxu1  ;;  %v3373_v32 = vpop.f32.mrb[91].mxu0  ;;  %3735 = vmatmul.mubr.bf16.gmra.mrb[92].mxu1 %v3422_v58  ;;  %3800 = vmatmul.mubr.bf16.gmra.mrb[100].mxu0 %v3424_v25  ;;  %v3402_v39 = vmax.f32 %v3295_v13, 0.0  ;;  %v3404_v19 = vmax.f32 %v3368_v2, 0.0 }
 0xfa8   : > { %v3301_v62 = vadd.f32 %v3300_v63, %v5738_v15  ;;  %v3374_v56 = vadd.f32 %v3373_v32, %v5742_v51  ;;  %4476 = vmatpush3.bf16.msra.mxu1 %v5659_v48  ;;  %v3403_v55 = vmax.f32 %v3297_v45, 0.0  ;;  %v3405_v34 = vmax.f32 %v3370_v57, 0.0 }
 0xfa9   : > { %v3406_v29 = vmax.f32 %v3299_v17, 0.0  ;;  %v3408_v23 = vmax.f32 %v3372_v24, 0.0  ;;  %4469 = vmatprep.subr.bf16.mxu1 %v5664_v8 }
 0xfaa   : > { %v3407_v43 = vmax.f32 %v3301_v62, 0.0  ;;  %v3409_v42 = vmax.f32 %v3374_v56, 0.0 }
 0xfab   : > { %v3426_v9 = vpack.c.bf16 %v3406_v29, %v3402_v39  ;;  %v3428_v26 = vpack.c.bf16 %v3408_v23, %v3404_v19 }
 0xfac   : > { %v3427_v28 = vpack.c.bf16 %v3407_v43, %v3403_v55  ;;  %v3429_v11 = vpack.c.bf16 %v3409_v42, %v3405_v34  ;;  %v3304_v5 = vpop.f32.mrb[84].mxu1  ;;  %v3377_v36 = vpop.f32.mrb[92].mxu0  ;;  %4477 = vmatpush3.bf16.msra.mxu1 %v5674_v31 }
 0xfad   : > { %v3305_v48 = vadd.f32 %v3304_v5, %v5730_v4  ;;  %v3378_v37 = vadd.f32 %v3377_v36, %v5734_v16  ;;  %v3306_v12 = vpop.f32.mrb[85].mxu1  ;;  %v3379_v6 = vpop.f32.mrb[93].mxu0  ;;  %4470 = vmatprep.subr.bf16.mxu1 %v5679_v61 }
 0xfae   : > { %v3307_v8 = vadd.f32 %v3306_v12, %v5738_v15  ;;  %v3380_v21 = vadd.f32 %v3379_v6, %v5742_v51  ;;  %v3308_v54 = vpop.f32.mrb[86].mxu1  ;;  %v3381_v7 = vpop.f32.mrb[94].mxu0  ;;  %3742 = vmatprep.mubr.bf16.mxu1 %v3427_v28 }
 0xfaf   : > { %v3309_v3 = vadd.f32 %v3308_v54, %v5730_v4  ;;  %v3382_v58 = vadd.f32 %v3381_v7, %v5734_v16  ;;  %v3310_v31 = vpop.f32.mrb[87].mxu1  ;;  %v3383_v25 = vpop.f32.mrb[95].mxu0  ;;  %3743 = vmatmul.mubr.bf16.gmra.mrb[96].mxu1 %v3426_v9  ;;  %v3410_v61 = vmax.f32 %v3305_v48, 0.0  ;;  %v3412_v14 = vmax.f32 %v3378_v37, 0.0 }
 0xfb0   : > { %v3311_v27 = vadd.f32 %v3310_v31, %v5738_v15  ;;  %v3384_v35 = vadd.f32 %v3383_v25, %v5742_v51  ;;  %4478 = vmatpush3.bf16.msra.mxu1 %v5687_v60  ;;  %v3411_v2 = vmax.f32 %v3307_v8, 0.0  ;;  %v3413_v41 = vmax.f32 %v3380_v21, 0.0  ;;  %v5792_v15 = vld [vmem:[%s4820_s25 + $0x8] ss:$0 sm:$0xff] }
 0xfb1   : > { %v3414_v49 = vmax.f32 %v3309_v3, 0.0  ;;  %v3416_v13 = vmax.f32 %v3382_v58, 0.0  ;;  %4471 = vmatprep.subr.bf16.mxu1 %v5692_v20 }
 0xfb2   : > { %v3415_v4 = vmax.f32 %v3311_v27, 0.0  ;;  %v3417_v10 = vmax.f32 %v3384_v35, 0.0 }
 0xfb3   : > { %v3430_v16 = vpack.c.bf16 %v3414_v49, %v3410_v61  ;;  %v3432_v45 = vpack.c.bf16 %v3416_v13, %v3412_v14 }
 0xfb4   : > { %v3431_v57 = vpack.c.bf16 %v3415_v4, %v3411_v2  ;;  %v3433_v1 = vpack.c.bf16 %v3417_v10, %v3413_v41  ;;  %4479 = vmatpush3.bf16.msra.mxu1 %v5703_v52 }
 0xfb5   : > { %4472 = vmatprep.subr.bf16.mxu1 %v5708_v50 }
 0xfb6   : > { %3750 = vmatprep.mubr.bf16.mxu1 %v3431_v57 }
 0xfb7   : > { %3751 = vmatmul.mubr.bf16.gmra.mrb[100].mxu1 %v3430_v16 }
 0xfb8   : > { %4480 = vmatpush3.bf16.msra.mxu1 %v5712_v46  ;;  %3807 = vmatprep.mubr.bf16.mxu1 %v3429_v11 }
 0xfb9   : > { %4473 = vmatprep.subr.bf16.mxu1 %v5718_v30 }
 0xfbc   : > { %4481 = vmatpush3.bf16.msra.mxu1 %v5722_v47 }
 0xfbf   : > { %3808 = vmatmul.mubr.bf16.vlgmr.msra.gmra.mrb[104].mxu1 %v3428_v26 }
 0xfc0   : > { %3815 = vmatprep.mubr.bf16.mxu1 %v3433_v1 }
 0xfc7   : > { %3816 = vmatmul.mubr.bf16.gmra.mrb[108].mxu1 %v3432_v45 }
0x1072   : > { %v4162_v60 = vpop.f32.mrb[88].mxu1  ;;  %v4202_v20 = vpop.f32.mrb[96].mxu0 }
0x1073   : > { %v4163_v51 = vpop.f32.mrb[89].mxu1  ;;  %v4203_v52 = vpop.f32.mrb[97].mxu0 }
0x1074   : > { %v4164_v38 = vadd.f32 %v4163_v51, %v4162_v60  ;;  %v4204_v50 = vadd.f32 %v4203_v52, %v4202_v20  ;;  %v4165_v17 = vpop.f32.mrb[90].mxu1  ;;  %v4205_v24 = vpop.f32.mrb[98].mxu0 }
0x1075   : > { %v4166_v63 = vpop.f32.mrb[91].mxu1  ;;  %v4206_v46 = vpop.f32.mrb[99].mxu0 }
0x1076   : > { %v3729_v32 = vadd.f32 %v4164_v38, %v5792_v15  ;;  %v4167_v30 = vadd.f32 %v4166_v63, %v4165_v17  ;;  %v4207_v62 = vadd.f32 %v4206_v46, %v4205_v24 }
0x1078   : > { %v3794_v47 = vadd.f32 %v4204_v50, %v3729_v32  ;;  %v3732_v56 = vadd.f32 %v4167_v30, %v5792_v15 }
0x107a   : > { %v3824_v39 = vadd.f32 %v3794_v47, %v5508_v0  ;;  %v3797_v19 = vadd.f32 %v4207_v62, %v3732_v56  ;;  %v4168_v29 = vpop.f32.mrb[92].mxu1  ;;  %v4208_v23 = vpop.f32.mrb[100].mxu0 }
0x107b   : > { %v4169_v55 = vpop.f32.mrb[93].mxu1  ;;  %v4209_v34 = vpop.f32.mrb[101].mxu0 }
0x107c   : > { %3832 = vst [vmem:[#allocation2] sm:$0xff] %v3824_v39  ;;  %3840 = vst [vmem:[%s5842_s5] sm:$0xff] %v3824_v39  ;;  %v3825_v43 = vadd.f32 %v3797_v19, %v5510_v40  ;;  %v4170_v42 = vadd.f32 %v4169_v55, %v4168_v29  ;;  %v4210_v9 = vadd.f32 %v4209_v34, %v4208_v23  ;;  %v4171_v26 = vpop.f32.mrb[94].mxu1  ;;  %v4211_v28 = vpop.f32.mrb[102].mxu0 }
0x107d   : > { %v4172_v11 = vpop.f32.mrb[95].mxu1  ;;  %v4212_v5 = vpop.f32.mrb[103].mxu0 }
0x107e   : > { %3833 = vst [vmem:[#allocation2 + $0x8] sm:$0xff] %v3825_v43  ;;  %3841 = vst [vmem:[%s5842_s5 + $0x8] sm:$0xff] %v3825_v43  ;;  %v3737_v0 = vadd.f32 %v4170_v42, %v5792_v15  ;;  %v4173_v36 = vadd.f32 %v4172_v11, %v4171_v26  ;;  %v4213_v48 = vadd.f32 %v4212_v5, %v4211_v28 }
0x1080   : > { %v3802_v37 = vadd.f32 %v4210_v9, %v3737_v0  ;;  %v3740_v12 = vadd.f32 %v4173_v36, %v5792_v15 }
0x1082   : > { %v3826_v40 = vadd.f32 %v3802_v37, %v5513_v33  ;;  %v3805_v6 = vadd.f32 %v4213_v48, %v3740_v12  ;;  %v4174_v8 = vpop.f32.mrb[96].mxu1 }
0x1083   : > { %v4175_v21 = vpop.f32.mrb[97].mxu1 }
0x1084   : > { %3834 = vst [vmem:[#allocation2 + $0x10] sm:$0xff] %v3826_v40  ;;  %3842 = vst [vmem:[%s5842_s5 + $0x10] sm:$0xff] %v3826_v40  ;;  %v3827_v54 = vadd.f32 %v3805_v6, %v5517_v18  ;;  %v4176_v7 = vadd.f32 %v4175_v21, %v4174_v8  ;;  %v4177_v3 = vpop.f32.mrb[98].mxu1 }
0x1085   : > { %v4178_v58 = vpop.f32.mrb[99].mxu1 }
0x1086   : > { %3835 = vst [vmem:[#allocation2 + $0x18] sm:$0xff] %v3827_v54  ;;  %3843 = vst [vmem:[%s5842_s5 + $0x18] sm:$0xff] %v3827_v54  ;;  %v4179_v31 = vadd.f32 %v4178_v58, %v4177_v3  ;;  %v3745_v2 = vadd.f32 %v4176_v7, %v5792_v15 }
0x1088   : > { %v3748_v10 = vadd.f32 %v4179_v31, %v5792_v15 }
0x108a   : > { %v4180_v33 = vpop.f32.mrb[100].mxu1 }
0x108b   : > { %v4181_v25 = vpop.f32.mrb[101].mxu1 }
0x108c   : > { %v4182_v27 = vadd.f32 %v4181_v25, %v4180_v33  ;;  %v4183_v35 = vpop.f32.mrb[102].mxu1 }
0x108d   : > { %v4184_v61 = vpop.f32.mrb[103].mxu1 }
0x108e   : > { %v4185_v14 = vadd.f32 %v4184_v61, %v4183_v35  ;;  %v3753_v52 = vadd.f32 %v4182_v27, %v5792_v15 }
0x1090   : > { %v3756_v17 = vadd.f32 %v4185_v14, %v5792_v15 }
0x1092   : > { %v4214_v49 = vpop.f32.mrb[104].mxu1 }
0x1093   : > { %v4215_v13 = vpop.f32.mrb[105].mxu1 }
0x1094   : > { %v4216_v18 = vadd.f32 %v4215_v13, %v4214_v49  ;;  %v4217_v41 = vpop.f32.mrb[106].mxu1 }
0x1095   : > { %v4218_v4 = vpop.f32.mrb[107].mxu1 }
0x1096   : > { %v3810_v16 = vadd.f32 %v4216_v18, %v3745_v2  ;;  %v4219_v45 = vadd.f32 %v4218_v4, %v4217_v41 }
0x1098   : > { %v3828_v57 = vadd.f32 %v3810_v16, %v5520_v22  ;;  %v3813_v1 = vadd.f32 %v4219_v45, %v3748_v10 }
0x109a   : > { %3836 = vst [vmem:[#allocation2 + $0x20] sm:$0xff] %v3828_v57  ;;  %3844 = vst [vmem:[%s5842_s5 + $0x20] sm:$0xff] %v3828_v57  ;;  %v3829_v60 = vadd.f32 %v3813_v1, %v5522_v53  ;;  %v4220_v20 = vpop.f32.mrb[108].mxu1 }
0x109b   : > { %v4221_v51 = vpop.f32.mrb[109].mxu1 }
0x109c   : > { %3837 = vst [vmem:[#allocation2 + $0x28] sm:$0xff] %v3829_v60  ;;  %3845 = vst [vmem:[%s5842_s5 + $0x28] sm:$0xff] %v3829_v60  ;;  %v4222_v38 = vadd.f32 %v4221_v51, %v4220_v20  ;;  %v4223_v50 = vpop.f32.mrb[110].mxu1 }
0x109d   : > { %v4224_v22 = vpop.f32.mrb[111].mxu1 }
0x109e   : > { %v3818_v24 = vadd.f32 %v4222_v38, %v3753_v52  ;;  %v4225_v63 = vadd.f32 %v4224_v22, %v4223_v50 }
0x10a0   : > { %v3830_v46 = vadd.f32 %v3818_v24, %v5525_v44  ;;  %v3821_v32 = vadd.f32 %v4225_v63, %v3756_v17 }
0x10a2   : > { %3838 = vst [vmem:[#allocation2 + $0x30] sm:$0xff] %v3830_v46  ;;  %3846 = vst [vmem:[%s5842_s5 + $0x30] sm:$0xff] %v3830_v46  ;;  %v3831_v53 = vadd.f32 %v3821_v32, %v5528_v59 }
0x10a4   : > { %3839 = vst [vmem:[#allocation2 + $0x38] sm:$0xff] %v3831_v53  ;;  %3847 = vst [vmem:[%s5842_s5 + $0x38] sm:$0xff] %v3831_v53 }
0x10a5 PF: > { %s15_s18 = sadd.s32 1, %s4771_s18  }
0x10a6   : > { %p12_p5 = scmp.ge.s32.totalorder %s15_s18, 4  }
0x10a8   :  { %14 = sbr.rel (!%p12_p5) target bundleno = 1 (0x1), region = 79 }

</bundles_post_ra>
